<compile_context>
chip_gen: v5e
topology: v5e:2x2
jax: 0.10.0
libtpu: 0.0.40
codegen_flags: <defaults>
</compile_context>

<pallas_src>
import numpy as np
import jax
import jax.numpy as jnp
from jax import lax
from jax.experimental import pallas as pl
from jax.experimental.pallas import tpu as pltpu


# ----------------------------------------------------------------------------
# host-side (numpy) helpers: pooling / bilinear-interp matrices (glue)
# ----------------------------------------------------------------------------
def adaptive_pool_matrix(in_size, out_size):
    """P[i, h] = averaging weight of input row h for adaptive-avg-pool bin i."""
    P = np.zeros((out_size, in_size), dtype=np.float32)
    for i in range(out_size):
        start = (i * in_size) // out_size
        end = -((-(i + 1) * in_size) // out_size)  # ceil((i+1)*in/out)
        P[i, start:end] = 1.0 / float(end - start)
    return P


def bilinear_matrix(out_size, in_size):
    """L[o, i] = bilinear (align_corners=True) weight of src i for dst o."""
    L = np.zeros((out_size, in_size), dtype=np.float32)
    if in_size == 1 or out_size == 1:
        L[:, 0] = 1.0
        return L
    for o in range(out_size):
        src = o * (in_size - 1) / (out_size - 1)
        i0 = int(np.floor(src))
        i1 = min(i0 + 1, in_size - 1)
        f = src - i0
        L[o, i0] += 1.0 - f
        L[o, i1] += f
    return L


def bn_fold(gamma, beta, mean, var, eps=1e-5):
    scale = gamma / jnp.sqrt(var + eps)
    bias = beta - mean * scale
    return scale, bias


# ----------------------------------------------------------------------------
# fused Pallas kernel: pyramid stages + virtual concat + 3x3 bottleneck
# ----------------------------------------------------------------------------
def _make_psp_kernel(W, HW, Cout):
    def kernel(x_ref, kp_ref, wc_ref, bc_ref, m_ref, ku_ref,
               w3x_ref, w3u_ref, b3_ref, bm_ref, o_ref):
        xf = x_ref[0]                                            # (HW, C) bf16

        # --- all pyramid stages at once (BN scale pre-folded into wc) -------
        pooled = jnp.dot(kp_ref[...], xf,                        # (BBp, C)
                         preferred_element_type=jnp.float32)
        z = jnp.dot(pooled.astype(jnp.bfloat16), wc_ref[...],    # (BBp, S*oc)
                    preferred_element_type=jnp.float32)
        # bias + ReLU, then block-mask so each stage only sees its own bins
        z = jnp.maximum(z + bc_ref[...], 0.0) * m_ref[...]
        u = jnp.dot(ku_ref[...], z.astype(jnp.bfloat16),         # (HW, S*oc)
                    preferred_element_type=jnp.float32)
        uf = u.astype(jnp.bfloat16)

        # --- 3x3 bottleneck conv on the *virtual* concat [x | u] ------------
        # 9 taps = 18 matmuls on resident operands; the (dy, dx) shift is
        # applied to the Cout-wide result via a sublane roll (XLU) + a
        # precomputed border mask (zeros the padding / row-wrap positions).
        acc = jnp.zeros((HW, Cout), jnp.float32)
        for ky in range(3):
            for kx in range(3):
                tap = ky * 3 + kx
                c = (jnp.dot(xf, w3x_ref[ky, kx],
                             preferred_element_type=jnp.float32) +
                     jnp.dot(uf, w3u_ref[ky, kx],
                             preferred_element_type=jnp.float32))
                shift = (ky - 1) * W + (kx - 1)
                if shift != 0:
                    c = pltpu.roll(c, shift=(-shift) % HW, axis=0)
                    c = c * bm_ref[:, tap:tap + 1]
                acc = acc + c
        y = jnp.maximum(acc + b3_ref[...], 0.0)                  # BN bias+ReLU
        # Dropout2d(0.1) is the identity in inference mode.
        o_ref[0] = y
    return kernel


# ----------------------------------------------------------------------------
# parameter init + forward wrapper
# ----------------------------------------------------------------------------
def init_params(key, in_channels, bin_sizes):
    out_c = in_channels // len(bin_sizes)
    n_stage = len(bin_sizes)
    k_iter = iter(jax.random.split(key, 5 * n_stage + 5))

    def bn_params(c):
        g = 1.0 + 0.1 * jax.random.normal(next(k_iter), (c,), jnp.float32)
        b = 0.1 * jax.random.normal(next(k_iter), (c,), jnp.float32)
        m = 0.1 * jax.random.normal(next(k_iter), (c,), jnp.float32)
        v = jax.random.uniform(next(k_iter), (c,), jnp.float32, 0.5, 1.5)
        return g, b, m, v

    params = {"stages": [], "bottleneck": {}}
    for _ in bin_sizes:
        w = 0.1 * jax.random.normal(next(k_iter), (in_channels, out_c), jnp.float32)
        params["stages"].append({"w1x1": w, "bn": bn_params(out_c)})
    cin = in_channels + out_c * n_stage
    w3 = 0.1 * jax.random.normal(next(k_iter), (3, 3, cin, out_c), jnp.float32)
    params["bottleneck"] = {"w3x3": w3, "bn": bn_params(out_c)}
    return params


def psp_forward(features_nchw, params, bin_sizes):
    N, C, H, W = features_nchw.shape
    S = len(bin_sizes)
    out_c = C // S
    SOC = S * out_c
    HW = H * W

    x = (jnp.transpose(features_nchw, (0, 2, 3, 1))
         .reshape(N, HW, C).astype(jnp.bfloat16))                # (N, HW, C)

    # --- host-side pooling / bilinear / block-mask matrices (stacked) -------
    BB = sum(b * b for b in bin_sizes)
    BBp = ((BB + 7) // 8) * 8              # pad bin rows to a sublane multiple
    Kp_all = np.zeros((BBp, HW), np.float32)
    Ku_all = np.zeros((HW, BBp), np.float32)
    mask_np = np.zeros((BBp, SOC), np.float32)
    off = 0
    for s, b in enumerate(bin_sizes):
        Kp_all[off:off + b * b, :] = np.kron(adaptive_pool_matrix(H, b),
                                             adaptive_pool_matrix(W, b))
        Ku_all[:, off:off + b * b] = np.kron(bilinear_matrix(H, b),
                                             bilinear_matrix(W, b))
        mask_np[off:off + b * b, s * out_c:(s + 1) * out_c] = 1.0
        off += b * b
    # mask layout must match the W_cat / B_cat column ordering (per review)
    assert off == BB
    assert np.all(mask_np[:BB].sum(axis=1) == out_c)
    assert np.all(mask_np[BB:] == 0.0)

    # --- per-tap border masks for the 3x3 conv (zero the roll wrap-around) --
    row, col = np.divmod(np.arange(HW), W)
    border = np.zeros((HW, 9), np.float32)
    for ky in range(3):
        for kx in range(3):
            dy, dx = ky - 1, kx - 1
            ok = ((row + dy >= 0) & (row + dy < H) &
                  (col + dx >= 0) & (col + dx < W))
            border[:, ky * 3 + kx] = ok.astype(np.float32)

    # --- fold BN scales into the conv weights; split w3 into [x | u] parts --
    w_cols, b_cols = [], []
    for s in range(S):
        scale, bias = bn_fold(*params["stages"][s]["bn"])
        w_cols.append(params["stages"][s]["w1x1"] * scale[None, :])
        b_cols.append(bias)
    W_cat = jnp.concatenate(w_cols, axis=1).astype(jnp.bfloat16)   # (C, SOC)
    B_cat = jnp.concatenate(b_cols, axis=0).reshape(1, SOC)        # f32

    scale3, bias3 = bn_fold(*params["bottleneck"]["bn"])
    w3 = params["bottleneck"]["w3x3"] * scale3[None, None, None, :]
    w3x = w3[:, :, :C, :].astype(jnp.bfloat16)                     # (3,3,C,oc)
    w3u = w3[:, :, C:, :].astype(jnp.bfloat16)                     # (3,3,SOC,oc)
    b3 = bias3.reshape(1, out_c)                                   # f32

    kp = jnp.asarray(Kp_all, jnp.bfloat16)
    ku = jnp.asarray(Ku_all, jnp.bfloat16)
    m = jnp.asarray(mask_np, jnp.float32)
    bm = jnp.asarray(border, jnp.float32)

    y = pl.pallas_call(
        _make_psp_kernel(W, HW, out_c),
        out_shape=jax.ShapeDtypeStruct((N, HW, out_c), jnp.float32),
        grid=(N,),
        in_specs=[
            pl.BlockSpec((1, HW, C), lambda n: (n, 0, 0)),
            pl.BlockSpec((BBp, HW), lambda n: (0, 0)),
            pl.BlockSpec((C, SOC), lambda n: (0, 0)),
            pl.BlockSpec((1, SOC), lambda n: (0, 0)),
            pl.BlockSpec((BBp, SOC), lambda n: (0, 0)),
            pl.BlockSpec((HW, BBp), lambda n: (0, 0)),
            pl.BlockSpec((3, 3, C, out_c), lambda n: (0, 0, 0, 0)),
            pl.BlockSpec((3, 3, SOC, out_c), lambda n: (0, 0, 0, 0)),
            pl.BlockSpec((1, out_c), lambda n: (0, 0)),
            pl.BlockSpec((HW, 9), lambda n: (0, 0)),
        ],
        out_specs=pl.BlockSpec((1, HW, out_c), lambda n: (n, 0, 0)),
        compiler_params=pltpu.CompilerParams(
            dimension_semantics=("parallel",),
            # safe on v5e/v6e (128 MiB phys) and v7x (64 MiB phys); toy shapes
            # need far less, production tiles should re-derive per generation.
            vmem_limit_bytes=48 * 1024 * 1024),
    )(x, kp, W_cat, B_cat, m, ku, w3x, w3u, b3, bm)

    return jnp.transpose(y.reshape(N, H, W, out_c), (0, 3, 1, 2))  # NCHW


# ----------------------------------------------------------------------------
# pure-JAX reference (unfused, f32, unfolded params) for correctness check
# ----------------------------------------------------------------------------
def psp_reference(features_nchw, params, bin_sizes):
    N, C, H, W = features_nchw.shape
    out_c = C // len(bin_sizes)
    x = jnp.transpose(features_nchw, (0, 2, 3, 1)).astype(jnp.float32)
    xf = x.reshape(N, H * W, C)
    pyr = [x]
    for s, b in enumerate(bin_sizes):
        Kp = jnp.asarray(np.kron(adaptive_pool_matrix(H, b),
                                 adaptive_pool_matrix(W, b)))
        Ku = jnp.asarray(np.kron(bilinear_matrix(H, b),
                                 bilinear_matrix(W, b)))
        scale, bias = bn_fold(*params["stages"][s]["bn"])
        pooled = jnp.einsum('ph,nhc->npc', Kp, xf)
        z = jnp.einsum('npc,co->npo', pooled, params["stages"][s]["w1x1"])
        z = jnp.maximum(z * scale + bias, 0.0)
        u = jnp.einsum('hp,npo->nho', Ku, z)
        pyr.append(u.reshape(N, H, W, out_c))
    cat = jnp.concatenate(pyr, axis=-1)
    y = lax.conv_general_dilated(cat, params["bottleneck"]["w3x3"],
                                 window_strides=(1, 1), padding='SAME',
                                 dimension_numbers=('NHWC', 'HWIO', 'NHWC'))
    scale3, bias3 = bn_fold(*params["bottleneck"]["bn"])
    y = jnp.maximum(y * scale3 + bias3, 0.0)
    return jnp.transpose(y, (0, 3, 1, 2))


# ----------------------------------------------------------------------------
if __name__ == "__main__":
    key = jax.random.PRNGKey(0)
    k_x, k_p = jax.random.split(key)

    N, C, H, W = 2, 16, 16, 16
    bin_sizes = (1, 2, 3, 6)            # out_channels = 16 // 4 = 4
    x = jax.random.normal(k_x, (N, C, H, W), jnp.float32)
    params = init_params(k_p, C, bin_sizes)

    out = jax.block_until_ready(psp_forward(x, params, bin_sizes))
    ref = jax.block_until_ready(psp_reference(x, params, bin_sizes))

    assert out.shape == (N, C // len(bin_sizes), H, W), out.shape
    max_err = float(jnp.max(jnp.abs(out - ref)))
    # tolerance loosened vs f32 version: kernel uses bf16 MXU operands
    tol = 5e-2 * (1.0 + float(jnp.max(jnp.abs(ref))))
    assert max_err < tol, f"max_err={max_err} tol={tol}"
    print("KERNEL_OK")
</pallas_src>

<mosaic_0001>
module attributes {stable_mosaic.version = 11 : i64} {
  func.func @kernel(%arg0: i32, %arg1: memref<1x256x16xbf16, #tpu.memory_space<vmem>>, %arg2: memref<56x256xbf16, #tpu.memory_space<vmem>>, %arg3: memref<16x16xbf16, #tpu.memory_space<vmem>>, %arg4: memref<1x16xf32, #tpu.memory_space<vmem>>, %arg5: memref<56x16xf32, #tpu.memory_space<vmem>>, %arg6: memref<256x56xbf16, #tpu.memory_space<vmem>>, %arg7: memref<3x3x16x4xbf16, #tpu.memory_space<vmem>>, %arg8: memref<3x3x16x4xbf16, #tpu.memory_space<vmem>>, %arg9: memref<1x4xf32, #tpu.memory_space<vmem>>, %arg10: memref<256x9xf32, #tpu.memory_space<vmem>>, %arg11: memref<1x256x4xf32, #tpu.memory_space<vmem>>) attributes {dimension_semantics = [#tpu.dimension_semantics<parallel>], iteration_bounds = array<i64: 2>, scalar_prefetch = 0 : i64, scratch_operands = 0 : i64, tpu.core_type = #tpu.core_type<tc>, window_params = [{transform_indices = @transform_0, window_bounds = array<i64: 1, 256, 16>}, {pipeline_mode = #tpu.pipeline_mode<synchronous>, transform_indices = @transform_1, window_bounds = array<i64: 56, 256>}, {pipeline_mode = #tpu.pipeline_mode<synchronous>, transform_indices = @transform_2, window_bounds = array<i64: 16, 16>}, {pipeline_mode = #tpu.pipeline_mode<synchronous>, transform_indices = @transform_3, window_bounds = array<i64: 1, 16>}, {pipeline_mode = #tpu.pipeline_mode<synchronous>, transform_indices = @transform_4, window_bounds = array<i64: 56, 16>}, {pipeline_mode = #tpu.pipeline_mode<synchronous>, transform_indices = @transform_5, window_bounds = array<i64: 256, 56>}, {pipeline_mode = #tpu.pipeline_mode<synchronous>, transform_indices = @transform_6, window_bounds = array<i64: 3, 3, 16, 4>}, {pipeline_mode = #tpu.pipeline_mode<synchronous>, transform_indices = @transform_7, window_bounds = array<i64: 3, 3, 16, 4>}, {pipeline_mode = #tpu.pipeline_mode<synchronous>, transform_indices = @transform_8, window_bounds = array<i64: 1, 4>}, {pipeline_mode = #tpu.pipeline_mode<synchronous>, transform_indices = @transform_9, window_bounds = array<i64: 256, 9>}, {transform_indices = @transform_10, window_bounds = array<i64: 1, 256, 4>}]} {
    %c0 = arith.constant 0 : index
    %c0_0 = arith.constant 0 : index
    %c0_1 = arith.constant 0 : index
    %0 = vector.load %arg1[%c0, %c0_0, %c0_1] : memref<1x256x16xbf16, #tpu.memory_space<vmem>>, vector<1x256x16xbf16>
    %1 = vector.shape_cast %0 : vector<1x256x16xbf16> to vector<256x16xbf16>
    %c0_2 = arith.constant 0 : index
    %c0_3 = arith.constant 0 : index
    %2 = vector.load %arg2[%c0_2, %c0_3] : memref<56x256xbf16, #tpu.memory_space<vmem>>, vector<56x256xbf16>
    %cst = arith.constant dense<0.000000e+00> : vector<56x16xf32>
    %3 = tpu.matmul %2, %1, %cst {dimension_numbers = #tpu.dot_dimension_numbers<[1], [0], [0], [1], [0, 0, 1, 1], [], []>} : vector<56x256xbf16>, vector<256x16xbf16>, vector<56x16xf32> -> vector<56x16xf32>
    %4 = arith.truncf %3 : vector<56x16xf32> to vector<56x16xbf16>
    %c0_4 = arith.constant 0 : index
    %c0_5 = arith.constant 0 : index
    %5 = vector.load %arg3[%c0_4, %c0_5] : memref<16x16xbf16, #tpu.memory_space<vmem>>, vector<16x16xbf16>
    %cst_6 = arith.constant dense<0.000000e+00> : vector<56x16xf32>
    %6 = tpu.matmul %4, %5, %cst_6 {dimension_numbers = #tpu.dot_dimension_numbers<[1], [0], [0], [1], [0, 0, 1, 1], [], []>} : vector<56x16xbf16>, vector<16x16xbf16>, vector<56x16xf32> -> vector<56x16xf32>
    %c0_7 = arith.constant 0 : index
    %c0_8 = arith.constant 0 : index
    %7 = vector.load %arg4[%c0_7, %c0_8] : memref<1x16xf32, #tpu.memory_space<vmem>>, vector<1x16xf32>
    %8 = vector.broadcast %7 : vector<1x16xf32> to vector<56x16xf32>
    %9 = arith.addf %6, %8 : vector<56x16xf32>
    %cst_9 = arith.constant 0.000000e+00 : f32
    %10 = vector.broadcast %cst_9 : f32 to vector<56x16xf32>
    %11 = arith.maximumf %9, %10 : vector<56x16xf32>
    %c0_10 = arith.constant 0 : index
    %c0_11 = arith.constant 0 : index
    %12 = vector.load %arg5[%c0_10, %c0_11] : memref<56x16xf32, #tpu.memory_space<vmem>>, vector<56x16xf32>
    %13 = arith.mulf %11, %12 : vector<56x16xf32>
    %c0_12 = arith.constant 0 : index
    %c0_13 = arith.constant 0 : index
    %14 = vector.load %arg6[%c0_12, %c0_13] : memref<256x56xbf16, #tpu.memory_space<vmem>>, vector<256x56xbf16>
    %15 = arith.truncf %13 : vector<56x16xf32> to vector<56x16xbf16>
    %cst_14 = arith.constant dense<0.000000e+00> : vector<256x16xf32>
    %16 = tpu.matmul %14, %15, %cst_14 {dimension_numbers = #tpu.dot_dimension_numbers<[1], [0], [0], [1], [0, 0, 1, 1], [], []>} : vector<256x56xbf16>, vector<56x16xbf16>, vector<256x16xf32> -> vector<256x16xf32>
    %17 = arith.truncf %16 : vector<256x16xf32> to vector<256x16xbf16>
    %cst_15 = arith.constant 0.000000e+00 : f32
    %18 = vector.broadcast %cst_15 : f32 to vector<256x4xf32>
    %c0_16 = arith.constant 0 : index
    %c0_17 = arith.constant 0 : index
    %c0_18 = arith.constant 0 : index
    %c0_19 = arith.constant 0 : index
    %19 = vector.load %arg7[%c0_16, %c0_17, %c0_18, %c0_19] : memref<3x3x16x4xbf16, #tpu.memory_space<vmem>>, vector<1x1x16x4xbf16>
    %20 = vector.shape_cast %19 : vector<1x1x16x4xbf16> to vector<16x4xbf16>
    %cst_20 = arith.constant dense<0.000000e+00> : vector<256x4xf32>
    %21 = tpu.matmul %1, %20, %cst_20 {dimension_numbers = #tpu.dot_dimension_numbers<[1], [0], [0], [1], [0, 0, 1, 1], [], []>} : vector<256x16xbf16>, vector<16x4xbf16>, vector<256x4xf32> -> vector<256x4xf32>
    %c0_21 = arith.constant 0 : index
    %c0_22 = arith.constant 0 : index
    %c0_23 = arith.constant 0 : index
    %c0_24 = arith.constant 0 : index
    %22 = vector.load %arg8[%c0_21, %c0_22, %c0_23, %c0_24] : memref<3x3x16x4xbf16, #tpu.memory_space<vmem>>, vector<1x1x16x4xbf16>
    %23 = vector.shape_cast %22 : vector<1x1x16x4xbf16> to vector<16x4xbf16>
    %cst_25 = arith.constant dense<0.000000e+00> : vector<256x4xf32>
    %24 = tpu.matmul %17, %23, %cst_25 {dimension_numbers = #tpu.dot_dimension_numbers<[1], [0], [0], [1], [0, 0, 1, 1], [], []>} : vector<256x16xbf16>, vector<16x4xbf16>, vector<256x4xf32> -> vector<256x4xf32>
    %25 = arith.addf %21, %24 : vector<256x4xf32>
    %c17_i32 = arith.constant 17 : i32
    %26 = tpu.dynamic_rotate %25 by %c17_i32 dim 0 : vector<256x4xf32>, i32 -> vector<256x4xf32>
    %c0_26 = arith.constant 0 : index
    %c0_27 = arith.constant 0 : index
    %27 = vector.load %arg10[%c0_26, %c0_27] : memref<256x9xf32, #tpu.memory_space<vmem>>, vector<256x1xf32>
    %28 = vector.broadcast %27 : vector<256x1xf32> to vector<256x4xf32>
    %29 = arith.mulf %26, %28 : vector<256x4xf32>
    %30 = arith.addf %18, %29 : vector<256x4xf32>
    %c0_28 = arith.constant 0 : index
    %c1 = arith.constant 1 : index
    %c0_29 = arith.constant 0 : index
    %c0_30 = arith.constant 0 : index
    %31 = vector.load %arg7[%c0_28, %c1, %c0_29, %c0_30] : memref<3x3x16x4xbf16, #tpu.memory_space<vmem>>, vector<1x1x16x4xbf16>
    %32 = vector.shape_cast %31 : vector<1x1x16x4xbf16> to vector<16x4xbf16>
    %cst_31 = arith.constant dense<0.000000e+00> : vector<256x4xf32>
    %33 = tpu.matmul %1, %32, %cst_31 {dimension_numbers = #tpu.dot_dimension_numbers<[1], [0], [0], [1], [0, 0, 1, 1], [], []>} : vector<256x16xbf16>, vector<16x4xbf16>, vector<256x4xf32> -> vector<256x4xf32>
    %c0_32 = arith.constant 0 : index
    %c1_33 = arith.constant 1 : index
    %c0_34 = arith.constant 0 : index
    %c0_35 = arith.constant 0 : index
    %34 = vector.load %arg8[%c0_32, %c1_33, %c0_34, %c0_35] : memref<3x3x16x4xbf16, #tpu.memory_space<vmem>>, vector<1x1x16x4xbf16>
    %35 = vector.shape_cast %34 : vector<1x1x16x4xbf16> to vector<16x4xbf16>
    %cst_36 = arith.constant dense<0.000000e+00> : vector<256x4xf32>
    %36 = tpu.matmul %17, %35, %cst_36 {dimension_numbers = #tpu.dot_dimension_numbers<[1], [0], [0], [1], [0, 0, 1, 1], [], []>} : vector<256x16xbf16>, vector<16x4xbf16>, vector<256x4xf32> -> vector<256x4xf32>
    %37 = arith.addf %33, %36 : vector<256x4xf32>
    %c16_i32 = arith.constant 16 : i32
    %38 = tpu.dynamic_rotate %37 by %c16_i32 dim 0 : vector<256x4xf32>, i32 -> vector<256x4xf32>
    %c0_37 = arith.constant 0 : index
    %c1_38 = arith.constant 1 : index
    %39 = vector.load %arg10[%c0_37, %c1_38] : memref<256x9xf32, #tpu.memory_space<vmem>>, vector<256x1xf32>
    %40 = vector.broadcast %39 : vector<256x1xf32> to vector<256x4xf32>
    %41 = arith.mulf %38, %40 : vector<256x4xf32>
    %42 = arith.addf %30, %41 : vector<256x4xf32>
    %c0_39 = arith.constant 0 : index
    %c2 = arith.constant 2 : index
    %c0_40 = arith.constant 0 : index
    %c0_41 = arith.constant 0 : index
    %43 = vector.load %arg7[%c0_39, %c2, %c0_40, %c0_41] : memref<3x3x16x4xbf16, #tpu.memory_space<vmem>>, vector<1x1x16x4xbf16>
    %44 = vector.shape_cast %43 : vector<1x1x16x4xbf16> to vector<16x4xbf16>
    %cst_42 = arith.constant dense<0.000000e+00> : vector<256x4xf32>
    %45 = tpu.matmul %1, %44, %cst_42 {dimension_numbers = #tpu.dot_dimension_numbers<[1], [0], [0], [1], [0, 0, 1, 1], [], []>} : vector<256x16xbf16>, vector<16x4xbf16>, vector<256x4xf32> -> vector<256x4xf32>
    %c0_43 = arith.constant 0 : index
    %c2_44 = arith.constant 2 : index
    %c0_45 = arith.constant 0 : index
    %c0_46 = arith.constant 0 : index
    %46 = vector.load %arg8[%c0_43, %c2_44, %c0_45, %c0_46] : memref<3x3x16x4xbf16, #tpu.memory_space<vmem>>, vector<1x1x16x4xbf16>
    %47 = vector.shape_cast %46 : vector<1x1x16x4xbf16> to vector<16x4xbf16>
    %cst_47 = arith.constant dense<0.000000e+00> : vector<256x4xf32>
    %48 = tpu.matmul %17, %47, %cst_47 {dimension_numbers = #tpu.dot_dimension_numbers<[1], [0], [0], [1], [0, 0, 1, 1], [], []>} : vector<256x16xbf16>, vector<16x4xbf16>, vector<256x4xf32> -> vector<256x4xf32>
    %49 = arith.addf %45, %48 : vector<256x4xf32>
    %c15_i32 = arith.constant 15 : i32
    %50 = tpu.dynamic_rotate %49 by %c15_i32 dim 0 : vector<256x4xf32>, i32 -> vector<256x4xf32>
    %c0_48 = arith.constant 0 : index
    %c2_49 = arith.constant 2 : index
    %51 = vector.load %arg10[%c0_48, %c2_49] : memref<256x9xf32, #tpu.memory_space<vmem>>, vector<256x1xf32>
    %52 = vector.broadcast %51 : vector<256x1xf32> to vector<256x4xf32>
    %53 = arith.mulf %50, %52 : vector<256x4xf32>
    %54 = arith.addf %42, %53 : vector<256x4xf32>
    %c1_50 = arith.constant 1 : index
    %c0_51 = arith.constant 0 : index
    %c0_52 = arith.constant 0 : index
    %c0_53 = arith.constant 0 : index
    %55 = vector.load %arg7[%c1_50, %c0_51, %c0_52, %c0_53] : memref<3x3x16x4xbf16, #tpu.memory_space<vmem>>, vector<1x1x16x4xbf16>
    %56 = vector.shape_cast %55 : vector<1x1x16x4xbf16> to vector<16x4xbf16>
    %cst_54 = arith.constant dense<0.000000e+00> : vector<256x4xf32>
    %57 = tpu.matmul %1, %56, %cst_54 {dimension_numbers = #tpu.dot_dimension_numbers<[1], [0], [0], [1], [0, 0, 1, 1], [], []>} : vector<256x16xbf16>, vector<16x4xbf16>, vector<256x4xf32> -> vector<256x4xf32>
    %c1_55 = arith.constant 1 : index
    %c0_56 = arith.constant 0 : index
    %c0_57 = arith.constant 0 : index
    %c0_58 = arith.constant 0 : index
    %58 = vector.load %arg8[%c1_55, %c0_56, %c0_57, %c0_58] : memref<3x3x16x4xbf16, #tpu.memory_space<vmem>>, vector<1x1x16x4xbf16>
    %59 = vector.shape_cast %58 : vector<1x1x16x4xbf16> to vector<16x4xbf16>
    %cst_59 = arith.constant dense<0.000000e+00> : vector<256x4xf32>
    %60 = tpu.matmul %17, %59, %cst_59 {dimension_numbers = #tpu.dot_dimension_numbers<[1], [0], [0], [1], [0, 0, 1, 1], [], []>} : vector<256x16xbf16>, vector<16x4xbf16>, vector<256x4xf32> -> vector<256x4xf32>
    %61 = arith.addf %57, %60 : vector<256x4xf32>
    %c1_i32 = arith.constant 1 : i32
    %62 = tpu.dynamic_rotate %61 by %c1_i32 dim 0 : vector<256x4xf32>, i32 -> vector<256x4xf32>
    %c0_60 = arith.constant 0 : index
    %c3 = arith.constant 3 : index
    %63 = vector.load %arg10[%c0_60, %c3] : memref<256x9xf32, #tpu.memory_space<vmem>>, vector<256x1xf32>
    %64 = vector.broadcast %63 : vector<256x1xf32> to vector<256x4xf32>
    %65 = arith.mulf %62, %64 : vector<256x4xf32>
    %66 = arith.addf %54, %65 : vector<256x4xf32>
    %c1_61 = arith.constant 1 : index
    %c1_62 = arith.constant 1 : index
    %c0_63 = arith.constant 0 : index
    %c0_64 = arith.constant 0 : index
    %67 = vector.load %arg7[%c1_61, %c1_62, %c0_63, %c0_64] : memref<3x3x16x4xbf16, #tpu.memory_space<vmem>>, vector<1x1x16x4xbf16>
    %68 = vector.shape_cast %67 : vector<1x1x16x4xbf16> to vector<16x4xbf16>
    %cst_65 = arith.constant dense<0.000000e+00> : vector<256x4xf32>
    %69 = tpu.matmul %1, %68, %cst_65 {dimension_numbers = #tpu.dot_dimension_numbers<[1], [0], [0], [1], [0, 0, 1, 1], [], []>} : vector<256x16xbf16>, vector<16x4xbf16>, vector<256x4xf32> -> vector<256x4xf32>
    %c1_66 = arith.constant 1 : index
    %c1_67 = arith.constant 1 : index
    %c0_68 = arith.constant 0 : index
    %c0_69 = arith.constant 0 : index
    %70 = vector.load %arg8[%c1_66, %c1_67, %c0_68, %c0_69] : memref<3x3x16x4xbf16, #tpu.memory_space<vmem>>, vector<1x1x16x4xbf16>
    %71 = vector.shape_cast %70 : vector<1x1x16x4xbf16> to vector<16x4xbf16>
    %cst_70 = arith.constant dense<0.000000e+00> : vector<256x4xf32>
    %72 = tpu.matmul %17, %71, %cst_70 {dimension_numbers = #tpu.dot_dimension_numbers<[1], [0], [0], [1], [0, 0, 1, 1], [], []>} : vector<256x16xbf16>, vector<16x4xbf16>, vector<256x4xf32> -> vector<256x4xf32>
    %73 = arith.addf %69, %72 : vector<256x4xf32>
    %74 = arith.addf %66, %73 : vector<256x4xf32>
    %c1_71 = arith.constant 1 : index
    %c2_72 = arith.constant 2 : index
    %c0_73 = arith.constant 0 : index
    %c0_74 = arith.constant 0 : index
    %75 = vector.load %arg7[%c1_71, %c2_72, %c0_73, %c0_74] : memref<3x3x16x4xbf16, #tpu.memory_space<vmem>>, vector<1x1x16x4xbf16>
    %76 = vector.shape_cast %75 : vector<1x1x16x4xbf16> to vector<16x4xbf16>
    %cst_75 = arith.constant dense<0.000000e+00> : vector<256x4xf32>
    %77 = tpu.matmul %1, %76, %cst_75 {dimension_numbers = #tpu.dot_dimension_numbers<[1], [0], [0], [1], [0, 0, 1, 1], [], []>} : vector<256x16xbf16>, vector<16x4xbf16>, vector<256x4xf32> -> vector<256x4xf32>
    %c1_76 = arith.constant 1 : index
    %c2_77 = arith.constant 2 : index
    %c0_78 = arith.constant 0 : index
    %c0_79 = arith.constant 0 : index
    %78 = vector.load %arg8[%c1_76, %c2_77, %c0_78, %c0_79] : memref<3x3x16x4xbf16, #tpu.memory_space<vmem>>, vector<1x1x16x4xbf16>
    %79 = vector.shape_cast %78 : vector<1x1x16x4xbf16> to vector<16x4xbf16>
    %cst_80 = arith.constant dense<0.000000e+00> : vector<256x4xf32>
    %80 = tpu.matmul %17, %79, %cst_80 {dimension_numbers = #tpu.dot_dimension_numbers<[1], [0], [0], [1], [0, 0, 1, 1], [], []>} : vector<256x16xbf16>, vector<16x4xbf16>, vector<256x4xf32> -> vector<256x4xf32>
    %81 = arith.addf %77, %80 : vector<256x4xf32>
    %c255_i32 = arith.constant 255 : i32
    %82 = tpu.dynamic_rotate %81 by %c255_i32 dim 0 : vector<256x4xf32>, i32 -> vector<256x4xf32>
    %c0_81 = arith.constant 0 : index
    %c5 = arith.constant 5 : index
    %83 = vector.load %arg10[%c0_81, %c5] : memref<256x9xf32, #tpu.memory_space<vmem>>, vector<256x1xf32>
    %84 = vector.broadcast %83 : vector<256x1xf32> to vector<256x4xf32>
    %85 = arith.mulf %82, %84 : vector<256x4xf32>
    %86 = arith.addf %74, %85 : vector<256x4xf32>
    %c2_82 = arith.constant 2 : index
    %c0_83 = arith.constant 0 : index
    %c0_84 = arith.constant 0 : index
    %c0_85 = arith.constant 0 : index
    %87 = vector.load %arg7[%c2_82, %c0_83, %c0_84, %c0_85] : memref<3x3x16x4xbf16, #tpu.memory_space<vmem>>, vector<1x1x16x4xbf16>
    %88 = vector.shape_cast %87 : vector<1x1x16x4xbf16> to vector<16x4xbf16>
    %cst_86 = arith.constant dense<0.000000e+00> : vector<256x4xf32>
    %89 = tpu.matmul %1, %88, %cst_86 {dimension_numbers = #tpu.dot_dimension_numbers<[1], [0], [0], [1], [0, 0, 1, 1], [], []>} : vector<256x16xbf16>, vector<16x4xbf16>, vector<256x4xf32> -> vector<256x4xf32>
    %c2_87 = arith.constant 2 : index
    %c0_88 = arith.constant 0 : index
    %c0_89 = arith.constant 0 : index
    %c0_90 = arith.constant 0 : index
    %90 = vector.load %arg8[%c2_87, %c0_88, %c0_89, %c0_90] : memref<3x3x16x4xbf16, #tpu.memory_space<vmem>>, vector<1x1x16x4xbf16>
    %91 = vector.shape_cast %90 : vector<1x1x16x4xbf16> to vector<16x4xbf16>
    %cst_91 = arith.constant dense<0.000000e+00> : vector<256x4xf32>
    %92 = tpu.matmul %17, %91, %cst_91 {dimension_numbers = #tpu.dot_dimension_numbers<[1], [0], [0], [1], [0, 0, 1, 1], [], []>} : vector<256x16xbf16>, vector<16x4xbf16>, vector<256x4xf32> -> vector<256x4xf32>
    %93 = arith.addf %89, %92 : vector<256x4xf32>
    %c241_i32 = arith.constant 241 : i32
    %94 = tpu.dynamic_rotate %93 by %c241_i32 dim 0 : vector<256x4xf32>, i32 -> vector<256x4xf32>
    %c0_92 = arith.constant 0 : index
    %c6 = arith.constant 6 : index
    %95 = vector.load %arg10[%c0_92, %c6] : memref<256x9xf32, #tpu.memory_space<vmem>>, vector<256x1xf32>
    %96 = vector.broadcast %95 : vector<256x1xf32> to vector<256x4xf32>
    %97 = arith.mulf %94, %96 : vector<256x4xf32>
    %98 = arith.addf %86, %97 : vector<256x4xf32>
    %c2_93 = arith.constant 2 : index
    %c1_94 = arith.constant 1 : index
    %c0_95 = arith.constant 0 : index
    %c0_96 = arith.constant 0 : index
    %99 = vector.load %arg7[%c2_93, %c1_94, %c0_95, %c0_96] : memref<3x3x16x4xbf16, #tpu.memory_space<vmem>>, vector<1x1x16x4xbf16>
    %100 = vector.shape_cast %99 : vector<1x1x16x4xbf16> to vector<16x4xbf16>
    %cst_97 = arith.constant dense<0.000000e+00> : vector<256x4xf32>
    %101 = tpu.matmul %1, %100, %cst_97 {dimension_numbers = #tpu.dot_dimension_numbers<[1], [0], [0], [1], [0, 0, 1, 1], [], []>} : vector<256x16xbf16>, vector<16x4xbf16>, vector<256x4xf32> -> vector<256x4xf32>
    %c2_98 = arith.constant 2 : index
    %c1_99 = arith.constant 1 : index
    %c0_100 = arith.constant 0 : index
    %c0_101 = arith.constant 0 : index
    %102 = vector.load %arg8[%c2_98, %c1_99, %c0_100, %c0_101] : memref<3x3x16x4xbf16, #tpu.memory_space<vmem>>, vector<1x1x16x4xbf16>
    %103 = vector.shape_cast %102 : vector<1x1x16x4xbf16> to vector<16x4xbf16>
    %cst_102 = arith.constant dense<0.000000e+00> : vector<256x4xf32>
    %104 = tpu.matmul %17, %103, %cst_102 {dimension_numbers = #tpu.dot_dimension_numbers<[1], [0], [0], [1], [0, 0, 1, 1], [], []>} : vector<256x16xbf16>, vector<16x4xbf16>, vector<256x4xf32> -> vector<256x4xf32>
    %105 = arith.addf %101, %104 : vector<256x4xf32>
    %c240_i32 = arith.constant 240 : i32
    %106 = tpu.dynamic_rotate %105 by %c240_i32 dim 0 : vector<256x4xf32>, i32 -> vector<256x4xf32>
    %c0_103 = arith.constant 0 : index
    %c7 = arith.constant 7 : index
    %107 = vector.load %arg10[%c0_103, %c7] : memref<256x9xf32, #tpu.memory_space<vmem>>, vector<256x1xf32>
    %108 = vector.broadcast %107 : vector<256x1xf32> to vector<256x4xf32>
    %109 = arith.mulf %106, %108 : vector<256x4xf32>
    %110 = arith.addf %98, %109 : vector<256x4xf32>
    %c2_104 = arith.constant 2 : index
    %c2_105 = arith.constant 2 : index
    %c0_106 = arith.constant 0 : index
    %c0_107 = arith.constant 0 : index
    %111 = vector.load %arg7[%c2_104, %c2_105, %c0_106, %c0_107] : memref<3x3x16x4xbf16, #tpu.memory_space<vmem>>, vector<1x1x16x4xbf16>
    %112 = vector.shape_cast %111 : vector<1x1x16x4xbf16> to vector<16x4xbf16>
    %cst_108 = arith.constant dense<0.000000e+00> : vector<256x4xf32>
    %113 = tpu.matmul %1, %112, %cst_108 {dimension_numbers = #tpu.dot_dimension_numbers<[1], [0], [0], [1], [0, 0, 1, 1], [], []>} : vector<256x16xbf16>, vector<16x4xbf16>, vector<256x4xf32> -> vector<256x4xf32>
    %c2_109 = arith.constant 2 : index
    %c2_110 = arith.constant 2 : index
    %c0_111 = arith.constant 0 : index
    %c0_112 = arith.constant 0 : index
    %114 = vector.load %arg8[%c2_109, %c2_110, %c0_111, %c0_112] : memref<3x3x16x4xbf16, #tpu.memory_space<vmem>>, vector<1x1x16x4xbf16>
    %115 = vector.shape_cast %114 : vector<1x1x16x4xbf16> to vector<16x4xbf16>
    %cst_113 = arith.constant dense<0.000000e+00> : vector<256x4xf32>
    %116 = tpu.matmul %17, %115, %cst_113 {dimension_numbers = #tpu.dot_dimension_numbers<[1], [0], [0], [1], [0, 0, 1, 1], [], []>} : vector<256x16xbf16>, vector<16x4xbf16>, vector<256x4xf32> -> vector<256x4xf32>
    %117 = arith.addf %113, %116 : vector<256x4xf32>
    %c239_i32 = arith.constant 239 : i32
    %118 = tpu.dynamic_rotate %117 by %c239_i32 dim 0 : vector<256x4xf32>, i32 -> vector<256x4xf32>
    %c0_114 = arith.constant 0 : index
    %c8 = arith.constant 8 : index
    %119 = vector.load %arg10[%c0_114, %c8] : memref<256x9xf32, #tpu.memory_space<vmem>>, vector<256x1xf32>
    %120 = vector.broadcast %119 : vector<256x1xf32> to vector<256x4xf32>
    %121 = arith.mulf %118, %120 : vector<256x4xf32>
    %122 = arith.addf %110, %121 : vector<256x4xf32>
    %c0_115 = arith.constant 0 : index
    %c0_116 = arith.constant 0 : index
    %123 = vector.load %arg9[%c0_115, %c0_116] : memref<1x4xf32, #tpu.memory_space<vmem>>, vector<1x4xf32>
    %124 = vector.broadcast %123 : vector<1x4xf32> to vector<256x4xf32>
    %125 = arith.addf %122, %124 : vector<256x4xf32>
    %cst_117 = arith.constant 0.000000e+00 : f32
    %126 = vector.broadcast %cst_117 : f32 to vector<256x4xf32>
    %127 = arith.maximumf %125, %126 : vector<256x4xf32>
    %c0_118 = arith.constant 0 : index
    %c0_119 = arith.constant 0 : index
    %c0_120 = arith.constant 0 : index
    %128 = vector.load %arg11[%c0_118, %c0_119, %c0_120] : memref<1x256x4xf32, #tpu.memory_space<vmem>>, vector<1x256x4xf32>
    %129 = vector.shape_cast %128 : vector<1x256x4xf32> to vector<256x4xf32>
    %130 = vector.shape_cast %127 : vector<256x4xf32> to vector<1x256x4xf32>
    tpu.vector_store %arg11[%c0_118, %c0_119, %c0_120], %130 {strides = array<i32>} : memref<1x256x4xf32, #tpu.memory_space<vmem>>, vector<1x256x4xf32>,
    return
  }
  func.func @transform_0(%arg0: i32) -> (i32, i32, i32) {
    %c0_i32 = arith.constant 0 : i32
    %c0_i32_0 = arith.constant 0 : i32
    %c0_i32_1 = arith.constant 0 : i32
    return %arg0, %c0_i32, %c0_i32_0 : i32, i32, i32
  }
  func.func @transform_1(%arg0: i32) -> (i32, i32) {
    %c0_i32 = arith.constant 0 : i32
    %c0_i32_0 = arith.constant 0 : i32
    %c0_i32_1 = arith.constant 0 : i32
    return %c0_i32, %c0_i32_0 : i32, i32
  }
  func.func @transform_2(%arg0: i32) -> (i32, i32) {
    %c0_i32 = arith.constant 0 : i32
    %c0_i32_0 = arith.constant 0 : i32
    %c0_i32_1 = arith.constant 0 : i32
    return %c0_i32, %c0_i32_0 : i32, i32
  }
  func.func @transform_3(%arg0: i32) -> (i32, i32) {
    %c0_i32 = arith.constant 0 : i32
    %c0_i32_0 = arith.constant 0 : i32
    %c0_i32_1 = arith.constant 0 : i32
    return %c0_i32, %c0_i32_0 : i32, i32
  }
  func.func @transform_4(%arg0: i32) -> (i32, i32) {
    %c0_i32 = arith.constant 0 : i32
    %c0_i32_0 = arith.constant 0 : i32
    %c0_i32_1 = arith.constant 0 : i32
    return %c0_i32, %c0_i32_0 : i32, i32
  }
  func.func @transform_5(%arg0: i32) -> (i32, i32) {
    %c0_i32 = arith.constant 0 : i32
    %c0_i32_0 = arith.constant 0 : i32
    %c0_i32_1 = arith.constant 0 : i32
    return %c0_i32, %c0_i32_0 : i32, i32
  }
  func.func @transform_6(%arg0: i32) -> (i32, i32, i32, i32) {
    %c0_i32 = arith.constant 0 : i32
    %c0_i32_0 = arith.constant 0 : i32
    %c0_i32_1 = arith.constant 0 : i32
    %c0_i32_2 = arith.constant 0 : i32
    %c0_i32_3 = arith.constant 0 : i32
    return %c0_i32, %c0_i32_0, %c0_i32_1, %c0_i32_2 : i32, i32, i32, i32
  }
  func.func @transform_7(%arg0: i32) -> (i32, i32, i32, i32) {
    %c0_i32 = arith.constant 0 : i32
    %c0_i32_0 = arith.constant 0 : i32
    %c0_i32_1 = arith.constant 0 : i32
    %c0_i32_2 = arith.constant 0 : i32
    %c0_i32_3 = arith.constant 0 : i32
    return %c0_i32, %c0_i32_0, %c0_i32_1, %c0_i32_2 : i32, i32, i32, i32
  }
  func.func @transform_8(%arg0: i32) -> (i32, i32) {
    %c0_i32 = arith.constant 0 : i32
    %c0_i32_0 = arith.constant 0 : i32
    %c0_i32_1 = arith.constant 0 : i32
    return %c0_i32, %c0_i32_0 : i32, i32
  }
  func.func @transform_9(%arg0: i32) -> (i32, i32) {
    %c0_i32 = arith.constant 0 : i32
    %c0_i32_0 = arith.constant 0 : i32
    %c0_i32_1 = arith.constant 0 : i32
    return %c0_i32, %c0_i32_0 : i32, i32
  }
  func.func @transform_10(%arg0: i32) -> (i32, i32, i32) {
    %c0_i32 = arith.constant 0 : i32
    %c0_i32_0 = arith.constant 0 : i32
    %c0_i32_1 = arith.constant 0 : i32
    return %arg0, %c0_i32, %c0_i32_0 : i32, i32, i32
  }
}

</mosaic_0001>

<bundles_post_ra>
// kernel: tpu_custom_call.1
= control target key start
LH: loop header
LB: loop body
LE: loop exit
PB: predicated region body
PF: predicated region fallthrough
CT: control target
= control target key end

     0   :  { %s5889_s13 = smov 0   ;;  %s10142_s0 = inlined_call_operand.vmem [shape: bf16[2,256,16], index: 0, kind: input, shape index: {}]   ;;  %s10143_s1 = inlined_call_operand.vmem [shape: bf16[56,256], index: 1, kind: input, shape index: {}]   ;;  %s10144_s2 = inlined_call_operand.vmem [shape: bf16[16,16], index: 2, kind: input, shape index: {}]   ;;  %s10145_s3 = inlined_call_operand.vmem [shape: f32[1,16], index: 3, kind: input, shape index: {}]   ;;  %s10146_s4 = inlined_call_operand.vmem [shape: f32[56,16], index: 4, kind: input, shape index: {}]   ;;  %s10147_s5 = inlined_call_operand.vmem [shape: bf16[256,56], index: 5, kind: input, shape index: {}]   ;;  %s10148_s6 = inlined_call_operand.vmem [shape: bf16[3,3,16,4], index: 6, kind: input, shape index: {}]   ;;  %s10149_s7 = inlined_call_operand.vmem [shape: bf16[3,3,16,4], index: 7, kind: input, shape index: {}]   ;;  %s10150_s8 = inlined_call_operand.vmem [shape: f32[1,4], index: 8, kind: input, shape index: {}]   ;;  %s10151_s9 = inlined_call_operand.vmem [shape: f32[256,9], index: 9, kind: input, shape index: {}]   ;;  %s10152_s10 = inlined_call_operand.vmem [shape: f32[2,256,4], index: 10, kind: output, shape index: {}]  }
   0x1 LB: > { %s4975_s14 = sadd.s32 4294967295, %s5824_s13   ;;  %p4979_p0 = scmp.ge.s32.totalorder %s5824_s13, 1  ;;  %s5824_s13 = sphi %s5889_s13, %s20_s13  }
   0x2   : > { %p312_p1 = scmp.lt.s32.totalorder %s5824_s13, 3 }
   0x4   : > { %p313_p2 = pnand %p4979_p0, %p312_p1 }
   0x6   : > { %316 = sbr.rel (%p313_p2) target bundleno = 2003 (0x7d3), region = 60 }
   0xb   : > { %p350_p3 = scmp.lt.s32.totalorder %s4975_s14, 1  ;;  %v4986_v8 = vld [vmem:[%s10143_s1] sm:$0xf]  ;;  %v5573_v9 = vld [vmem:[%s10143_s1 + $0x4] sm:$0xf0]  ;;  %v399_v25 = vld [vmem:[%s10143_s1 + $0x30] sm:$0xff] }
   0xc   : > { %v4987_v10 = vor.u32 %v5573_v9, %v4986_v8  ;;  %v4994_v14 = vld [vmem:[%s10143_s1 + $0x10] sm:$0xf]  ;;  %v5575_v15 = vld [vmem:[%s10143_s1 + $0x14] sm:$0xf0]  ;;  %v5002_v21 = vld [vmem:[%s10143_s1 + $0x20] sm:$0xf]  ;;  %v419_v26 = vunpack.c.l.b16 %v399_v25  ;;  %v420_v37 = vunpack.c.h.b16 %v399_v25 }
   0xd   : > { %s10974_s14 = smov (!%p350_p3, %s4975_s14), 1  ;;  %v4995_v17 = vor.u32 %v5575_v15, %v4994_v14  ;;  %v5577_v22 = vld [vmem:[%s10143_s1 + $0x24] sm:$0xf0]  ;;  %v5572_v28 = vld [vmem:[%s10143_s1 + $0x4] sm:$0xf]  ;;  %vm605_vm0 = vcmask 130048  }
   0xe   : > { %s5554_s15 = sshll.u32 %s10974_s14, 7  ;;  %v5003_v24 = vor.u32 %v5577_v22, %v5002_v21  ;;  %v427_v27 = vpack.c.b16 %v419_v26, %v419_v26  ;;  %v4988_v29 = vld [vmem:[%s10143_s1 + $0x8] sm:$0xf0]  ;;  %v5574_v31 = vld [vmem:[%s10143_s1 + $0x14] sm:$0xf]  ;;  %v428_v38 = vpack.c.b16 %v420_v37, %v420_v37  ;;  %v5578_v43 = vld [vmem:[%s10144_s2] sm:$0xff] }
   0xf   : > { %s5903_s18 = scalar_lea.vmem %s10142_s0, %s5554_s15  ;;  %v4991_v30 = vor.u32 %v5572_v28, %v4988_v29  ;;  %v4996_v32 = vld [vmem:[%s10143_s1 + $0x18] sm:$0xf0]  ;;  %v5576_v34 = vld [vmem:[%s10143_s1 + $0x24] sm:$0xf]  ;;  %v5004_v35 = vld [vmem:[%s10143_s1 + $0x28] sm:$0xf0] }
  0x10   : > { %v5906_v0 = vld [vmem:[%s5903_s18 + $0x38] sm:$0xff]  ;;  %v5910_v1 = vld [vmem:[%s5903_s18 + $0x30] sm:$0xff]  ;;  %v5914_v2 = vld [vmem:[%s5903_s18 + $0x28] sm:$0xff]  ;;  %v4999_v33 = vor.u32 %v5574_v31, %v4996_v32  ;;  %v5007_v36 = vor.u32 %v5576_v34, %v5004_v35  ;;  %vm832_vm1 = vcmask 1043456   ;;  %vm783_vm2 = vcmask 457728   ;;  %s5555_s11 = sshll.u32 %s10974_s14, 8 }
  0x11   : > { %533 = vmatpush.bf16.msra.mxu1 %v5906_v0  ;;  %v5918_v3 = vld [vmem:[%s5903_s18 + $0x20] sm:$0xff]  ;;  %v5922_v4 = vld [vmem:[%s5903_s18 + $0x18] sm:$0xff]  ;;  %v5926_v5 = vld [vmem:[%s5903_s18 + $0x10] sm:$0xff]  ;;  %vm4887_vm5 = vcmask 31744   ;;  %s9860_s16 = scalar_lea.vmem %s10152_s10, %s5555_s11 }
  0x12   : > { %v5930_v6 = vld [vmem:[%s5903_s18 + $0x8] sm:$0xff]  ;;  %v5934_v7 = vld [vmem:[%s5903_s18] sm:$0xff]  ;;  %v5944_v11 = vld [vmem:[%s5903_s18 + $0x78] sm:$0xff] }
  0x13   : > { %v5948_v12 = vld [vmem:[%s5903_s18 + $0x70] sm:$0xff]  ;;  %v5952_v13 = vld [vmem:[%s5903_s18 + $0x68] sm:$0xff]  ;;  %v5962_v16 = vld [vmem:[%s5903_s18 + $0x60] sm:$0xff] }
  0x14   : > { %v5966_v18 = vld [vmem:[%s5903_s18 + $0x58] sm:$0xff]  ;;  %v5970_v19 = vld [vmem:[%s5903_s18 + $0x50] sm:$0xff]  ;;  %v5974_v20 = vld [vmem:[%s5903_s18 + $0x48] sm:$0xff] }
  0x15   : > { %534 = vmatpush.bf16.msra.mxu1 %v5910_v1  ;;  %v5984_v23 = vld [vmem:[%s5903_s18 + $0x40] sm:$0xff]  ;;  %v658_v34 = vld [vmem:[%s10146_s4 + $0x28] sm:$0xff] }
  0x16   : > { %v5657_v25 = vld [vmem:[%s10145_s3] ss:$0 sm:$0xff] }
  0x19   : > { %535 = vmatpush.bf16.msra.mxu1 %v5914_v2 }
  0x1d   : > { %536 = vmatpush.bf16.msra.mxu1 %v5918_v3 }
  0x21   : > { %537 = vmatpush.bf16.msra.mxu1 %v5922_v4 }
  0x25   : > { %538 = vmatpush.bf16.msra.mxu1 %v5926_v5 }
  0x29   : > { %539 = vmatpush.bf16.msra.mxu1 %v5930_v6 }
  0x2d   : > { %540 = vmatpush.bf16.msra.mxu1 %v5934_v7 }
  0x30   : > { %541 = vmatmul.bf16.vlgmr.msra.gmra.mxu1 %v4987_v10 }
  0x31   : > { %561 = vmatpush.bf16.msrb.mxu1 %v5944_v11 }
  0x35   : > { %562 = vmatpush.bf16.msrb.mxu1 %v5948_v12 }
  0x39   : > { %563 = vmatpush.bf16.msrb.mxu1 %v5952_v13 }
  0x3d   : > { %564 = vmatpush.bf16.msrb.mxu1 %v5962_v16 }
  0x40   : > { %546 = vmatmul.bf16.gmra.mxu1 %v4995_v17 }
  0x41   : > { %565 = vmatpush.bf16.msrb.mxu1 %v5966_v18 }
  0x45   : > { %566 = vmatpush.bf16.msrb.mxu1 %v5970_v19 }
  0x49   : > { %567 = vmatpush.bf16.msrb.mxu1 %v5974_v20 }
  0x4d   : > { %568 = vmatpush.bf16.msrb.mxu1 %v5984_v23 }
  0x50   : > { %551 = vmatmul.bf16.gmra.mxu1 %v5003_v24 }
  0x51   : > { %625 = vmatpush.bf16.msra.mxu1 %v5578_v43 }
  0x60   : > { %556 = vmatmul.bf16.gmra.mxu1 %v427_v27 }
  0x70   : > { %569 = vmatmul.bf16.vlgmr.msrb.gmra.mxu1 %v4991_v30  ;;  %v659_v30 = vld [vmem:[%s10146_s4 + $0x30] sm:$0xff] }
  0x80   : > { %574 = vmatmul.bf16.gmra.mxu1 %v4999_v33 }
  0x90   : > { %579 = vmatmul.bf16.gmra.mxu1 %v5007_v36 }
  0xa0   : > { %584 = vmatmul.bf16.gmra.mxu1 %v428_v38  ;;  %v657_v38 = vld [vmem:[%s10146_s4 + $0x20] sm:$0xff] }
  0xad   : > { %v542_v39 = vpop.f32.mrf.mxu1 }
  0xb5   : > { %v544_v40 = vpop.f32.mrf.mxu1 }
  0xbd   : > { %v547_v41 = vpop.f32.mrf.mxu1 }
  0xc5   : > { %v549_v42 = vpop.f32.mrf.mxu1 }
  0xcd   : > { %v552_v44 = vpop.f32.mrf.mxu1 }
  0xd5   : > { %v554_v45 = vpop.f32.mrf.mxu1 }
  0xdd   : > { %v557_v46 = vpop.f32.mrf.mxu1 }
  0xe5   : > { %v559_v47 = vpop.f32.mrf.mxu1 }
  0xed   : > { %v570_v48 = vpop.f32.mrf.mxu1 }
  0xee   : > { %v571_v50 = vadd.f32 %v570_v48, %v542_v39 }
  0xf5   : > { %v572_v49 = vpop.f32.mrf.mxu1 }
  0xf6   : > { %v573_v51 = vadd.f32 %v572_v49, %v544_v40  ;;  %v655_v49 = vld [vmem:[%s10146_s4 + $0x10] sm:$0xff] }
  0xf8   : > { %v589_v52 = vpack.c.bf16 %v573_v51, %v571_v50 }
  0xfa   : > { %5076 = vmatmul.msk.bf16.vlgmr.msra.gmra.mxu1 %vm605_vm0, %v589_v52 }
  0xfd   : > { %v575_v53 = vpop.f32.mrf.mxu1 }
  0xfe   : > { %v576_v55 = vadd.f32 %v575_v53, %v547_v41  ;;  %v654_v53 = vld [vmem:[%s10146_s4 + $0x8] sm:$0xff] }
 0x105   : > { %v577_v54 = vpop.f32.mrf.mxu1 }
 0x106   : > { %v578_v56 = vadd.f32 %v577_v54, %v549_v42 }
 0x108   : > { %v590_v57 = vpack.c.bf16 %v578_v56, %v576_v55  ;;  %v653_v56 = vld [vmem:[%s10146_s4] sm:$0xff] }
 0x10a   : > { %5077 = vmatmul.msk.bf16.gmra.mxu1 %vm605_vm0, %v590_v57 }
 0x10d   : > { %v580_v58 = vpop.f32.mrf.mxu1 }
 0x10e   : > { %v581_v60 = vadd.f32 %v580_v58, %v552_v44  ;;  %v656_v44 = vld [vmem:[%s10146_s4 + $0x18] sm:$0xff] }
 0x115   : > { %v582_v59 = vpop.f32.mrf.mxu1 }
 0x116   : > { %v583_v61 = vadd.f32 %v582_v59, %v554_v45 }
 0x118   : > { %v591_v62 = vpack.c.bf16 %v583_v61, %v581_v60  ;;  %v5579_v61 = vld [vmem:[%s10147_s5] sm:$0xff] }
 0x11a   : > { %5078 = vmatmul.msk.bf16.gmra.mxu1 %vm605_vm0, %v591_v62  ;;  %v5580_v62 = vld [vmem:[%s10147_s5 + $0x8] sm:$0xff] }
 0x11d   : > { %v585_v63 = vpop.f32.mrf.mxu1 }
 0x11e   : > { %v586_v8 = vadd.f32 %v585_v63, %v557_v46  ;;  %v5581_v63 = vld [vmem:[%s10147_s5 + $0x10] sm:$0xff] }
 0x120   : > { %v592_v10 = vpack.c.bf16 %v586_v8, %v586_v8  ;;  %v5582_v8 = vld [vmem:[%s10147_s5 + $0x18] sm:$0xff] }
 0x125   : > { %v587_v9 = vpop.f32.mrf.mxu1 }
 0x126   : > { %v5583_v9 = vld [vmem:[%s10147_s5 + $0x20] sm:$0xff] }
 0x12a   : > { %5079 = vmatmul.msk.bf16.gmra.mxu1 %vm605_vm0, %v592_v10  ;;  %v5584_v10 = vld [vmem:[%s10147_s5 + $0x28] sm:$0xff] }
 0x177   : > { %v627_v14 = vpop.f32.mrf.mxu1 }
 0x178   : > { %v628_v46 = vadd.f32 %v5657_v25, %v627_v14  ;;  %v5585_v14 = vld [vmem:[%s10147_s5 + $0x30] sm:$0xff] }
 0x17a   : > { %v646_v54 = vmax.f32 %v628_v46, 0.0 }
 0x17c   : > { %v660_v59 = vmul.f32 %v653_v56, %v646_v54  ;;  %v6200_v54 = vld [vmem:[%s10151_s9 + $0x80] sm:$0xff]  ;;  %v6206_v56 = vld [vmem:[%s10151_s9 + $0x48] sm:$0xff] }
 0x17d   : > { %10303 = vst [vmem:[#allocation7_spill] sm:$0xff] %v6200_v54 }
 0x17f   : > { %v629_v15 = vpop.f32.mrf.mxu1 }
 0x180   : > { %v630_v40 = vadd.f32 %v5657_v25, %v629_v15  ;;  %v5586_v15 = vld [vmem:[%s10147_s5 + $0x38] sm:$0xff] }
 0x182   : > { %v647_v50 = vmax.f32 %v630_v40, 0.0  ;;  %v6142_v40 = vld [vmem:[%s10151_s9 + $0x38] sm:$0xff] }
 0x184   : > { %v661_v57 = vmul.f32 %v654_v53, %v647_v50  ;;  %v5597_v50 = vld [vmem:[%s10148_s6 + $0x8] sm:$0xff] }
 0x185   : > { %v6193_v53 = vld [vmem:[%s10151_s9 + $0x28] sm:$0xff] }
 0x186   : > { %v699_v60 = vpack.c.bf16 %v661_v57, %v660_v59  ;;  %v6225_v59 = vld [vmem:[%s10151_s9 + $0x98] sm:$0xff] }
 0x187   : > { %v632_v17 = vpop.f32.mrf.mxu1  ;;  %10305 = vst [vmem:[#allocation9_spill] sm:$0xff] %v6225_v59 }
 0x188   : > { %v633_v36 = vadd.f32 %v5657_v25, %v632_v17  ;;  %v5595_v17 = vld [vmem:[%s10148_s6] sm:$0xff] }
 0x189   : > { %1149 = vmatpush.bf16.msra.mxu0 %v5595_v17  ;;  %v6272_v17 = vld [vmem:[%s10151_s9 + $0x78] sm:$0xff] }
 0x18a   : > { %v648_v47 = vmax.f32 %v633_v36, 0.0  ;;  %10311 = vst [vmem:[#allocation15_spill] sm:$0xff] %v6272_v17 }
 0x18c   : > { %v662_v55 = vmul.f32 %v655_v49, %v648_v47  ;;  %5184 = vmatmul.msk.bf16.vlgmr.msra.gmra.mxu0 %vm605_vm0, %v5934_v7  ;;  %v6167_v47 = vld [vmem:[%s10151_s9 + $0x20] sm:$0xff]  ;;  %v6181_v49 = vld [vmem:[%s10151_s9 + $0x68] sm:$0xff] }
 0x18d   : > { %10302 = vst [vmem:[#allocation6_spill] sm:$0xff] %v6181_v49 }
 0x18f   : > { %v634_v21 = vpop.f32.mrf.mxu1 }
 0x190   : > { %v635_v32 = vadd.f32 %v5657_v25, %v634_v21  ;;  %v5596_v21 = vld [vmem:[%s10149_s7] sm:$0xff] }
 0x191   : > { %1006 = vmatpush.bf16.msra.mxu2 %v5596_v21 }
 0x192   : > { %v649_v41 = vmax.f32 %v635_v32, 0.0 }
 0x194   : > { %v663_v51 = vmul.f32 %v656_v44, %v649_v41  ;;  %v6154_v44 = vld [vmem:[%s10151_s9 + $0x30] sm:$0xff] }
 0x196   : > { %v700_v58 = vpack.c.bf16 %v663_v51, %v662_v55 }
 0x197   : > { %v637_v22 = vpop.f32.mrf.mxu1 }
 0x198   : > { %v638_v29 = vadd.f32 %v5657_v25, %v637_v22  ;;  %v5598_v22 = vld [vmem:[%s10149_s7 + $0x8] sm:$0xff] }
 0x19a   : > { %v650_v37 = vmax.f32 %v638_v29, 0.0 }
 0x19c   : > { %v664_v48 = vmul.f32 %v657_v38, %v650_v37  ;;  %5185 = vmatmul.msk.bf16.gmra.mxu0 %vm605_vm0, %v5930_v6  ;;  %v6125_v37 = vld [vmem:[%s10151_s9 + $0x8] sm:$0xff] }
 0x19f   : > { %v639_v24 = vpop.f32.mrf.mxu1 }
 0x1a0   : > { %v640_v26 = vadd.f32 %v5657_v25, %v639_v24  ;;  %v5587_v24 = vld [vmem:[%s10147_s5 + $0x40] sm:$0xff] }
 0x1a2   : > { %v651_v33 = vmax.f32 %v640_v26, 0.0 }
 0x1a4   : > { %v665_v42 = vmul.f32 %v658_v34, %v651_v33  ;;  %v5589_v34 = vld [vmem:[%s10147_s5 + $0x50] sm:$0xff] }
 0x1a6   : > { %v701_v52 = vpack.c.bf16 %v665_v42, %v664_v48  ;;  %v5590_v42 = vld [vmem:[%s10147_s5 + $0x58] sm:$0xff] }
 0x1a7   : > { %v642_v27 = vpop.f32.mrf.mxu1 }
 0x1a8   : > { %v643_v28 = vadd.f32 %v5657_v25, %v642_v27  ;;  %v5588_v25 = vld [vmem:[%s10147_s5 + $0x48] sm:$0xff]  ;;  %v5826_v27 = vmov 0  }
 0x1a9   : > { %5634 = vset.pattern.permute.xlu1 %v5826_v27  ;;  %5633 = vset.pattern.permute.xlu0 %v5826_v27 }
 0x1aa   : > { %v652_v31 = vmax.f32 %v643_v28, 0.0  ;;  %v6094_v28 = vld [vmem:[%s10151_s9 + $0x10] sm:$0xff]  ;;  %5635 = vset.pattern.permute.xlu2 %v5826_v27 }
 0x1ab   : > { %1342 = vperm.xlu1 %5634, %v6094_v28   ;;  %1352 = vperm.xlu2 %5635, %v6167_v47  }
 0x1ac   : > { %v666_v35 = vmul.f32 %v659_v30, %v652_v31  ;;  %v6101_v31 = vld [vmem:[%s10151_s9 + $0x18] sm:$0xff]  ;;  %5186 = vmatmul.msk.bf16.gmra.mxu0 %vm605_vm0, %v5926_v5 }
 0x1ae   : > { %v702_v39 = vpack.c.bf16 %v666_v35, %v666_v35  ;;  %v6118_v35 = vld [vmem:[%s10151_s9] sm:$0xff] }
 0x1af   : > { %v644_v43 = vpop.f32.mrf.mxu1  ;;  %1332 = vperm.xlu0 %5633, %v6118_v35  }
 0x1b0   : > { %v834_v45 = vsel %vm832_vm1, %v702_v39, 0  ;;  %v5600_v39 = vld [vmem:[%s10149_s7 + $0x10] sm:$0xff] }
 0x1b1   : > { %840 = vmatpush.bf16.msrb.mxu1 %v834_v45  ;;  %5613 = vmatpush.bf16.msra.mxu3 %v834_v45  ;;  %v5599_v43 = vld [vmem:[%s10148_s6 + $0x10] sm:$0xff] }
 0x1b2   : > { %1961 = vmatpush.bf16.msrb.mxu2 %v5600_v39  ;;  %2056 = vmatpush.bf16.msrb.mxu0 %v5599_v43  ;;  %v6161_v45 = vld [vmem:[%s10151_s9 + $0x50] sm:$0xff]  ;;  %v5594_v39 = vld [vmem:[%s10147_s5 + $0x78] sm:$0xff]  ;;  %v5827_v43 = vmov 1  }
 0x1b3   : > { %1347 = vperm.xlu1 %5634, %v6101_v31   ;;  %10300 = vst [vmem:[#allocation4_spill] sm:$0xff] %v6161_v45  ;;  %1357 = vperm.xlu2 %5635, %v6193_v53  }
 0x1b5   : > { %841 = vmatpush.bf16.msrb.mxu1 %v701_v52  ;;  %5614 = vmatpush.bf16.msra.mxu3 %v701_v52  ;;  %v5591_v52 = vld [vmem:[%s10147_s5 + $0x60] sm:$0xff] }
 0x1b7   : > { %1337 = vperm.xlu0 %5633, %v6125_v37  }
 0x1b9   : > { %842 = vmatpush.bf16.msrb.mxu1 %v700_v58  ;;  %5615 = vmatpush.bf16.msra.mxu3 %v700_v58  ;;  %v6220_v58 = vld [vmem:[%s10151_s9 + $0x40] sm:$0xff] }
 0x1bb   : > { %1367 = vperm.xlu1 %5634, %v6142_v40   ;;  %1372 = vperm.xlu2 %5635, %v6220_v58  }
 0x1bc   : > { %5187 = vmatmul.msk.bf16.gmra.mxu0 %vm605_vm0, %v5922_v4 }
 0x1bd   : > { %843 = vmatpush.bf16.msrb.mxu1 %v699_v60  ;;  %5616 = vmatpush.bf16.msra.mxu3 %v699_v60 }
 0x1bf   : > { %1362 = vperm.xlu0 %5633, %v6154_v44  }
 0x1c0   : > { %5144 = vmatmul.msk.bf16.vlgmr.msrb.gmra.mxu1 %vm783_vm2, %v5579_v61  ;;  %5145 = vmatmul.msk.bf16.vlgmr.msra.gmra.mxu3 %vm783_vm2, %v5580_v62  ;;  %v5592_v61 = vld [vmem:[%s10147_s5 + $0x68] sm:$0xff]  ;;  %v6236_v62 = vld [vmem:[%s10151_s9 + $0x58] sm:$0xff] }
 0x1c1   : > { %1573 = vmatpush.bf16.msra.mxu1 %v5598_v22  ;;  %1668 = vmatpush.bf16.msrb.mxu3 %v5597_v50  ;;  %10306 = vst [vmem:[#allocation10_spill] sm:$0xff] %v6236_v62  ;;  %v5593_v22 = vld [vmem:[%s10147_s5 + $0x70] sm:$0xff] }
 0x1c3   : > { %1382 = vperm.xlu1 %5634, %v6161_v45   ;;  %1387 = vperm.xlu2 %5635, %v6236_v62  }
 0x1c7   : > { %1377 = vperm.xlu0 %5633, %v6206_v56  }
 0x1cb   : > { %1397 = vperm.xlu1 %5634, %v6181_v49  }
 0x1cc   : > { %5188 = vmatmul.msk.bf16.gmra.mxu0 %vm605_vm0, %v5918_v3 }
 0x1d0   : > { %5146 = vmatmul.msk.bf16.gmra.mxu3 %vm783_vm2, %v5581_v63  ;;  %v6241_v63 = vld [vmem:[%s10151_s9 + $0xb0] sm:$0xff] }
 0x1d1   : > { %10307 = vst [vmem:[#allocation11_spill] sm:$0xff] %v6241_v63 }
 0x1d3   : > { %1412 = vperm.xlu1 %5634, %v6200_v54  }
 0x1db   : > { %1427 = vperm.xlu1 %5634, %v6225_v59  }
 0x1dc   : > { %5189 = vmatmul.msk.bf16.gmra.mxu0 %vm605_vm0, %v5914_v2 }
 0x1e0   : > { %5147 = vmatmul.msk.bf16.gmra.mxu3 %vm783_vm2, %v5582_v8  ;;  %v6246_v8 = vld [vmem:[%s10151_s9 + $0x60] sm:$0xff] }
 0x1e1   : > { %1392 = vperm.xlu0 %5633, %v6246_v8  }
 0x1e3   : > { %1442 = vperm.xlu1 %5634, %v6241_v63  }
 0x1e9   : > { %1407 = vperm.xlu0 %5633, %v6272_v17  }
 0x1ec   : > { %5190 = vmatmul.msk.bf16.gmra.mxu0 %vm605_vm0, %v5910_v1 }
 0x1f0   : > { %5148 = vmatmul.msk.bf16.gmra.mxu3 %vm783_vm2, %v5583_v9 }
 0x1fc   : > { %5191 = vmatmul.msk.bf16.gmra.mxu0 %vm605_vm0, %v5906_v0 }
 0x200   : > { %5149 = vmatmul.msk.bf16.gmra.mxu3 %vm783_vm2, %v5584_v10 }
 0x209   : > { %v1151_v50 = vpop.f32.mrf.mxu0 }
 0x20c   : > { %5192 = vmatmul.msk.bf16.gmra.mxu0 %vm605_vm0, %v5984_v23 }
 0x210   : > { %5150 = vmatmul.msk.bf16.gmra.mxu3 %vm783_vm2, %v5585_v14  ;;  %v6262_v14 = vld [vmem:[%s10151_s9 + $0x70] sm:$0xff] }
 0x211   : > { %10309 = vst [vmem:[#allocation13_spill] sm:$0xff] %v6262_v14  ;;  %1402 = vperm.xlu2 %5635, %v6262_v14  }
 0x21c   : > { %5193 = vmatmul.msk.bf16.gmra.mxu0 %vm605_vm0, %v5974_v20 }
 0x220   : > { %5151 = vmatmul.msk.bf16.gmra.mxu3 %vm783_vm2, %v5586_v15  ;;  %v6267_v15 = vld [vmem:[%s10151_s9 + $0xc8] sm:$0xff] }
 0x221   : > { %10310 = vst [vmem:[#allocation14_spill] sm:$0xff] %v6267_v15  ;;  %1457 = vperm.xlu1 %5634, %v6267_v15  }
 0x22c   : > { %5194 = vmatmul.msk.bf16.gmra.mxu0 %vm605_vm0, %v5970_v19 }
 0x230   : > { %5152 = vmatmul.msk.bf16.gmra.mxu3 %vm783_vm2, %v5587_v24  ;;  %v6284_v24 = vld [vmem:[%s10151_s9 + $0x88] sm:$0xff] }
 0x231   : > { %10312 = vst [vmem:[#allocation16_spill] sm:$0xff] %v6284_v24  ;;  %1417 = vperm.xlu2 %5635, %v6284_v24  }
 0x23c   : > { %5195 = vmatmul.msk.bf16.gmra.mxu0 %vm605_vm0, %v5966_v18 }
 0x23d   : > { %v845_v26 = vpop.f32.mrf.mxu1 }
 0x240   : > { %5153 = vmatmul.msk.bf16.gmra.mxu3 %vm783_vm2, %v5588_v25  ;;  %v6289_v25 = vld [vmem:[%s10151_s9 + $0xe0] sm:$0xff] }
 0x241   : > { %10313 = vst [vmem:[#allocation17_spill] sm:$0xff] %v6289_v25  ;;  %1472 = vperm.xlu1 %5634, %v6289_v25  }
 0x243   : > { %v850_v29 = vpop.f32.mrf.mxu3 }
 0x245   : > { %v847_v30 = vpop.f32.mrf.mxu1 }
 0x246   : > { %v6103_v32 = vpack.c.bf16 %v847_v30, %v845_v26  ;;  %v6294_v26 = vld [vmem:[%s10151_s9 + $0x90] sm:$0xff]  ;;  %v6310_v30 = vld [vmem:[%s10151_s9 + $0xa0] sm:$0xff] }
 0x247   : > { %1422 = vperm.xlu0 %5633, %v6294_v26   ;;  %10315 = vst [vmem:[#allocation19_spill] sm:$0xff] %v6310_v30  ;;  %1432 = vperm.xlu2 %5635, %v6310_v30  }
 0x248   : > { %10298 = vst [vmem:[#allocation2_spill] sm:$0xff] %v6103_v32  ;;  %5164 = vmatmul.msk.bf16.vlgmr.msra.gmra.mxu2 %vm605_vm0, %v6103_v32  ;;  %5208 = vmatmul.msk.bf16.vlgmr.msra.gmra.mxu1 %vm605_vm0, %v6103_v32 }
 0x24b   : > { %v852_v33 = vpop.f32.mrf.mxu3 }
 0x24c   : > { %v6127_v38 = vpack.c.bf16 %v852_v33, %v850_v29  ;;  %v6315_v33 = vld [vmem:[%s10151_s9 + $0xf8] sm:$0xff] }
 0x24d   : > { %10316 = vst [vmem:[#allocation20_spill] sm:$0xff] %v6315_v33  ;;  %1487 = vperm.xlu1 %5634, %v6315_v33  }
 0x24e   : > { %10299 = vst [vmem:[#allocation3_spill] sm:$0xff] %v6127_v38 }
 0x250   : > { %5154 = vmatmul.msk.bf16.gmra.mxu3 %vm783_vm2, %v5589_v34  ;;  %v6320_v34 = vld [vmem:[%s10151_s9 + $0xa8] sm:$0xff] }
 0x251   : > { %10317 = vst [vmem:[#allocation21_spill] sm:$0xff] %v6320_v34  ;;  %1437 = vperm.xlu0 %5633, %v6320_v34  }
 0x253   : > { %v855_v36 = vpop.f32.mrf.mxu3 }
 0x255   : > { %5638 = vset.pattern.permute.xlu1 %v5827_v43 }
 0x256   : > { %1759 = vperm.xlu1 %5638, %v6094_v28  }
 0x258   : > { %5165 = vmatmul.msk.bf16.gmra.mxu2 %vm605_vm0, %v6127_v38  ;;  %5209 = vmatmul.msk.bf16.gmra.mxu1 %vm605_vm0, %v6127_v38 }
 0x25b   : > { %v857_v41 = vpop.f32.mrf.mxu3 }
 0x25c   : > { %v6169_v48 = vpack.c.bf16 %v857_v41, %v855_v36  ;;  %v6332_v41 = vld [vmem:[%s10151_s9 + $0xb8] sm:$0xff] }
 0x25d   : > { %10318 = vst [vmem:[#allocation22_spill] sm:$0xff] %v6332_v41  ;;  %1447 = vperm.xlu2 %5635, %v6332_v41  }
 0x25e   : > { %10301 = vst [vmem:[#allocation5_spill] sm:$0xff] %v6169_v48  ;;  %1767 = vperm.xlu1 %5638, %v6167_v47  }
 0x260   : > { %5155 = vmatmul.msk.bf16.gmra.mxu3 %vm783_vm2, %v5590_v42  ;;  %v6337_v42 = vld [vmem:[%s10151_s9 + $0xc0] sm:$0xff] }
 0x261   : > { %10319 = vst [vmem:[#allocation23_spill] sm:$0xff] %v6337_v42  ;;  %1452 = vperm.xlu0 %5633, %v6337_v42  }
 0x263   : > { %v860_v46 = vpop.f32.mrf.mxu3 }
 0x266   : > { %1779 = vperm.xlu1 %5638, %v6142_v40  }
 0x268   : > { %5166 = vmatmul.msk.bf16.gmra.mxu2 %vm605_vm0, %v6169_v48  ;;  %5210 = vmatmul.msk.bf16.gmra.mxu1 %vm605_vm0, %v6169_v48 }
 0x26b   : > { %v862_v51 = vpop.f32.mrf.mxu3 }
 0x26c   : > { %v6208_v57 = vpack.c.bf16 %v862_v51, %v860_v46 }
 0x26e   : > { %10304 = vst [vmem:[#allocation8_spill] sm:$0xff] %v6208_v57  ;;  %1791 = vperm.xlu1 %5638, %v6161_v45  }
 0x270   : > { %5156 = vmatmul.msk.bf16.gmra.mxu3 %vm783_vm2, %v5591_v52  ;;  %v6353_v52 = vld [vmem:[%s10151_s9 + $0xd0] sm:$0xff] }
 0x271   : > { %10321 = vst [vmem:[#allocation25_spill] sm:$0xff] %v6353_v52  ;;  %1462 = vperm.xlu2 %5635, %v6353_v52  }
 0x273   : > { %v865_v55 = vpop.f32.mrf.mxu3 }
 0x276   : > { %1803 = vperm.xlu1 %5638, %v6181_v49  }
 0x278   : > { %5167 = vmatmul.msk.bf16.gmra.mxu2 %vm605_vm0, %v6208_v57  ;;  %5211 = vmatmul.msk.bf16.gmra.mxu1 %vm605_vm0, %v6208_v57  ;;  %v6419_v57 = vpop.permute.xlu2 %1352 }
 0x27b   : > { %v867_v60 = vpop.f32.mrf.mxu3 }
 0x27c   : > { %v6251_v10 = vpack.c.bf16 %v867_v60, %v865_v55  ;;  %v6358_v55 = vld [vmem:[%s10151_s9 + $0xd8] sm:$0xff] }
 0x27d   : > { %10322 = vst [vmem:[#allocation26_spill] sm:$0xff] %v6358_v55  ;;  %1467 = vperm.xlu0 %5633, %v6358_v55  }
 0x27e   : > { %10308 = vst [vmem:[#allocation12_spill] sm:$0xff] %v6251_v10  ;;  %1815 = vperm.xlu1 %5638, %v6200_v54  }
 0x280   : > { %5157 = vmatmul.msk.bf16.gmra.mxu3 %vm783_vm2, %v5592_v61  ;;  %v1153_v61 = vpop.f32.mrf.mxu0  ;;  %5196 = vmatmul.msk.bf16.gmra.mxu0 %vm605_vm0, %v5962_v16 }
 0x283   : > { %v870_v9 = vpop.f32.mrf.mxu3 }
 0x286   : > { %1827 = vperm.xlu1 %5638, %v6225_v59  }
 0x288   : > { %5168 = vmatmul.msk.bf16.gmra.mxu2 %vm605_vm0, %v6251_v10  ;;  %5212 = vmatmul.msk.bf16.gmra.mxu1 %vm605_vm0, %v6251_v10  ;;  %v1263_v10 = vlaneseq }
 0x28b   : > { %v872_v21 = vpop.f32.mrf.mxu3 }
 0x28c   : > { %v6299_v29 = vpack.c.bf16 %v872_v21, %v870_v9  ;;  %v6368_v9 = vld [vmem:[%s10151_s9 + $0xe8] sm:$0xff]  ;;  %v6373_v21 = vld [vmem:[%s10151_s9 + $0xf0] sm:$0xff] }
 0x28d   : > { %10323 = vst [vmem:[#allocation27_spill] sm:$0xff] %v6368_v9  ;;  %1477 = vperm.xlu2 %5635, %v6368_v9   ;;  %1482 = vperm.xlu0 %5633, %v6373_v21  }
 0x28e   : > { %10314 = vst [vmem:[#allocation18_spill] sm:$0xff] %v6299_v29  ;;  %1839 = vperm.xlu1 %5638, %v6241_v63  }
 0x28f   : > { %10324 = vst [vmem:[#allocation28_spill] sm:$0xff] %v6373_v21 }
 0x290   : > { %5158 = vmatmul.msk.bf16.gmra.mxu3 %vm783_vm2, %v5593_v22 }
 0x293   : > { %v875_v27 = vpop.f32.mrf.mxu3 }
 0x295   : > { %5636 = vset.pattern.permute.xlu2 %v5827_v43  ;;  %5637 = vset.pattern.permute.xlu0 %v5827_v43 }
 0x296   : > { %1751 = vperm.xlu2 %5636, %v6118_v35   ;;  %1755 = vperm.xlu0 %5637, %v6125_v37  }
 0x297   : > { %1851 = vperm.xlu1 %5638, %v6267_v15  }
 0x298   : > { %5169 = vmatmul.msk.bf16.gmra.mxu2 %vm605_vm0, %v6299_v29  ;;  %5213 = vmatmul.msk.bf16.gmra.mxu1 %vm605_vm0, %v6299_v29 }
 0x29b   : > { %v877_v36 = vpop.f32.mrf.mxu3 }
 0x29c   : > { %v6342_v51 = vpack.c.bf16 %v877_v36, %v875_v27  ;;  %v1156_v27 = vpop.f32.mrf.mxu0 }
 0x29e   : > { %10320 = vst [vmem:[#allocation24_spill] sm:$0xff] %v6342_v51  ;;  %1763 = vperm.xlu2 %5636, %v6101_v31   ;;  %1775 = vperm.xlu0 %5637, %v6154_v44  }
 0x29f   : > { %1863 = vperm.xlu1 %5638, %v6289_v25  }
 0x2a0   : > { %5159 = vmatmul.msk.bf16.gmra.mxu3 %vm783_vm2, %v5594_v39 }
 0x2a3   : > { %v880_v46 = vpop.f32.mrf.mxu3 }
 0x2a6   : > { %1771 = vperm.xlu2 %5636, %v6193_v53   ;;  %1787 = vperm.xlu0 %5637, %v6206_v56  }
 0x2a7   : > { %1875 = vperm.xlu1 %5638, %v6315_v33  }
 0x2a8   : > { %5170 = vmatmul.msk.bf16.gmra.mxu2 %vm605_vm0, %v6342_v51  ;;  %5214 = vmatmul.msk.bf16.gmra.mxu1 %vm605_vm0, %v6342_v51  ;;  %v6388_v51 = vpop.f32.mrf.mxu0 }
 0x2a9   : > { %5197 = vmatmul.msk.bf16.gmra.mxu0 %vm605_vm0, %v5952_v13 }
 0x2ab   : > { %v882_v60 = vpop.f32.mrf.mxu3 }
 0x2ac   : > { %v6378_v36 = vpack.c.bf16 %v882_v60, %v880_v46 }
 0x2ae   : > { %10325 = vst [vmem:[#allocation29_spill] sm:$0xff] %v6378_v36  ;;  %1783 = vperm.xlu2 %5636, %v6220_v58   ;;  %1799 = vperm.xlu0 %5637, %v6246_v8  }
 0x2b0   : > { %5228 = vmatmul.msk.bf16.vlgmr.msrb.gmra.mxu3 %vm605_vm0, %v5934_v7  ;;  %v6395_v60 = vpop.f32.mrf.mxu0 }
 0x2b3   : > { %v885_v22 = vpop.f32.mrf.mxu3 }
 0x2b6   : > { %1795 = vperm.xlu2 %5636, %v6236_v62   ;;  %1811 = vperm.xlu0 %5637, %v6272_v17  }
 0x2b8   : > { %5171 = vmatmul.msk.bf16.gmra.mxu2 %vm605_vm0, %v6378_v36  ;;  %5215 = vmatmul.msk.bf16.gmra.mxu1 %vm605_vm0, %v6378_v36 }
 0x2bb   : > { %v887_v39 = vpop.f32.mrf.mxu3 }
 0x2bc   : > { %v6400_v36 = vpack.c.bf16 %v887_v39, %v885_v22  ;;  %v6413_v22 = vpop.permute.xlu1 %1342  ;;  %v6415_v39 = vpop.f32.mrf.mxu0  ;;  %5198 = vmatmul.msk.bf16.gmra.mxu0 %vm605_vm0, %v5948_v12 }
 0x2bd   : > { %10329 = vst [vmem:[#allocation33_spill] sm:$0xff] %v6413_v22 }
 0x2be   : > { %10327 = vst [vmem:[#allocation31_spill] sm:$0xff] %v6400_v36  ;;  %1807 = vperm.xlu2 %5636, %v6262_v14   ;;  %1823 = vperm.xlu0 %5637, %v6294_v26  }
 0x2c0   : > { %5229 = vmatmul.msk.bf16.gmra.mxu3 %vm605_vm0, %v5930_v6 }
 0x2c3   : > { %v890_v46 = vpop.f32.mrf.mxu3 }
 0x2c4   : > { %v6436_v45 = vpop.permute.xlu1 %1347 }
 0x2c5   : > { %v6398_v43 = vpop.f32.mrf.mxu1 }
 0x2c6   : > { %10326 = vst [vmem:[#allocation30_spill] sm:$0xff] %v6398_v43  ;;  %1819 = vperm.xlu2 %5636, %v6284_v24   ;;  %1835 = vperm.xlu0 %5637, %v6320_v34  }
 0x2c8   : > { %5172 = vmatmul.msk.bf16.gmra.mxu2 %vm605_vm0, %v6400_v36  ;;  %5216 = vmatmul.msk.bf16.gmra.mxu1 %vm605_vm0, %v6400_v36  ;;  %v6423_v36 = vshrl.u32 %v1263_v10, 7 }
 0x2ca   : > { %vm1265_vm3 = vcmp.lt.s32.totalorder %v6423_v36, 1  ;;  %vm2170_vm4 = vcmp.lt.s32.totalorder %v6423_v36, 7 }
 0x2cb   : > { %v892_v6 = vpop.f32.mrf.mxu3  ;;  %v1008_v29 = vpop.f32.mrf.mxu2 }
 0x2cc   : > { %v6411_v43 = vadd.f32 %v1151_v50, %v1008_v29  ;;  %v6428_v50 = vpop.f32.mrf.mxu0  ;;  %v6433_v49 = vpack.c.bf16 %v892_v6, %v890_v46  ;;  %v6459_v59 = vpop.permute.xlu1 %1367 }
 0x2cd   : > { %v6417_v19 = vpop.f32.mrf.mxu1 }
 0x2ce   : > { %10328 = vst [vmem:[#allocation32_spill] sm:$0xff] %v6411_v43  ;;  %1831 = vperm.xlu2 %5636, %v6310_v30   ;;  %1847 = vperm.xlu0 %5637, %v6337_v42  }
 0x2cf   : > { %10330 = vst [vmem:[#allocation34_spill] sm:$0xff] %v6433_v49 }
 0x2d0   : > { %5230 = vmatmul.msk.bf16.gmra.mxu3 %vm605_vm0, %v5926_v5  ;;  %v10174_v5 = vrot.slane %v6411_v43, 7 }
 0x2d3   : > { %v895_v48 = vpop.f32.mrf.mxu3  ;;  %v1010_v54 = vpop.f32.mrf.mxu2 }
 0x2d4   : > { %v1154_v29 = vadd.f32 %v1153_v61, %v1010_v54  ;;  %v6450_v61 = vpop.permute.xlu2 %1357 }
 0x2d5   : > { %v6430_v22 = vpop.f32.mrf.mxu1 }
 0x2d6   : > { %v1232_v10 = vrot.slane %v1154_v29, 7  ;;  %v6455_v29 = vpop.f32.mrf.mxu0  ;;  %1843 = vperm.xlu2 %5636, %v6332_v41   ;;  %1859 = vperm.xlu0 %5637, %v6358_v55  }
 0x2d7   : > { %5199 = vmatmul.msk.bf16.gmra.mxu0 %vm605_vm0, %v5944_v11 }
 0x2d8   : > { %5173 = vmatmul.msk.bf16.gmra.mxu2 %vm605_vm0, %v6433_v49  ;;  %5217 = vmatmul.msk.bf16.gmra.mxu1 %vm605_vm0, %v6433_v49  ;;  %v6448_v54 = vsel %vm1265_vm3, %v10174_v5, %v1232_v10  ;;  %v6461_v5 = vpop.permute.xlu0 %1332 }
 0x2d9   : > { %10331 = vst [vmem:[#allocation35_spill] sm:$0xff] %v6461_v5 }
 0x2db   : > { %v897_v46 = vpop.f32.mrf.mxu3  ;;  %v1013_v6 = vpop.f32.mrf.mxu2 }
 0x2dc   : > { %v1157_v18 = vadd.f32 %v1156_v27, %v1013_v6  ;;  %v6469_v17 = vpop.permute.xlu2 %1372 }
 0x2dd   : > { %v6457_v49 = vpop.f32.mrf.mxu1 }
 0x2de   : > { %v1233_v43 = vrot.slane %v1157_v18, 7  ;;  %v6475_v5 = vpop.f32.mrf.mxu0  ;;  %1855 = vperm.xlu2 %5636, %v6353_v52   ;;  %1871 = vperm.xlu0 %5637, %v6373_v21  }
 0x2e0   : > { %5231 = vmatmul.msk.bf16.gmra.mxu3 %vm605_vm0, %v5922_v4  ;;  %v6467_v62 = vsel %vm1265_vm3, %v1232_v10, %v1233_v43  ;;  %v6479_v4 = vpack.c.bf16 %v897_v46, %v895_v48 }
 0x2e2   : > { %10332 = vst [vmem:[#allocation36_spill] sm:$0xff] %v6479_v4 }
 0x2e3   : > { %v900_v27 = vpop.f32.mrf.mxu3  ;;  %v1015_v6 = vpop.f32.mrf.mxu2 }
 0x2e4   : > { %v1159_v18 = vadd.f32 %v6388_v51, %v1015_v6  ;;  %v6491_v51 = vpop.permute.xlu1 %1382  ;;  %v6493_v6 = vpop.permute.xlu0 %1337 }
 0x2e5   : > { %v6477_v63 = vpop.f32.mrf.mxu1  ;;  %10333 = vst [vmem:[#allocation37_spill] sm:$0xff] %v6493_v6  ;;  %v6495_v48 = vpop.permute.xlu2 %1387 }
 0x2e6   : > { %v1234_v10 = vrot.slane %v1159_v18, 7  ;;  %10334 = vst [vmem:[#allocation38_spill] sm:$0xff] %v6495_v48  ;;  %1867 = vperm.xlu2 %5636, %v6368_v9  }
 0x2e8   : > { %5174 = vmatmul.msk.bf16.gmra.mxu2 %vm605_vm0, %v6479_v4  ;;  %5218 = vmatmul.msk.bf16.gmra.mxu1 %vm605_vm0, %v6479_v4  ;;  %v6489_v15 = vsel %vm1265_vm3, %v1233_v43, %v1234_v10  ;;  %v6501_v4 = vpop.f32.mrf.mxu0 }
 0x2e9   : > { %5272 = vmatmul.msk.bf16.vlgmr.msrb.gmra.mxu0 %vm605_vm0, %v5934_v7 }
 0x2eb   : > { %v902_v46 = vpop.f32.mrf.mxu3  ;;  %v1018_v16 = vpop.f32.mrf.mxu2 }
 0x2ec   : > { %v1162_v18 = vadd.f32 %v6395_v60, %v1018_v16  ;;  %v6511_v48 = vpop.permute.xlu1 %1397  ;;  %v6513_v24 = vpop.permute.xlu0 %1362  ;;  %v6525_v34 = vpack.c.bf16 %v902_v46, %v900_v27 }
 0x2ed   : > { %v6503_v43 = vpop.f32.mrf.mxu1  ;;  %10335 = vst [vmem:[#allocation39_spill] sm:$0xff] %v6511_v48 }
 0x2ee   : > { %v1235_v14 = vrot.slane %v1162_v18, 7  ;;  %v6519_v18 = vpop.permute.xlu2 %1402  ;;  %10337 = vst [vmem:[#allocation41_spill] sm:$0xff] %v6525_v34 }
 0x2ef   : > { %10336 = vst [vmem:[#allocation40_spill] sm:$0xff] %v6519_v18 }
 0x2f0   : > { %5232 = vmatmul.msk.bf16.gmra.mxu3 %vm605_vm0, %v5918_v3  ;;  %v6509_v6 = vsel %vm1265_vm3, %v1234_v10, %v1235_v14  ;;  %v6521_v3 = vpop.f32.mrf.mxu0 }
 0x2f3   : > { %v905_v25 = vpop.f32.mrf.mxu3  ;;  %v1020_v60 = vpop.f32.mrf.mxu2 }
 0x2f4   : > { %v1164_v16 = vadd.f32 %v6415_v39, %v1020_v60  ;;  %v6537_v60 = vpop.permute.xlu0 %1377 }
 0x2f5   : > { %v6523_v10 = vpop.f32.mrf.mxu1 }
 0x2f6   : > { %v1236_v48 = vrot.slane %v1164_v16, 7  ;;  %v6542_v16 = vpop.permute.xlu1 %1412  ;;  %v6546_v30 = vpop.permute.xlu2 %1417 }
 0x2f7   : > { %10338 = vst [vmem:[#allocation42_spill] sm:$0xff] %v6542_v16 }
 0x2f8   : > { %5175 = vmatmul.msk.bf16.gmra.mxu2 %vm605_vm0, %v6525_v34  ;;  %5219 = vmatmul.msk.bf16.gmra.mxu1 %vm605_vm0, %v6525_v34  ;;  %v6535_v39 = vsel %vm1265_vm3, %v1235_v14, %v1236_v48  ;;  %v1178_v33 = vpop.f32.mrf.mxu0  ;;  %10339 = vst [vmem:[#allocation43_spill] sm:$0xff] %v6546_v30 }
 0x2fb   : > { %v907_v27 = vpop.f32.mrf.mxu3  ;;  %v1023_v46 = vpop.f32.mrf.mxu2 }
 0x2fc   : > { %v1167_v13 = vadd.f32 %v6428_v50, %v1023_v46  ;;  %v6554_v41 = vpop.permute.xlu0 %1392  ;;  %v6563_v55 = vpack.c.bf16 %v907_v27, %v905_v25 }
 0x2fd   : > { %v6544_v18 = vpop.f32.mrf.mxu1  ;;  %10340 = vst [vmem:[#allocation44_spill] sm:$0xff] %v6554_v41 }
 0x2fe   : > { %v1237_v34 = vrot.slane %v1167_v13, 7  ;;  %10341 = vst [vmem:[#allocation45_spill] sm:$0xff] %v6563_v55  ;;  %v6565_v42 = vpop.permute.xlu1 %1427 }
 0x2ff   : > { %10342 = vst [vmem:[#allocation46_spill] sm:$0xff] %v6565_v42 }
 0x300   : > { %v6550_v14 = vsel %vm1265_vm3, %v1236_v48, %v1237_v34  ;;  %5233 = vmatmul.msk.bf16.gmra.mxu3 %vm605_vm0, %v5914_v2  ;;  %v6559_v13 = vpop.f32.mrf.mxu0 }
 0x303   : > { %v910_v50 = vpop.f32.mrf.mxu3  ;;  %v1025_v46 = vpop.f32.mrf.mxu2 }
 0x304   : > { %v1169_v16 = vadd.f32 %v6455_v29, %v1025_v46  ;;  %v6577_v29 = vpop.permute.xlu2 %1432  ;;  %v6581_v46 = vpop.permute.xlu0 %1407 }
 0x305   : > { %v6561_v30 = vpop.f32.mrf.mxu1  ;;  %10343 = vst [vmem:[#allocation47_spill] sm:$0xff] %v6577_v29 }
 0x306   : > { %v1238_v48 = vrot.slane %v1169_v16, 7  ;;  %10344 = vst [vmem:[#allocation48_spill] sm:$0xff] %v6581_v46 }
 0x308   : > { %5176 = vmatmul.msk.bf16.gmra.mxu2 %vm605_vm0, %v6563_v55  ;;  %5220 = vmatmul.msk.bf16.gmra.mxu1 %vm605_vm0, %v6563_v55  ;;  %v6575_v2 = vsel %vm1265_vm3, %v1237_v34, %v1238_v48  ;;  %v1183_v12 = vpop.f32.mrf.mxu0  ;;  %v6591_v34 = vpop.permute.xlu1 %1442 }
 0x309   : > { %10345 = vst [vmem:[#allocation49_spill] sm:$0xff] %v6591_v34 }
 0x30b   : > { %v912_v25 = vpop.f32.mrf.mxu3  ;;  %v1028_v27 = vpop.f32.mrf.mxu2 }
 0x30c   : > { %v1172_v16 = vadd.f32 %v6475_v5, %v1028_v27  ;;  %v6593_v29 = vpop.permute.xlu2 %1447 }
 0x30d   : > { %v6583_v42 = vpop.f32.mrf.mxu1  ;;  %10346 = vst [vmem:[#allocation50_spill] sm:$0xff] %v6593_v29 }
 0x30e   : > { %v1239_v52 = vrot.slane %v1172_v16, 7  ;;  %v6600_v16 = vpack.c.bf16 %v912_v25, %v910_v50 }
 0x310   : > { %v6587_v55 = vsel %vm1265_vm3, %v1238_v48, %v1239_v52  ;;  %5234 = vmatmul.msk.bf16.gmra.mxu3 %vm605_vm0, %v5910_v1  ;;  %v6596_v27 = vpop.f32.mrf.mxu0  ;;  %10347 = vst [vmem:[#allocation51_spill] sm:$0xff] %v6600_v16  ;;  %v6602_v48 = vpop.permute.xlu0 %1422 }
 0x311   : > { %10348 = vst [vmem:[#allocation52_spill] sm:$0xff] %v6602_v48 }
 0x313   : > { %v915_v9 = vpop.f32.mrf.mxu3  ;;  %v1030_v21 = vpop.f32.mrf.mxu2 }
 0x314   : > { %v1174_v5 = vadd.f32 %v6501_v4, %v1030_v21  ;;  %v6614_v21 = vpop.permute.xlu1 %1457 }
 0x315   : > { %v6598_v46 = vpop.f32.mrf.mxu1  ;;  %10349 = vst [vmem:[#allocation53_spill] sm:$0xff] %v6614_v21 }
 0x316   : > { %v1240_v41 = vrot.slane %v1174_v5, 7  ;;  %v6617_v5 = vpop.permute.xlu2 %1462 }
 0x317   : > { %10350 = vst [vmem:[#allocation54_spill] sm:$0xff] %v6617_v5 }
 0x318   : > { %5177 = vmatmul.msk.bf16.gmra.mxu2 %vm605_vm0, %v6600_v16  ;;  %5221 = vmatmul.msk.bf16.gmra.mxu1 %vm605_vm0, %v6600_v16  ;;  %v6612_v1 = vsel %vm1265_vm3, %v1239_v52, %v1240_v41  ;;  %v6619_v29 = vpop.f32.mrf.mxu0  ;;  %v6629_v52 = vpop.permute.xlu0 %1437 }
 0x319   : > { %10353 = vst [vmem:[#allocation57_spill] sm:$0xff] %v6629_v52 }
 0x31b   : > { %v917_v4 = vpop.f32.mrf.mxu3  ;;  %v1033_v50 = vpop.f32.mrf.mxu2 }
 0x31c   : > { %v1177_v25 = vadd.f32 %v6521_v3, %v1033_v50  ;;  %v5602_v3 = vld [vmem:[%s10149_s7 + $0x18] sm:$0xff] }
 0x31d   : > { %v6621_v11 = vpop.f32.mrf.mxu1  ;;  %2414 = vmatpush.bf16.msrb.mxu1 %v5602_v3 }
 0x31e   : > { %10351 = vst [vmem:[#allocation55_spill] sm:$0xff] %v6621_v11  ;;  %v1241_v34 = vrot.slane %v1177_v25, 7  ;;  %v6638_v25 = vpack.c.bf16 %v917_v4, %v915_v9 }
 0x320   : > { %v6625_v16 = vsel %vm1265_vm3, %v1240_v41, %v1241_v34  ;;  %5235 = vmatmul.msk.bf16.gmra.mxu3 %vm605_vm0, %v5906_v0  ;;  %v6634_v5 = vpop.f32.mrf.mxu0  ;;  %10355 = vst [vmem:[#allocation59_spill] sm:$0xff] %v6638_v25  ;;  %v6642_v0 = vpop.permute.xlu2 %1477 }
 0x321   : > { %10352 = vst [vmem:[#allocation56_spill] sm:$0xff] %v6625_v16  ;;  %v6640_v16 = vpop.permute.xlu1 %1472  ;;  %v6654_v9 = vpop.permute.xlu0 %1452 }
 0x322   : > { %10356 = vst [vmem:[#allocation60_spill] sm:$0xff] %v6640_v16 }
 0x323   : > { %v920_v21 = vpop.f32.mrf.mxu3  ;;  %v1035_v48 = vpop.f32.mrf.mxu2  ;;  %10357 = vst [vmem:[#allocation61_spill] sm:$0xff] %v6642_v0 }
 0x324   : > { %v1179_v50 = vadd.f32 %v1178_v33, %v1035_v48  ;;  %10358 = vst [vmem:[#allocation62_spill] sm:$0xff] %v6654_v9 }
 0x325   : > { %v6636_v11 = vpop.f32.mrf.mxu1 }
 0x326   : > { %10354 = vst [vmem:[#allocation58_spill] sm:$0xff] %v6636_v11  ;;  %v1242_v41 = vrot.slane %v1179_v50, 7 }
 0x328   : > { %5178 = vmatmul.msk.bf16.gmra.mxu2 %vm605_vm0, %v6638_v25  ;;  %5222 = vmatmul.msk.bf16.gmra.mxu1 %vm605_vm0, %v6638_v25  ;;  %v6652_v33 = vsel %vm1265_vm3, %v1241_v34, %v1242_v41  ;;  %v6657_v50 = vpop.f32.mrf.mxu0  ;;  %v6669_v34 = vpop.permute.xlu2 %1751 }
 0x329   : > { %v6665_v25 = vpop.permute.xlu1 %1487  ;;  %10362 = vst [vmem:[#allocation66_spill] sm:$0xff] %v6669_v34 }
 0x32a   : > { %10361 = vst [vmem:[#allocation65_spill] sm:$0xff] %v6665_v25 }
 0x32b   : > { %v922_v48 = vpop.f32.mrf.mxu3  ;;  %v1038_v4 = vpop.f32.mrf.mxu2 }
 0x32c   : > { %v1182_v3 = vadd.f32 %v6559_v13, %v1038_v4  ;;  %v6673_v4 = vpop.permute.xlu0 %1467 }
 0x32d   : > { %v6659_v7 = vpop.f32.mrf.mxu1  ;;  %10364 = vst [vmem:[#allocation68_spill] sm:$0xff] %v6673_v4 }
 0x32e   : > { %10359 = vst [vmem:[#allocation63_spill] sm:$0xff] %v6659_v7  ;;  %v1243_v0 = vrot.slane %v1182_v3, 7  ;;  %v6679_v7 = vpack.c.bf16 %v922_v48, %v920_v21 }
 0x330   : > { %v6663_v16 = vsel %vm1265_vm3, %v1242_v41, %v1243_v0  ;;  %5236 = vmatmul.msk.bf16.gmra.mxu3 %vm605_vm0, %v5984_v23  ;;  %v6675_v11 = vpop.f32.mrf.mxu0  ;;  %10366 = vst [vmem:[#allocation70_spill] sm:$0xff] %v6679_v7  ;;  %v1764_v21 = vpop.permute.xlu2 %1763 }
 0x331   : > { %10360 = vst [vmem:[#allocation64_spill] sm:$0xff] %v6663_v16  ;;  %v6682_v16 = vld [vmem:[%s5903_s18 + $0x8] sm:$0xff] }
 0x332   : > { %10367 = vst [vmem:[#allocation71_spill] sm:$0xff] %v6682_v16  ;;  %5273 = vmatmul.msk.bf16.gmra.mxu0 %vm605_vm0, %v6682_v16 }
 0x333   : > { %v1040_v9 = vpop.f32.mrf.mxu2  ;;  %v6671_v52 = vpop.f32.mrf.mxu3 }
 0x334   : > { %10363 = vst [vmem:[#allocation67_spill] sm:$0xff] %v6671_v52  ;;  %v1184_v13 = vadd.f32 %v1183_v12, %v1040_v9  ;;  %v6694_v12 = vpop.permute.xlu1 %1759 }
 0x335   : > { %v6677_v3 = vpop.f32.mrf.mxu1  ;;  %10368 = vst [vmem:[#allocation72_spill] sm:$0xff] %v6694_v12 }
 0x336   : > { %10365 = vst [vmem:[#allocation69_spill] sm:$0xff] %v6677_v3  ;;  %v1244_v41 = vrot.slane %v1184_v13, 7 }
 0x338   : > { %5179 = vmatmul.msk.bf16.gmra.mxu2 %vm605_vm0, %v6679_v7  ;;  %5223 = vmatmul.msk.bf16.gmra.mxu1 %vm605_vm0, %v6679_v7  ;;  %v6692_v23 = vsel %vm1265_vm3, %v1243_v0, %v1244_v41  ;;  %v6698_v25 = vpop.f32.mrf.mxu0  ;;  %v1493_v7 = vmul.f32 %v6436_v45, %v6448_v54  ;;  %v6704_v0 = vpop.permute.xlu0 %1482 }
 0x339   : > { %10369 = vst [vmem:[#allocation73_spill] sm:$0xff] %v6704_v0 }
 0x33b   : > { %v1043_v9 = vpop.f32.mrf.mxu2  ;;  %v1672_v48 = vpop.f32.mrf.mxu3 }
 0x33c   : > { %v1187_v13 = vadd.f32 %v6596_v27, %v1043_v9  ;;  %v1673_v34 = vadd.f32 %v1672_v48, %v6417_v19  ;;  %v1768_v19 = vpop.permute.xlu1 %1767 }
 0x33d   : > { %v6700_v4 = vpop.f32.mrf.mxu1 }
 0x33e   : > { %v1245_v52 = vrot.slane %v1187_v13, 7  ;;  %v1881_v16 = vmul.f32 %v1764_v21, %v1673_v34  ;;  %v5828_v21 = vmov 2  }
 0x33f   : > { %5641 = vset.pattern.permute.xlu1 %v5828_v21  ;;  %5640 = vset.pattern.permute.xlu0 %v5828_v21 }
 0x340   : > { %v6708_v12 = vsel %vm1265_vm3, %v1244_v41, %v1245_v52  ;;  %v6710_v3 = vadd.f32 %v1881_v16, %v1493_v7  ;;  %5237 = vmatmul.msk.bf16.gmra.mxu3 %vm605_vm0, %v5974_v20  ;;  %v6716_v54 = vpop.f32.mrf.mxu0  ;;  %v1494_v16 = vmul.f32 %v6419_v57, %v6467_v62  ;;  %2212 = vperm.xlu1 %5641, %v6094_v28   ;;  %v6724_v20 = vld [vmem:[%s5903_s18 + $0x10] sm:$0xff]  ;;  %v6735_v57 = vpop.permute.xlu0 %1755 }
 0x341   : > { %5639 = vset.pattern.permute.xlu2 %v5828_v21  ;;  %2208 = vperm.xlu0 %5640, %v6125_v37   ;;  %10370 = vst [vmem:[#allocation74_spill] sm:$0xff] %v6735_v57  ;;  %v1772_v62 = vpop.permute.xlu2 %1771  ;;  %v10400_v57 = vld [vmem:[#allocation28_spill] sm:$0xff] }
 0x342   : > { %5274 = vmatmul.msk.bf16.gmra.mxu0 %vm605_vm0, %v6724_v20  ;;  %2204 = vperm.xlu2 %5639, %v6118_v35  }
 0x343   : > { %v1045_v27 = vpop.f32.mrf.mxu2  ;;  %v1675_v9 = vpop.f32.mrf.mxu3 }
 0x344   : > { %v1189_v48 = vadd.f32 %v6619_v29, %v1045_v27  ;;  %v1676_v45 = vadd.f32 %v1675_v9, %v6430_v22 }
 0x345   : > { %v6718_v34 = vpop.f32.mrf.mxu1 }
 0x346   : > { %v1246_v7 = vrot.slane %v1189_v48, 7  ;;  %v1882_v41 = vmul.f32 %v1768_v19, %v1676_v45  ;;  %v1495_v48 = vmul.f32 %v6450_v61, %v6489_v15 }
 0x348   : > { %v6729_v22 = vadd.f32 %v1882_v41, %v1494_v16  ;;  %5252 = vmatmul.msk.bf16.vlgmr.msrb.gmra.mxu2 %vm605_vm0, %v6103_v32  ;;  %5296 = vmatmul.msk.bf16.vlgmr.msrb.gmra.mxu1 %vm605_vm0, %v6103_v32  ;;  %v6739_v28 = vsel %vm1265_vm3, %v1245_v52, %v1246_v7  ;;  %v6744_v27 = vpop.f32.mrf.mxu0  ;;  %v1776_v15 = vpop.permute.xlu0 %1775  ;;  %v1496_v41 = vmul.f32 %v6513_v24, %v6509_v6  ;;  %v5604_v24 = vld [vmem:[%s10149_s7 + $0x20] sm:$0xff] }
 0x349   : > { %2220 = vperm.xlu1 %5641, %v6167_v47   ;;  %2228 = vperm.xlu0 %5640, %v6154_v44  }
 0x34a   : > { %2216 = vperm.xlu2 %5639, %v6101_v31   ;;  %2866 = vmatpush.bf16.msra.mxu2 %v5604_v24 }
 0x34b   : > { %v1048_v29 = vpop.f32.mrf.mxu2  ;;  %v1677_v37 = vpop.f32.mrf.mxu3 }
 0x34c   : > { %v1192_v13 = vadd.f32 %v6634_v5, %v1048_v29  ;;  %v1678_v19 = vadd.f32 %v1677_v37, %v6457_v49  ;;  %v6759_v49 = vld [vmem:[%s5903_s18 + $0x50] sm:$0xff]  ;;  %v6773_v37 = vld [vmem:[%s5903_s18 + $0x18] sm:$0xff] }
 0x34d   : > { %v6746_v9 = vpop.f32.mrf.mxu1 }
 0x34e   : > { %v1247_v45 = vrot.slane %v1192_v13, 7  ;;  %v1883_v52 = vmul.f32 %v1772_v62, %v1678_v19 }
 0x350   : > { %v6754_v35 = vsel %vm1265_vm3, %v1246_v7, %v1247_v45  ;;  %v6756_v5 = vadd.f32 %v1883_v52, %v1495_v48  ;;  %5238 = vmatmul.msk.bf16.gmra.mxu3 %vm605_vm0, %v6759_v49  ;;  %v6766_v16 = vpop.f32.mrf.mxu0 }
 0x351   : > { %2232 = vperm.xlu1 %5641, %v6142_v40   ;;  %2240 = vperm.xlu0 %5640, %v6206_v56   ;;  %v5601_v40 = vld [vmem:[%s10148_s6 + $0x18] sm:$0xff]  ;;  %v1780_v56 = vpop.permute.xlu1 %1779 }
 0x352   : > { %5275 = vmatmul.msk.bf16.gmra.mxu0 %vm605_vm0, %v6773_v37  ;;  %2224 = vperm.xlu2 %5639, %v6193_v53   ;;  %v10371_v53 = vld [vmem:[#allocation4_spill] sm:$0xff] }
 0x353   : > { %v1050_v61 = vpop.f32.mrf.mxu2  ;;  %v1680_v21 = vpop.f32.mrf.mxu3  ;;  %2509 = vmatpush.bf16.msra.mxu3 %v5601_v40  ;;  %v1498_v40 = vmul.f32 %v6469_v17, %v6550_v14  ;;  %v10375_v14 = vld [vmem:[#allocation10_spill] sm:$0xff] }
 0x354   : > { %v1194_v47 = vadd.f32 %v6657_v50, %v1050_v61  ;;  %v1681_v44 = vadd.f32 %v1680_v21, %v6477_v63 }
 0x355   : > { %v6768_v7 = vpop.f32.mrf.mxu1 }
 0x356   : > { %v1248_v62 = vrot.slane %v1194_v47, 7  ;;  %v1884_v29 = vmul.f32 %v1776_v15, %v1681_v44  ;;  %v1497_v15 = vmul.f32 %v6459_v59, %v6535_v39  ;;  %v5603_v59 = vld [vmem:[%s10148_s6 + $0x20] sm:$0xff]  ;;  %v1784_v39 = vpop.permute.xlu2 %1783 }
 0x357   : > { %2961 = vmatpush.bf16.msra.mxu0 %v5603_v59 }
 0x358   : > { %v6781_v31 = vsel %vm1265_vm3, %v1247_v45, %v1248_v62  ;;  %v6783_v63 = vadd.f32 %v1884_v29, %v1496_v41  ;;  %5253 = vmatmul.msk.bf16.gmra.mxu2 %vm605_vm0, %v6127_v38  ;;  %5297 = vmatmul.msk.bf16.gmra.mxu1 %vm605_vm0, %v6127_v38  ;;  %v6798_v48 = vpop.f32.mrf.mxu0 }
 0x359   : > { %2244 = vperm.xlu1 %5641, %v10371_v53   ;;  %2252 = vperm.xlu0 %5640, %v6246_v8  }
 0x35a   : > { %2236 = vperm.xlu2 %5639, %v6220_v58   ;;  %v10372_v58 = vld [vmem:[#allocation6_spill] sm:$0xff] }
 0x35b   : > { %v1053_v6 = vpop.f32.mrf.mxu2  ;;  %v1682_v50 = vpop.f32.mrf.mxu3 }
 0x35c   : > { %v1197_v13 = vadd.f32 %v6675_v11, %v1053_v6  ;;  %v1683_v19 = vadd.f32 %v1682_v50, %v6503_v43  ;;  %v6813_v43 = vld [vmem:[%s5903_s18 + $0x58] sm:$0xff]  ;;  %v6830_v6 = vld [vmem:[%s5903_s18 + $0x20] sm:$0xff]  ;;  %v10373_v50 = vld [vmem:[#allocation15_spill] sm:$0xff] }
 0x35d   : > { %v6800_v45 = vpop.f32.mrf.mxu1 }
 0x35e   : > { %v1249_v52 = vrot.slane %v1197_v13, 7  ;;  %v1885_v61 = vmul.f32 %v1780_v56, %v1683_v19  ;;  %v1788_v13 = vpop.permute.xlu0 %1787 }
 0x360   : > { %v6808_v21 = vsel %vm1265_vm3, %v1248_v62, %v1249_v52  ;;  %v6810_v11 = vadd.f32 %v1885_v61, %v1497_v15  ;;  %5239 = vmatmul.msk.bf16.gmra.mxu3 %vm605_vm0, %v6813_v43  ;;  %v6823_v62 = vpop.f32.mrf.mxu0 }
 0x361   : > { %2256 = vperm.xlu1 %5641, %v10372_v58   ;;  %2264 = vperm.xlu0 %5640, %v10373_v50  }
 0x362   : > { %5276 = vmatmul.msk.bf16.gmra.mxu0 %vm605_vm0, %v6830_v6  ;;  %2248 = vperm.xlu2 %5639, %v10375_v14  }
 0x363   : > { %v1055_v8 = vpop.f32.mrf.mxu2  ;;  %v1685_v47 = vpop.f32.mrf.mxu3 }
 0x364   : > { %v1199_v44 = vadd.f32 %v6698_v25, %v1055_v8  ;;  %v1686_v41 = vadd.f32 %v1685_v47, %v6523_v10  ;;  %v10374_v10 = vld [vmem:[#allocation5_spill] sm:$0xff]  ;;  %v1499_v8 = vmul.f32 %v6537_v60, %v6575_v2  ;;  %v1792_v60 = vpop.permute.xlu1 %1791 }
 0x365   : > { %v6825_v29 = vpop.f32.mrf.mxu1 }
 0x366   : > { %v1250_v24 = vrot.slane %v1199_v44, 7  ;;  %v1886_v56 = vmul.f32 %v1784_v39, %v1686_v41  ;;  %v10376_v44 = vld [vmem:[#allocation7_spill] sm:$0xff] }
 0x368   : > { %v6836_v25 = vadd.f32 %v1886_v56, %v1498_v40  ;;  %5254 = vmatmul.msk.bf16.gmra.mxu2 %vm605_vm0, %v10374_v10  ;;  %5298 = vmatmul.msk.bf16.gmra.mxu1 %vm605_vm0, %v10374_v10  ;;  %v6844_v17 = vsel %vm1265_vm3, %v1249_v52, %v1250_v24  ;;  %v6849_v59 = vpop.f32.mrf.mxu0  ;;  %v10378_v40 = vld [vmem:[#allocation13_spill] sm:$0xff]  ;;  %v10393_v10 = vld [vmem:[#allocation26_spill] sm:$0xff] }
 0x369   : > { %2268 = vperm.xlu1 %5641, %v10376_v44   ;;  %2276 = vperm.xlu0 %5640, %v6294_v26  }
 0x36a   : > { %2260 = vperm.xlu2 %5639, %v10378_v40  }
 0x36b   : > { %v1058_v19 = vpop.f32.mrf.mxu2  ;;  %v1687_v15 = vpop.f32.mrf.mxu3 }
 0x36c   : > { %v1202_v61 = vadd.f32 %v6716_v54, %v1058_v19  ;;  %v1688_v53 = vadd.f32 %v1687_v15, %v6544_v18  ;;  %v6864_v18 = vld [vmem:[%s5903_s18 + $0x60] sm:$0xff]  ;;  %v6878_v15 = vld [vmem:[%s5903_s18 + $0x28] sm:$0xff] }
 0x36d   : > { %v6851_v39 = vpop.f32.mrf.mxu1 }
 0x36e   : > { %v1251_v47 = vrot.slane %v1202_v61, 7  ;;  %v1887_v52 = vmul.f32 %v1788_v13, %v1688_v53  ;;  %v1500_v13 = vmul.f32 %v6491_v51, %v6587_v55  ;;  %v10379_v61 = vld [vmem:[#allocation9_spill] sm:$0xff]  ;;  %v10383_v55 = vld [vmem:[#allocation16_spill] sm:$0xff]  ;;  %v1796_v51 = vpop.permute.xlu2 %1795 }
 0x36f   : > { %v10380_v53 = vld [vmem:[#allocation21_spill] sm:$0xff] }
 0x370   : > { %v6859_v41 = vsel %vm1265_vm3, %v1250_v24, %v1251_v47  ;;  %v6861_v54 = vadd.f32 %v1887_v52, %v1499_v8  ;;  %5240 = vmatmul.msk.bf16.gmra.mxu3 %vm605_vm0, %v6864_v18  ;;  %v6871_v50 = vpop.f32.mrf.mxu0  ;;  %v10382_v8 = vld [vmem:[#allocation8_spill] sm:$0xff] }
 0x371   : > { %2280 = vperm.xlu1 %5641, %v10379_v61   ;;  %2288 = vperm.xlu0 %5640, %v10380_v53   ;;  %v10386_v61 = vld [vmem:[#allocation23_spill] sm:$0xff] }
 0x372   : > { %10377 = vst [vmem:[#allocation4_spill] sm:$0xff] %v6861_v54  ;;  %5277 = vmatmul.msk.bf16.gmra.mxu0 %vm605_vm0, %v6878_v15  ;;  %2272 = vperm.xlu2 %5639, %v10383_v55   ;;  %v10388_v55 = vld [vmem:[#allocation19_spill] sm:$0xff]  ;;  %v7005_v54 = vld [vmem:[%s5903_s18 + $0x78] sm:$0xff] }
 0x373   : > { %v1060_v2 = vpop.f32.mrf.mxu2  ;;  %v1690_v56 = vpop.f32.mrf.mxu3 }
 0x374   : > { %v1204_v58 = vadd.f32 %v6744_v27, %v1060_v2  ;;  %v1691_v26 = vadd.f32 %v1690_v56, %v6561_v30 }
 0x375   : > { %v6873_v24 = vpop.f32.mrf.mxu1 }
 0x376   : > { %v1252_v14 = vrot.slane %v1204_v58, 7  ;;  %v1888_v19 = vmul.f32 %v1792_v60, %v1691_v26  ;;  %v10384_v58 = vld [vmem:[#allocation38_spill] sm:$0xff] }
 0x377   : > { %v1501_v26 = vmul.f32 %v10384_v58, %v6612_v1  ;;  %v1800_v1 = vpop.permute.xlu0 %1799  ;;  %10414 = vst [vmem:[#allocation38_spill] sm:$0xff] %v7005_v54 }
 0x378   : > { %v6886_v30 = vsel %vm1265_vm3, %v1251_v47, %v1252_v14  ;;  %v6888_v27 = vadd.f32 %v1888_v19, %v1500_v13  ;;  %5255 = vmatmul.msk.bf16.gmra.mxu2 %vm605_vm0, %v10382_v8  ;;  %5299 = vmatmul.msk.bf16.gmra.mxu1 %vm605_vm0, %v10382_v8  ;;  %v6897_v47 = vpop.f32.mrf.mxu0  ;;  %v10385_v19 = vld [vmem:[#allocation11_spill] sm:$0xff]  ;;  %v6926_v8 = vld [vmem:[%s5903_s18 + $0x30] sm:$0xff] }
 0x379   : > { %2292 = vperm.xlu1 %5641, %v10385_v19   ;;  %2300 = vperm.xlu0 %5640, %v10386_v61   ;;  %10391 = vst [vmem:[#allocation10_spill] sm:$0xff] %v6926_v8 }
 0x37a   : > { %10381 = vst [vmem:[#allocation6_spill] sm:$0xff] %v6888_v27  ;;  %2284 = vperm.xlu2 %5639, %v10388_v55   ;;  %v10392_v55 = vld [vmem:[#allocation14_spill] sm:$0xff] }
 0x37b   : > { %v1063_v52 = vpop.f32.mrf.mxu2  ;;  %v1692_v44 = vpop.f32.mrf.mxu3 }
 0x37c   : > { %v1207_v40 = vadd.f32 %v6766_v16, %v1063_v52  ;;  %v1693_v60 = vadd.f32 %v1692_v44, %v6583_v42  ;;  %v6912_v42 = vld [vmem:[%s5903_s18 + $0x68] sm:$0xff] }
 0x37d   : > { %v6899_v2 = vpop.f32.mrf.mxu1 }
 0x37e   : > { %v1253_v56 = vrot.slane %v1207_v40, 7  ;;  %v1889_v13 = vmul.f32 %v1796_v51, %v1693_v60 }
 0x380   : > { %v6907_v53 = vsel %vm1265_vm3, %v1252_v14, %v1253_v56  ;;  %v6909_v16 = vadd.f32 %v1889_v13, %v1501_v26  ;;  %5241 = vmatmul.msk.bf16.gmra.mxu3 %vm605_vm0, %v6912_v42  ;;  %v6919_v60 = vpop.f32.mrf.mxu0  ;;  %v10389_v26 = vld [vmem:[#allocation56_spill] sm:$0xff] }
 0x381   : > { %v10390_v13 = vld [vmem:[#allocation44_spill] sm:$0xff]  ;;  %2304 = vperm.xlu1 %5641, %v10392_v55   ;;  %2312 = vperm.xlu0 %5640, %v10393_v10   ;;  %v10398_v55 = vld [vmem:[#allocation39_spill] sm:$0xff] }
 0x382   : > { %10387 = vst [vmem:[#allocation15_spill] sm:$0xff] %v6909_v16  ;;  %v1502_v19 = vmul.f32 %v10390_v13, %v10389_v26  ;;  %5278 = vmatmul.msk.bf16.gmra.mxu0 %vm605_vm0, %v6926_v8  ;;  %v10397_v26 = vld [vmem:[#allocation55_spill] sm:$0xff]  ;;  %v1503_v38 = vmul.f32 %v10398_v55, %v6652_v33  ;;  %v1808_v33 = vpop.permute.xlu2 %1807  ;;  %v10405_v55 = vld [vmem:[#allocation40_spill] sm:$0xff]  ;;  %v6974_v16 = vld [vmem:[%s5903_s18 + $0x38] sm:$0xff] }
 0x383   : > { %v1065_v51 = vpop.f32.mrf.mxu2  ;;  %v1695_v52 = vpop.f32.mrf.mxu3  ;;  %10406 = vst [vmem:[#allocation9_spill] sm:$0xff] %v6974_v16  ;;  %v7020_v8 = vld [vmem:[%s5903_s18 + $0x40] sm:$0xff] }
 0x384   : > { %v1209_v44 = vadd.f32 %v6798_v48, %v1065_v51  ;;  %v1696_v40 = vadd.f32 %v1695_v52, %v6598_v46  ;;  %v10395_v51 = vld [vmem:[#allocation12_spill] sm:$0xff]  ;;  %v1804_v52 = vpop.permute.xlu1 %1803  ;;  %10417 = vst [vmem:[#allocation11_spill] sm:$0xff] %v7020_v8 }
 0x385   : > { %v6921_v14 = vpop.f32.mrf.mxu1 }
 0x386   : > { %v1254_v58 = vrot.slane %v1209_v44, 7  ;;  %v1890_v61 = vmul.f32 %v1800_v1, %v1696_v40  ;;  %v10396_v1 = vld [vmem:[#allocation22_spill] sm:$0xff] }
 0x387   : > { %2296 = vperm.xlu2 %5639, %v10396_v1  }
 0x388   : > { %v6934_v46 = vsel %vm1265_vm3, %v1253_v56, %v1254_v58  ;;  %v6936_v48 = vadd.f32 %v1890_v61, %v1502_v19  ;;  %5256 = vmatmul.msk.bf16.gmra.mxu2 %vm605_vm0, %v10395_v51  ;;  %5300 = vmatmul.msk.bf16.gmra.mxu1 %vm605_vm0, %v10395_v51  ;;  %v6945_v56 = vpop.f32.mrf.mxu0  ;;  %v10399_v51 = vld [vmem:[#allocation17_spill] sm:$0xff] }
 0x389   : > { %2316 = vperm.xlu1 %5641, %v10399_v51   ;;  %2324 = vperm.xlu0 %5640, %v10400_v57   ;;  %v10403_v57 = vld [vmem:[#allocation58_spill] sm:$0xff] }
 0x38a   : > { %10394 = vst [vmem:[#allocation7_spill] sm:$0xff] %v6936_v48 }
 0x38b   : > { %v1068_v44 = vpop.f32.mrf.mxu2  ;;  %v1697_v40 = vpop.f32.mrf.mxu3 }
 0x38c   : > { %v1212_v10 = vadd.f32 %v6823_v62, %v1068_v44  ;;  %v1698_v13 = vadd.f32 %v1697_v40, %v10397_v26  ;;  %v6960_v44 = vld [vmem:[%s5903_s18 + $0x70] sm:$0xff]  ;;  %v10402_v40 = vld [vmem:[#allocation25_spill] sm:$0xff] }
 0x38d   : > { %v6947_v19 = vpop.f32.mrf.mxu1 }
 0x38e   : > { %v1255_v61 = vrot.slane %v1212_v10, 7  ;;  %v1891_v32 = vmul.f32 %v1804_v52, %v1698_v13 }
 0x38f   : > { %2308 = vperm.xlu2 %5639, %v10402_v40   ;;  %v10407_v40 = vld [vmem:[#allocation20_spill] sm:$0xff] }
 0x390   : > { %v6955_v1 = vsel %vm1265_vm3, %v1254_v58, %v1255_v61  ;;  %v6957_v62 = vadd.f32 %v1891_v32, %v1503_v38  ;;  %5242 = vmatmul.msk.bf16.gmra.mxu3 %vm605_vm0, %v6960_v44  ;;  %v6967_v13 = vpop.f32.mrf.mxu0  ;;  %v10404_v38 = vld [vmem:[#allocation64_spill] sm:$0xff] }
 0x391   : > { %2328 = vperm.xlu1 %5641, %v10407_v40   ;;  %v10411_v40 = vld [vmem:[#allocation63_spill] sm:$0xff] }
 0x392   : > { %10401 = vst [vmem:[#allocation13_spill] sm:$0xff] %v6957_v62  ;;  %v1504_v62 = vmul.f32 %v10405_v55, %v10404_v38  ;;  %5279 = vmatmul.msk.bf16.gmra.mxu0 %vm605_vm0, %v6974_v16 }
 0x393   : > { %v1070_v52 = vpop.f32.mrf.mxu2  ;;  %v1700_v10 = vpop.f32.mrf.mxu3 }
 0x394   : > { %v1214_v51 = vadd.f32 %v6849_v59, %v1070_v52  ;;  %v1701_v26 = vadd.f32 %v1700_v10, %v10403_v57  ;;  %v10409_v10 = vld [vmem:[#allocation18_spill] sm:$0xff]  ;;  %v1812_v57 = vpop.permute.xlu0 %1811 }
 0x395   : > { %v6969_v58 = vpop.f32.mrf.mxu1 }
 0x396   : > { %v1256_v32 = vrot.slane %v1214_v51, 7  ;;  %v1892_v48 = vmul.f32 %v1808_v33, %v1701_v26  ;;  %v1816_v33 = vpop.permute.xlu1 %1815  ;;  %v10410_v51 = vld [vmem:[#allocation27_spill] sm:$0xff] }
 0x397   : > { %2320 = vperm.xlu2 %5639, %v10410_v51  }
 0x398   : > { %v6981_v59 = vsel %vm1265_vm3, %v1255_v61, %v1256_v32  ;;  %v6983_v52 = vadd.f32 %v1892_v48, %v1504_v62  ;;  %5257 = vmatmul.msk.bf16.gmra.mxu2 %vm605_vm0, %v10409_v10  ;;  %5301 = vmatmul.msk.bf16.gmra.mxu1 %vm605_vm0, %v10409_v10  ;;  %v6992_v16 = vpop.f32.mrf.mxu0 }
 0x39a   : > { %10408 = vst [vmem:[#allocation21_spill] sm:$0xff] %v6983_v52  ;;  %v10412_v52 = vld [vmem:[#allocation48_spill] sm:$0xff] }
 0x39b   : > { %v1073_v26 = vpop.f32.mrf.mxu2  ;;  %v1702_v38 = vpop.f32.mrf.mxu3  ;;  %v1505_v27 = vmul.f32 %v10412_v52, %v6692_v23  ;;  %v10415_v23 = vld [vmem:[#allocation69_spill] sm:$0xff] }
 0x39c   : > { %v1217_v55 = vadd.f32 %v6871_v50, %v1073_v26  ;;  %v1703_v61 = vadd.f32 %v1702_v38, %v10411_v40 }
 0x39d   : > { %v6994_v48 = vpop.f32.mrf.mxu1 }
 0x39e   : > { %v1257_v62 = vrot.slane %v1217_v55, 7  ;;  %v1893_v0 = vmul.f32 %v1812_v57, %v1703_v61  ;;  %v7009_v50 = vpop.permute.xlu1 %1827  ;;  %v1820_v57 = vpop.permute.xlu2 %1819 }
 0x3a0   : > { %v7000_v51 = vsel %vm1265_vm3, %v1256_v32, %v1257_v62  ;;  %v7002_v10 = vadd.f32 %v1893_v0, %v1505_v27  ;;  %5243 = vmatmul.msk.bf16.gmra.mxu3 %vm605_vm0, %v7005_v54  ;;  %v7013_v40 = vpop.f32.mrf.mxu0  ;;  %v10416_v27 = vld [vmem:[#allocation42_spill] sm:$0xff] }
 0x3a1   : > { %v1506_v61 = vmul.f32 %v10416_v27, %v6708_v12 }
 0x3a2   : > { %10413 = vst [vmem:[#allocation16_spill] sm:$0xff] %v7002_v10  ;;  %5280 = vmatmul.msk.bf16.gmra.mxu0 %vm605_vm0, %v7020_v8 }
 0x3a3   : > { %v1075_v26 = vpop.f32.mrf.mxu2  ;;  %v1705_v38 = vpop.f32.mrf.mxu3 }
 0x3a4   : > { %v1219_v55 = vadd.f32 %v6897_v47, %v1075_v26  ;;  %v1706_v52 = vadd.f32 %v1705_v38, %v10415_v23  ;;  %v10419_v38 = vld [vmem:[#allocation24_spill] sm:$0xff] }
 0x3a5   : > { %v7015_v32 = vpop.f32.mrf.mxu1 }
 0x3a6   : > { %v1258_v0 = vrot.slane %v1219_v55, 7  ;;  %v1894_v10 = vmul.f32 %v1816_v33, %v1706_v52  ;;  %v7034_v55 = vpop.permute.xlu1 %1839  ;;  %v7038_v27 = vpop.permute.xlu2 %1831 }
 0x3a8   : > { %v7026_v47 = vsel %vm1265_vm3, %v1257_v62, %v1258_v0  ;;  %v7028_v26 = vadd.f32 %v1894_v10, %v1506_v61  ;;  %5258 = vmatmul.msk.bf16.gmra.mxu2 %vm605_vm0, %v10419_v38  ;;  %5302 = vmatmul.msk.bf16.gmra.mxu1 %vm605_vm0, %v10419_v38  ;;  %v7040_v62 = vpop.f32.mrf.mxu0  ;;  %v5829_v61 = vmov 3   ;;  %v10421_v38 = vld [vmem:[#allocation43_spill] sm:$0xff] }
 0x3a9   : > { %5643 = vset.pattern.permute.xlu0 %v5829_v61  ;;  %5644 = vset.pattern.permute.xlu1 %v5829_v61  ;;  %v1507_v8 = vmul.f32 %v10421_v38, %v6739_v28  ;;  %v5676_v28 = vld [vmem:[%s10151_s9] sm:$0xff] }
 0x3aa   : > { %10418 = vst [vmem:[#allocation23_spill] sm:$0xff] %v7028_v26  ;;  %5642 = vset.pattern.permute.xlu2 %v5829_v61 }
 0x3ab   : > { %v1078_v12 = vpop.f32.mrf.mxu2  ;;  %v1707_v33 = vpop.f32.mrf.mxu3  ;;  %2656 = vperm.xlu2 %5642, %v5676_v28   ;;  %v7079_v28 = vld [vmem:[%s5903_s18 + $0x48] sm:$0xff] }
 0x3ac   : > { %v1222_v23 = vadd.f32 %v6919_v60, %v1078_v12  ;;  %v1708_v52 = vadd.f32 %v1707_v33, %v6700_v4  ;;  %v5673_v60 = vld [vmem:[%s10151_s9 + $0x8] sm:$0xff]  ;;  %v5674_v4 = vld [vmem:[%s10151_s9 + $0x10] sm:$0xff]  ;;  %10427 = vst [vmem:[#allocation22_spill] sm:$0xff] %v7079_v28 }
 0x3ad   : > { %v7042_v10 = vpop.f32.mrf.mxu1  ;;  %2660 = vperm.xlu0 %5643, %v5673_v60   ;;  %2664 = vperm.xlu1 %5644, %v5674_v4   ;;  %v10426_v4 = vld [vmem:[#allocation52_spill] sm:$0xff] }
 0x3ae   : > { %10420 = vst [vmem:[#allocation19_spill] sm:$0xff] %v7042_v10  ;;  %v1259_v26 = vrot.slane %v1222_v23, 7  ;;  %v1895_v54 = vmul.f32 %v1820_v57, %v1708_v52  ;;  %v7059_v23 = vld [vmem:[%s5903_s18] sm:$0xff]  ;;  %v1824_v57 = vpop.permute.xlu0 %1823  ;;  %v7074_v10 = vpop.permute.xlu1 %1851 }
 0x3af   : > { %10424 = vst [vmem:[#allocation14_spill] sm:$0xff] %v7059_v23 }
 0x3b0   : > { %v7054_v12 = vsel %vm1265_vm3, %v1258_v0, %v1259_v26  ;;  %v7056_v33 = vadd.f32 %v1895_v54, %v1507_v8  ;;  %5316 = vmatmul.msk.bf16.vlgmr.msra.gmra.mxu3 %vm605_vm0, %v7059_v23  ;;  %v7068_v54 = vpop.f32.mrf.mxu0 }
 0x3b1   : > { %10422 = vst [vmem:[#allocation56_spill] sm:$0xff] %v7054_v12  ;;  %v7076_v12 = vpop.permute.xlu2 %1843 }
 0x3b2   : > { %10423 = vst [vmem:[#allocation44_spill] sm:$0xff] %v7056_v33  ;;  %v1508_v33 = vmul.f32 %v10426_v4, %v6754_v35  ;;  %5281 = vmatmul.msk.bf16.gmra.mxu0 %vm605_vm0, %v7079_v28 }
 0x3b3   : > { %v1080_v38 = vpop.f32.mrf.mxu2  ;;  %v1710_v52 = vpop.f32.mrf.mxu3 }
 0x3b4   : > { %v1224_v61 = vadd.f32 %v6945_v56, %v1080_v38  ;;  %v1711_v0 = vadd.f32 %v1710_v52, %v6718_v34  ;;  %v5678_v34 = vld [vmem:[%s10151_s9 + $0x20] sm:$0xff]  ;;  %v5679_v56 = vld [vmem:[%s10151_s9 + $0x30] sm:$0xff]  ;;  %v10429_v38 = vld [vmem:[#allocation29_spill] sm:$0xff] }
 0x3b5   : > { %v7070_v8 = vpop.f32.mrf.mxu1  ;;  %2672 = vperm.xlu1 %5644, %v5678_v34   ;;  %2680 = vperm.xlu0 %5643, %v5679_v56   ;;  %v5680_v52 = vld [vmem:[%s10151_s9 + $0x18] sm:$0xff]  ;;  %v10431_v56 = vld [vmem:[#allocation46_spill] sm:$0xff] }
 0x3b6   : > { %10425 = vst [vmem:[#allocation26_spill] sm:$0xff] %v7070_v8  ;;  %v1260_v60 = vrot.slane %v1224_v61, 7  ;;  %v1896_v23 = vmul.f32 %v1824_v57, %v1711_v0  ;;  %2668 = vperm.xlu2 %5642, %v5680_v52   ;;  %v5681_v52 = vld [vmem:[%s10151_s9 + $0x38] sm:$0xff] }
 0x3b8   : > { %v7091_v35 = vsel %vm1265_vm3, %v1259_v26, %v1260_v60  ;;  %v7093_v57 = vadd.f32 %v1896_v23, %v1508_v33  ;;  %5259 = vmatmul.msk.bf16.gmra.mxu2 %vm605_vm0, %v10429_v38  ;;  %5303 = vmatmul.msk.bf16.gmra.mxu1 %vm605_vm0, %v10429_v38  ;;  %v7104_v34 = vpop.f32.mrf.mxu0 }
 0x3ba   : > { %10428 = vst [vmem:[#allocation55_spill] sm:$0xff] %v7093_v57  ;;  %v1509_v57 = vmul.f32 %v10431_v56, %v6781_v31  ;;  %v7125_v31 = vpop.permute.xlu1 %1863 }
 0x3bb   : > { %v1083_v61 = vpop.f32.mrf.mxu2  ;;  %v1712_v0 = vpop.f32.mrf.mxu3 }
 0x3bc   : > { %v1227_v4 = vadd.f32 %v6967_v13, %v1083_v61  ;;  %v1713_v26 = vadd.f32 %v1712_v0, %v6746_v9  ;;  %v5682_v13 = vld [vmem:[%s10151_s9 + $0x48] sm:$0xff] }
 0x3bd   : > { %v7106_v33 = vpop.f32.mrf.mxu1  ;;  %2684 = vperm.xlu1 %5644, %v5681_v52   ;;  %2692 = vperm.xlu0 %5643, %v5682_v13   ;;  %v10434_v0 = vld [vmem:[#allocation71_spill] sm:$0xff]  ;;  %v10435_v13 = vld [vmem:[#allocation30_spill] sm:$0xff] }
 0x3be   : > { %10430 = vst [vmem:[#allocation39_spill] sm:$0xff] %v7106_v33  ;;  %v1261_v23 = vrot.slane %v1227_v4, 7  ;;  %v1897_v38 = vmul.f32 %v7009_v50, %v1713_v26  ;;  %v7127_v50 = vpop.permute.xlu2 %1855  ;;  %v5683_v4 = vld [vmem:[%s10151_s9 + $0x28] sm:$0xff] }
 0x3bf   : > { %2676 = vperm.xlu2 %5642, %v5683_v4  }
 0x3c0   : > { %v7119_v9 = vsel %vm1265_vm3, %v1260_v60, %v1261_v23  ;;  %v7121_v61 = vadd.f32 %v1897_v38, %v1509_v57  ;;  %5317 = vmatmul.msk.bf16.gmra.mxu3 %vm605_vm0, %v10434_v0  ;;  %v1836_v57 = vpop.permute.xlu0 %1835  ;;  %v7134_v38 = vpop.f32.mrf.mxu0  ;;  %v10436_v0 = vld [vmem:[#allocation67_spill] sm:$0xff] }
 0x3c1   : > { %10432 = vst [vmem:[#allocation17_spill] sm:$0xff] %v7119_v9  ;;  %v10437_v9 = vld [vmem:[#allocation47_spill] sm:$0xff] }
 0x3c2   : > { %10433 = vst [vmem:[#allocation28_spill] sm:$0xff] %v7121_v61  ;;  %v1671_v61 = vadd.f32 %v10436_v0, %v10435_v13  ;;  %v1510_v8 = vmul.f32 %v10437_v9, %v6808_v21  ;;  %5282 = vmatmul.msk.bf16.gmra.mxu0 %vm605_vm0, %v6759_v49  ;;  %v10438_v21 = vld [vmem:[#allocation32_spill] sm:$0xff]  ;;  %v10443_v13 = vld [vmem:[#allocation33_spill] sm:$0xff] }
 0x3c3   : > { %v1085_v26 = vpop.f32.mrf.mxu2  ;;  %v1715_v56 = vpop.f32.mrf.mxu3  ;;  %v10439_v9 = vrot.slane %v10438_v21, 7 }
 0x3c4   : > { %v1229_v52 = vadd.f32 %v6992_v16, %v1085_v26  ;;  %v1716_v60 = vadd.f32 %v1715_v56, %v6768_v7  ;;  %v5684_v7 = vld [vmem:[%s10151_s9 + $0x50] sm:$0xff]  ;;  %v5685_v16 = vld [vmem:[%s10151_s9 + $0x60] sm:$0xff]  ;;  %v10441_v56 = vld [vmem:[#allocation31_spill] sm:$0xff] }
 0x3c5   : > { %v7138_v28 = vpop.f32.mrf.mxu1  ;;  %2696 = vperm.xlu1 %5644, %v5684_v7   ;;  %2704 = vperm.xlu0 %5643, %v5685_v16   ;;  %v7170_v7 = vpop.permute.xlu1 %1875 }
 0x3c6   : > { %v1262_v33 = vrot.slane %v1229_v52, 7  ;;  %v1898_v4 = vmul.f32 %v7038_v27, %v1716_v60  ;;  %v10442_v52 = vld [vmem:[#allocation72_spill] sm:$0xff] }
 0x3c7   : > { %v1880_v60 = vmul.f32 %v10442_v52, %v1671_v61 }
 0x3c8   : > { %v7153_v26 = vsel %vm1265_vm3, %v1261_v23, %v1262_v33  ;;  %v1297_v27 = vsel %vm1265_vm3, %v1262_v33, %v10439_v9  ;;  %v7159_v49 = vadd.f32 %v1898_v4, %v1510_v8  ;;  %5260 = vmatmul.msk.bf16.gmra.mxu2 %vm605_vm0, %v10441_v56  ;;  %5304 = vmatmul.msk.bf16.gmra.mxu1 %vm605_vm0, %v10441_v56  ;;  %v5686_v23 = vld [vmem:[%s10151_s9 + $0x40] sm:$0xff]  ;;  %v7172_v33 = vpop.permute.xlu2 %1867  ;;  %v7178_v61 = vpop.permute.xlu0 %1847 }
 0x3c9   : > { %v1492_v0 = vmul.f32 %v10443_v13, %v1297_v27  ;;  %2688 = vperm.xlu2 %5642, %v5686_v23   ;;  %v7180_v27 = vpop.f32.mrf.mxu0  ;;  %v10445_v13 = vld [vmem:[#allocation57_spill] sm:$0xff] }
 0x3ca   : > { %10440 = vst [vmem:[#allocation25_spill] sm:$0xff] %v7159_v49  ;;  %v1511_v23 = vmul.f32 %v10445_v13, %v6844_v17  ;;  %v5687_v49 = vld [vmem:[%s10151_s9 + $0x68] sm:$0xff]  ;;  %v5689_v17 = vld [vmem:[%s10151_s9 + $0x58] sm:$0xff] }
 0x3cb   : > { %v1717_v8 = vpop.f32.mrf.mxu3  ;;  %v1963_v4 = vpop.f32.mrf.mxu2  ;;  %v1912_v16 = vadd.f32 %v1880_v60, %v1492_v0 }
 0x3cc   : > { %v1718_v21 = vadd.f32 %v1717_v8, %v6800_v45  ;;  %v7176_v9 = vadd.f32 %v7013_v40, %v1963_v4  ;;  %v5688_v45 = vld [vmem:[%s10151_s9 + $0x78] sm:$0xff] }
 0x3cd   : > { %v7182_v52 = vpop.f32.mrf.mxu1  ;;  %2708 = vperm.xlu1 %5644, %v5687_v49   ;;  %2716 = vperm.xlu0 %5643, %v5688_v45  }
 0x3ce   : > { %10444 = vst [vmem:[#allocation58_spill] sm:$0xff] %v7176_v9  ;;  %v1899_v56 = vmul.f32 %v1836_v57, %v1718_v21  ;;  %v10447_v21 = vld [vmem:[#allocation49_spill] sm:$0xff] }
 0x3cf   : > { %v1512_v13 = vmul.f32 %v10447_v21, %v6859_v41 }
 0x3d0   : > { %v7192_v40 = vadd.f32 %v1899_v56, %v1511_v23  ;;  %5318 = vmatmul.msk.bf16.gmra.mxu3 %vm605_vm0, %v6724_v20  ;;  %v7201_v8 = vpop.permute.xlu2 %2204  ;;  %v10221_v20 = vrot.slane %v7176_v9, 1 }
 0x3d1   : > { %2700 = vperm.xlu2 %5642, %v5689_v17   ;;  %10446 = vst [vmem:[#allocation64_spill] sm:$0xff] %v7201_v8  ;;  %v7203_v4 = vpop.f32.mrf.mxu0  ;;  %v2213_v17 = vpop.permute.xlu1 %2212 }
 0x3d2   : > { %5283 = vmatmul.msk.bf16.gmra.mxu0 %vm605_vm0, %v6813_v43 }
 0x3d3   : > { %v1720_v57 = vpop.f32.mrf.mxu3  ;;  %v1965_v60 = vpop.f32.mrf.mxu2 }
 0x3d4   : > { %v1721_v0 = vadd.f32 %v1720_v57, %v6825_v29  ;;  %v2061_v49 = vadd.f32 %v7040_v62, %v1965_v60  ;;  %v7212_v29 = vpop.permute.xlu0 %1859  ;;  %v5690_v62 = vld [vmem:[%s10151_s9 + $0x80] sm:$0xff]  ;;  %v5691_v57 = vld [vmem:[%s10151_s9 + $0x90] sm:$0xff] }
 0x3d5   : > { %v7205_v56 = vpop.f32.mrf.mxu1  ;;  %2720 = vperm.xlu1 %5644, %v5690_v62   ;;  %2728 = vperm.xlu0 %5643, %v5691_v57   ;;  %v10448_v60 = vld [vmem:[#allocation34_spill] sm:$0xff] }
 0x3d6   : > { %v1900_v23 = vmul.f32 %v7034_v55, %v1721_v0  ;;  %v2139_v45 = vrot.slane %v2061_v49, 1  ;;  %v5692_v0 = vld [vmem:[%s10151_s9 + $0x70] sm:$0xff] }
 0x3d8   : > { %v7222_v41 = vadd.f32 %v1900_v23, %v1512_v13  ;;  %v2201_v55 = vsel %vm2170_vm4, %v10221_v20, %v2139_v45  ;;  %5261 = vmatmul.msk.bf16.gmra.mxu2 %vm605_vm0, %v10448_v60  ;;  %5305 = vmatmul.msk.bf16.gmra.mxu1 %vm605_vm0, %v10448_v60  ;;  %v10449_v60 = vld [vmem:[#allocation50_spill] sm:$0xff]  ;;  %v2217_v9 = vpop.permute.xlu2 %2216 }
 0x3d9   : > { %v2333_v43 = vmul.f32 %v2213_v17, %v2201_v55  ;;  %2712 = vperm.xlu2 %5642, %v5692_v0   ;;  %v7239_v57 = vpop.f32.mrf.mxu0  ;;  %v1513_v17 = vmul.f32 %v10449_v60, %v6886_v30  ;;  %v5695_v60 = vld [vmem:[%s10151_s9 + $0x88] sm:$0xff] }
 0x3db   : > { %v7235_v49 = vadd.f32 %v2333_v43, %v1912_v16  ;;  %v1722_v21 = vpop.f32.mrf.mxu3  ;;  %v1968_v13 = vpop.f32.mrf.mxu2  ;;  %v5693_v16 = vld [vmem:[%s10151_s9 + $0x98] sm:$0xff] }
 0x3dc   : > { %v1723_v23 = vadd.f32 %v1722_v21, %v6851_v39  ;;  %v2064_v62 = vadd.f32 %v7068_v54, %v1968_v13  ;;  %v5694_v39 = vld [vmem:[%s10151_s9 + $0xa8] sm:$0xff]  ;;  %v7258_v30 = vpop.permute.xlu0 %1871 }
 0x3dd   : > { %v7241_v20 = vpop.f32.mrf.mxu1  ;;  %2732 = vperm.xlu1 %5644, %v5693_v16   ;;  %2740 = vperm.xlu0 %5643, %v5694_v39  }
 0x3de   : > { %v1901_v55 = vmul.f32 %v7076_v12, %v1723_v23  ;;  %v2140_v8 = vrot.slane %v2064_v62, 1  ;;  %v2221_v62 = vpop.permute.xlu1 %2220 }
 0x3e0   : > { %v7252_v54 = vadd.f32 %v1901_v55, %v1513_v17  ;;  %v2200_v43 = vsel %vm2170_vm4, %v2139_v45, %v2140_v8  ;;  %5319 = vmatmul.msk.bf16.gmra.mxu3 %vm605_vm0, %v6773_v37 }
 0x3e1   : > { %v2334_v12 = vmul.f32 %v2217_v9, %v2200_v43  ;;  %2724 = vperm.xlu2 %5642, %v5695_v60   ;;  %v7268_v17 = vpop.f32.mrf.mxu0  ;;  %v10450_v9 = vld [vmem:[#allocation62_spill] sm:$0xff] }
 0x3e2   : > { %v1514_v55 = vmul.f32 %v10450_v9, %v6907_v53  ;;  %5284 = vmatmul.msk.bf16.gmra.mxu0 %vm605_vm0, %v6864_v18  ;;  %v5698_v43 = vld [vmem:[%s10151_s9 + $0xa0] sm:$0xff] }
 0x3e3   : > { %v7264_v0 = vadd.f32 %v2334_v12, %v6710_v3  ;;  %v1725_v21 = vpop.f32.mrf.mxu3  ;;  %v1970_v13 = vpop.f32.mrf.mxu2  ;;  %v5696_v3 = vld [vmem:[%s10151_s9 + $0xb0] sm:$0xff] }
 0x3e4   : > { %v1726_v23 = vadd.f32 %v1725_v21, %v6873_v24  ;;  %v2066_v45 = vadd.f32 %v7104_v34, %v1970_v13  ;;  %v5697_v24 = vld [vmem:[%s10151_s9 + $0xc0] sm:$0xff]  ;;  %v2225_v12 = vpop.permute.xlu2 %2224  ;;  %v7294_v60 = vpop.permute.xlu0 %2208 }
 0x3e5   : > { %v7270_v37 = vpop.f32.mrf.mxu1  ;;  %2744 = vperm.xlu1 %5644, %v5696_v3   ;;  %2752 = vperm.xlu0 %5643, %v5697_v24   ;;  %10452 = vst [vmem:[#allocation40_spill] sm:$0xff] %v7294_v60  ;;  %v10479_v60 = vld [vmem:[#allocation66_spill] sm:$0xff] }
 0x3e6   : > { %v1902_v16 = vmul.f32 %v7178_v61, %v1726_v23  ;;  %v2141_v39 = vrot.slane %v2066_v45, 1  ;;  %v10451_v61 = vld [vmem:[#allocation36_spill] sm:$0xff]  ;;  %v2233_v9 = vpop.permute.xlu1 %2232 }
 0x3e8   : > { %v7283_v34 = vadd.f32 %v1902_v16, %v1514_v55  ;;  %v2199_v53 = vsel %vm2170_vm4, %v2140_v8, %v2141_v39  ;;  %5262 = vmatmul.msk.bf16.gmra.mxu2 %vm605_vm0, %v10451_v61  ;;  %5306 = vmatmul.msk.bf16.gmra.mxu1 %vm605_vm0, %v10451_v61  ;;  %v10453_v16 = vld [vmem:[#allocation53_spill] sm:$0xff] }
 0x3e9   : > { %v2335_v18 = vmul.f32 %v2221_v62, %v2199_v53  ;;  %2736 = vperm.xlu2 %5642, %v5698_v43   ;;  %v7301_v55 = vpop.f32.mrf.mxu0  ;;  %v1515_v3 = vmul.f32 %v10453_v16, %v6934_v46 }
 0x3eb   : > { %v7297_v21 = vadd.f32 %v2335_v18, %v6729_v22  ;;  %v1727_v13 = vpop.f32.mrf.mxu3  ;;  %v1973_v8 = vpop.f32.mrf.mxu2  ;;  %v5699_v22 = vld [vmem:[%s10151_s9 + $0xc8] sm:$0xff] }
 0x3ec   : > { %v1728_v23 = vadd.f32 %v1727_v13, %v6899_v2  ;;  %v2069_v45 = vadd.f32 %v7134_v38, %v1973_v8  ;;  %v5700_v2 = vld [vmem:[%s10151_s9 + $0xd8] sm:$0xff]  ;;  %v2237_v16 = vpop.permute.xlu2 %2236 }
 0x3ed   : > { %v7303_v62 = vpop.f32.mrf.mxu1  ;;  %2756 = vperm.xlu1 %5644, %v5699_v22   ;;  %2764 = vperm.xlu0 %5643, %v5700_v2   ;;  %v2229_v2 = vpop.permute.xlu0 %2228 }
 0x3ee   : > { %v1903_v24 = vmul.f32 %v7074_v10, %v1728_v23  ;;  %v2142_v53 = vrot.slane %v2069_v45, 1  ;;  %v5701_v10 = vld [vmem:[%s10151_s9 + $0xb8] sm:$0xff] }
 0x3f0   : > { %v7314_v38 = vadd.f32 %v1903_v24, %v1515_v3  ;;  %v2198_v18 = vsel %vm2170_vm4, %v2141_v39, %v2142_v53  ;;  %5320 = vmatmul.msk.bf16.gmra.mxu3 %vm605_vm0, %v6830_v6  ;;  %v10454_v6 = vld [vmem:[#allocation54_spill] sm:$0xff] }
 0x3f1   : > { %v2336_v46 = vmul.f32 %v2225_v12, %v2198_v18  ;;  %2748 = vperm.xlu2 %5642, %v5701_v10   ;;  %v7328_v39 = vpop.f32.mrf.mxu0  ;;  %v1516_v12 = vmul.f32 %v10454_v6, %v6955_v1  ;;  %v10455_v18 = vld [vmem:[#allocation41_spill] sm:$0xff] }
 0x3f2   : > { %5285 = vmatmul.msk.bf16.gmra.mxu0 %vm605_vm0, %v6912_v42 }
 0x3f3   : > { %v7324_v43 = vadd.f32 %v2336_v46, %v6756_v5  ;;  %v1730_v13 = vpop.f32.mrf.mxu3  ;;  %v1975_v8 = vpop.f32.mrf.mxu2  ;;  %v5704_v46 = vld [vmem:[%s10151_s9 + $0xd0] sm:$0xff] }
 0x3f4   : > { %v1731_v23 = vadd.f32 %v1730_v13, %v6921_v14  ;;  %v2071_v45 = vadd.f32 %v7180_v27, %v1975_v8  ;;  %v7335_v5 = vpop.permute.xlu1 %2244  ;;  %v5702_v14 = vld [vmem:[%s10151_s9 + $0xe0] sm:$0xff]  ;;  %v5703_v27 = vld [vmem:[%s10151_s9 + $0xf0] sm:$0xff] }
 0x3f5   : > { %v7330_v3 = vpop.f32.mrf.mxu1  ;;  %2768 = vperm.xlu1 %5644, %v5702_v14   ;;  %2776 = vperm.xlu0 %5643, %v5703_v27   ;;  %v7368_v27 = vpop.permute.xlu2 %2248 }
 0x3f6   : > { %v1904_v24 = vmul.f32 %v7127_v50, %v1731_v23  ;;  %v2143_v22 = vrot.slane %v2071_v45, 1 }
 0x3f8   : > { %v7345_v1 = vadd.f32 %v1904_v24, %v1516_v12  ;;  %v2197_v50 = vsel %vm2170_vm4, %v2142_v53, %v2143_v22  ;;  %5263 = vmatmul.msk.bf16.gmra.mxu2 %vm605_vm0, %v10455_v18  ;;  %5307 = vmatmul.msk.bf16.gmra.mxu1 %vm605_vm0, %v10455_v18  ;;  %v10456_v12 = vld [vmem:[#allocation68_spill] sm:$0xff] }
 0x3f9   : > { %v2337_v42 = vmul.f32 %v2229_v2, %v2197_v50  ;;  %2760 = vperm.xlu2 %5642, %v5704_v46   ;;  %v7361_v45 = vpop.f32.mrf.mxu0  ;;  %v1517_v24 = vmul.f32 %v10456_v12, %v6981_v59 }
 0x3fb   : > { %v7357_v10 = vadd.f32 %v2337_v42, %v6783_v63  ;;  %v1732_v13 = vpop.f32.mrf.mxu3  ;;  %v1978_v8 = vpop.f32.mrf.mxu2  ;;  %v5705_v63 = vld [vmem:[%s10151_s9 + $0xf8] sm:$0xff] }
 0x3fc   : > { %v1733_v23 = vadd.f32 %v1732_v13, %v6947_v19  ;;  %v2074_v53 = vadd.f32 %v7203_v4, %v1978_v8  ;;  %v7379_v50 = vpop.permute.xlu1 %2256 }
 0x3fd   : > { %v7363_v6 = vpop.f32.mrf.mxu1  ;;  %2780 = vperm.xlu1 %5644, %v5705_v63  }
 0x3fe   : > { %v1905_v2 = vmul.f32 %v7212_v29, %v1733_v23  ;;  %v2144_v14 = vrot.slane %v2074_v53, 1  ;;  %v5706_v29 = vld [vmem:[%s10151_s9 + $0xe8] sm:$0xff] }
 0x400   : > { %v7373_v19 = vadd.f32 %v1905_v2, %v1517_v24  ;;  %v2196_v4 = vsel %vm2170_vm4, %v2143_v22, %v2144_v14  ;;  %5321 = vmatmul.msk.bf16.gmra.mxu3 %vm605_vm0, %v6878_v15  ;;  %v10460_v2 = vld [vmem:[#allocation45_spill] sm:$0xff] }
 0x401   : > { %v2338_v59 = vmul.f32 %v2233_v9, %v2196_v4  ;;  %2772 = vperm.xlu2 %5642, %v5706_v29   ;;  %v7389_v23 = vpop.f32.mrf.mxu0  ;;  %v10458_v9 = vld [vmem:[#allocation60_spill] sm:$0xff] }
 0x402   : > { %10457 = vst [vmem:[#allocation20_spill] sm:$0xff] %v7373_v19  ;;  %v1518_v53 = vmul.f32 %v10458_v9, %v7000_v51  ;;  %5286 = vmatmul.msk.bf16.gmra.mxu0 %vm605_vm0, %v6960_v44 }
 0x403   : > { %v7385_v42 = vadd.f32 %v2338_v59, %v6810_v11  ;;  %v1735_v46 = vpop.f32.mrf.mxu3  ;;  %v1980_v13 = vpop.f32.mrf.mxu2 }
 0x404   : > { %v1736_v8 = vadd.f32 %v1735_v46, %v6969_v58  ;;  %v2076_v22 = vadd.f32 %v7239_v57, %v1980_v13  ;;  %v7406_v57 = vpop.permute.xlu2 %2260  ;;  %v7408_v63 = vpop.permute.xlu1 %2268 }
 0x405   : > { %v7391_v15 = vpop.f32.mrf.mxu1  ;;  %v2241_v13 = vpop.permute.xlu0 %2240 }
 0x406   : > { %v1906_v12 = vmul.f32 %v7125_v31, %v1736_v8  ;;  %v2145_v24 = vrot.slane %v2076_v22, 1  ;;  %v10461_v8 = vld [vmem:[#allocation61_spill] sm:$0xff] }
 0x407   : > { %v1519_v22 = vmul.f32 %v10461_v8, %v7026_v47  ;;  %v10465_v8 = vld [vmem:[#allocation56_spill] sm:$0xff] }
 0x408   : > { %v7398_v11 = vadd.f32 %v1906_v12, %v1518_v53  ;;  %v2195_v58 = vsel %vm2170_vm4, %v2144_v14, %v2145_v24  ;;  %5264 = vmatmul.msk.bf16.gmra.mxu2 %vm605_vm0, %v10460_v2  ;;  %5308 = vmatmul.msk.bf16.gmra.mxu1 %vm605_vm0, %v10460_v2  ;;  %v10463_v12 = vld [vmem:[#allocation10_spill] sm:$0xff]  ;;  %v10472_v2 = vld [vmem:[#allocation65_spill] sm:$0xff] }
 0x409   : > { %v2339_v51 = vmul.f32 %v2237_v16, %v2195_v58  ;;  %v7415_v29 = vpop.f32.mrf.mxu0 }
 0x40a   : > { %10459 = vst [vmem:[#allocation27_spill] sm:$0xff] %v7398_v11  ;;  %v10480_v11 = vld [vmem:[#allocation14_spill] sm:$0xff] }
 0x40b   : > { %v7411_v31 = vadd.f32 %v2339_v51, %v6836_v25  ;;  %v1737_v44 = vpop.f32.mrf.mxu3  ;;  %v1983_v4 = vpop.f32.mrf.mxu2 }
 0x40c   : > { %v1738_v59 = vadd.f32 %v1737_v44, %v6994_v48  ;;  %v2079_v14 = vadd.f32 %v7268_v17, %v1983_v4  ;;  %v7428_v17 = vpop.permute.xlu2 %2272  ;;  %v10464_v44 = vld [vmem:[#allocation4_spill] sm:$0xff] }
 0x40d   : > { %v7417_v46 = vpop.f32.mrf.mxu1 }
 0x40e   : > { %v1907_v16 = vmul.f32 %v7172_v33, %v1738_v59  ;;  %v2146_v9 = vrot.slane %v2079_v14, 1  ;;  %v7435_v59 = vpop.permute.xlu1 %2280 }
 0x410   : > { %v7422_v53 = vadd.f32 %v1907_v16, %v1519_v22  ;;  %v2194_v25 = vsel %vm2170_vm4, %v2145_v24, %v2146_v9  ;;  %5322 = vmatmul.msk.bf16.gmra.mxu3 %vm605_vm0, %v10463_v12  ;;  %v10466_v22 = vld [vmem:[#allocation73_spill] sm:$0xff]  ;;  %v10467_v12 = vld [vmem:[#allocation38_spill] sm:$0xff] }
 0x411   : > { %v2340_v48 = vmul.f32 %v2241_v13, %v2194_v25  ;;  %v7437_v14 = vpop.f32.mrf.mxu0  ;;  %v1520_v13 = vmul.f32 %v10466_v22, %v10465_v8  ;;  %v10471_v8 = vld [vmem:[#allocation19_spill] sm:$0xff] }
 0x412   : > { %10462 = vst [vmem:[#allocation63_spill] sm:$0xff] %v7422_v53  ;;  %5287 = vmatmul.msk.bf16.gmra.mxu0 %vm605_vm0, %v10467_v12 }
 0x413   : > { %v1740_v58 = vpop.f32.mrf.mxu3  ;;  %v1985_v51 = vpop.f32.mrf.mxu2  ;;  %v7431_v4 = vadd.f32 %v2340_v48, %v10464_v44 }
 0x414   : > { %v1741_v47 = vadd.f32 %v1740_v58, %v7015_v32  ;;  %v2081_v33 = vadd.f32 %v7301_v55, %v1985_v51  ;;  %v2253_v48 = vpop.permute.xlu0 %2252  ;;  %v10469_v55 = vld [vmem:[#allocation51_spill] sm:$0xff] }
 0x415   : > { %v7439_v24 = vpop.f32.mrf.mxu1 }
 0x416   : > { %v1908_v16 = vmul.f32 %v7258_v30, %v1741_v47  ;;  %v2147_v25 = vrot.slane %v2081_v33, 1  ;;  %v10470_v47 = vld [vmem:[#allocation6_spill] sm:$0xff]  ;;  %v7469_v18 = vpop.permute.xlu1 %2292 }
 0x418   : > { %v7446_v44 = vadd.f32 %v1908_v16, %v1520_v13  ;;  %v2193_v32 = vsel %vm2170_vm4, %v2146_v9, %v2147_v25  ;;  %5265 = vmatmul.msk.bf16.gmra.mxu2 %vm605_vm0, %v10469_v55  ;;  %5309 = vmatmul.msk.bf16.gmra.mxu1 %vm605_vm0, %v10469_v55  ;;  %v7460_v16 = vpop.permute.xlu2 %2284  ;;  %v1521_v55 = vmul.f32 %v10472_v2, %v7091_v35  ;;  %v5606_v35 = vld [vmem:[%s10149_s7 + $0x28] sm:$0xff] }
 0x419   : > { %v2341_v58 = vmul.f32 %v7335_v5, %v2193_v32  ;;  %v7462_v9 = vpop.f32.mrf.mxu0  ;;  %3094 = vmatpush.bf16.msra.mxu1 %v5606_v35 }
 0x41a   : > { %10468 = vst [vmem:[#allocation48_spill] sm:$0xff] %v7446_v44 }
 0x41b   : > { %v1742_v51 = vpop.f32.mrf.mxu3  ;;  %v1988_v30 = vpop.f32.mrf.mxu2  ;;  %v7456_v33 = vadd.f32 %v2341_v58, %v10470_v47 }
 0x41c   : > { %v1743_v22 = vadd.f32 %v1742_v51, %v10471_v8  ;;  %v2084_v13 = vadd.f32 %v7328_v39, %v1988_v30  ;;  %v10474_v39 = vld [vmem:[#allocation9_spill] sm:$0xff]  ;;  %v7478_v47 = vpop.permute.xlu0 %2264 }
 0x41d   : > { %v7464_v12 = vpop.f32.mrf.mxu1 }
 0x41e   : > { %v1909_v5 = vmul.f32 %v7170_v7, %v1743_v22  ;;  %v2148_v32 = vrot.slane %v2084_v13, 1  ;;  %v10475_v7 = vld [vmem:[#allocation15_spill] sm:$0xff] }
 0x420   : > { %v7471_v58 = vadd.f32 %v1909_v5, %v1521_v55  ;;  %v2192_v51 = vsel %vm2170_vm4, %v2147_v25, %v2148_v32  ;;  %5323 = vmatmul.msk.bf16.gmra.mxu3 %vm605_vm0, %v10474_v39  ;;  %v10476_v55 = vld [vmem:[#allocation26_spill] sm:$0xff]  ;;  %v7495_v53 = vpop.permute.xlu2 %2296 }
 0x421   : > { %v2342_v30 = vmul.f32 %v7368_v27, %v2192_v51  ;;  %v7488_v13 = vpop.f32.mrf.mxu0  ;;  %v10477_v27 = vld [vmem:[#allocation17_spill] sm:$0xff]  ;;  %v10478_v51 = vld [vmem:[#allocation35_spill] sm:$0xff] }
 0x422   : > { %10473 = vst [vmem:[#allocation69_spill] sm:$0xff] %v7471_v58  ;;  %v1490_v39 = vmul.f32 %v10478_v51, %v10477_v27  ;;  %5360 = vmatmul.msk.bf16.vlgmr.msra.gmra.mxu0 %vm605_vm0, %v10480_v11 }
 0x423   : > { %v1745_v8 = vpop.f32.mrf.mxu3  ;;  %v1990_v61 = vpop.f32.mrf.mxu2  ;;  %v7484_v2 = vadd.f32 %v2342_v30, %v10475_v7 }
 0x424   : > { %v1746_v22 = vadd.f32 %v1745_v8, %v10476_v55  ;;  %v2086_v25 = vadd.f32 %v7361_v45, %v1990_v61  ;;  %v10482_v45 = vld [vmem:[#allocation59_spill] sm:$0xff]  ;;  %v7507_v8 = vpop.permute.xlu1 %2304  ;;  %v7512_v11 = vpop.permute.xlu0 %2276 }
 0x425   : > { %v7490_v5 = vpop.f32.mrf.mxu1  ;;  %v10483_v55 = vld [vmem:[#allocation7_spill] sm:$0xff] }
 0x426   : > { %v1878_v58 = vmul.f32 %v10479_v60, %v1746_v22  ;;  %v2149_v44 = vrot.slane %v2086_v25, 1 }
 0x428   : > { %v7499_v30 = vadd.f32 %v1878_v58, %v1490_v39  ;;  %v2191_v61 = vsel %vm2170_vm4, %v2148_v32, %v2149_v44  ;;  %5266 = vmatmul.msk.bf16.gmra.mxu2 %vm605_vm0, %v10482_v45  ;;  %5310 = vmatmul.msk.bf16.gmra.mxu1 %vm605_vm0, %v10482_v45  ;;  %v10484_v58 = vld [vmem:[#allocation39_spill] sm:$0xff]  ;;  %v10485_v39 = vld [vmem:[#allocation37_spill] sm:$0xff] }
 0x429   : > { %v2343_v60 = vmul.f32 %v2253_v48, %v2191_v61  ;;  %v7516_v27 = vpop.f32.mrf.mxu0  ;;  %v1491_v45 = vmul.f32 %v10485_v39, %v7153_v26  ;;  %v10490_v39 = vld [vmem:[#allocation13_spill] sm:$0xff] }
 0x42a   : > { %10481 = vst [vmem:[#allocation42_spill] sm:$0xff] %v7499_v30  ;;  %v10486_v30 = vld [vmem:[#allocation74_spill] sm:$0xff] }
 0x42b   : > { %v1747_v35 = vpop.f32.mrf.mxu3  ;;  %v1993_v7 = vpop.f32.mrf.mxu2  ;;  %v7510_v22 = vadd.f32 %v2343_v60, %v10483_v55  ;;  %v10488_v55 = vld [vmem:[#allocation11_spill] sm:$0xff] }
 0x42c   : > { %v1748_v25 = vadd.f32 %v1747_v35, %v10484_v58  ;;  %v2089_v32 = vadd.f32 %v7389_v23, %v1993_v7  ;;  %v7529_v23 = vpop.permute.xlu2 %2308  ;;  %v7532_v7 = vpop.permute.xlu1 %2316 }
 0x42d   : > { %v7518_v51 = vpop.f32.mrf.mxu1  ;;  %10489 = vst [vmem:[#allocation52_spill] sm:$0xff] %v7532_v7 }
 0x42e   : > { %v1879_v48 = vmul.f32 %v10486_v30, %v1748_v25  ;;  %v2150_v61 = vrot.slane %v2089_v32, 1 }
 0x430   : > { %v7523_v19 = vadd.f32 %v1879_v48, %v1491_v45  ;;  %v2190_v60 = vsel %vm2170_vm4, %v2149_v44, %v2150_v61  ;;  %5324 = vmatmul.msk.bf16.gmra.mxu3 %vm605_vm0, %v10488_v55  ;;  %v7542_v44 = vpop.permute.xlu0 %2288  ;;  %v7545_v55 = vld [vmem:[%s5903_s18 + $0x8] sm:$0xff] }
 0x431   : > { %v2344_v35 = vmul.f32 %v7379_v50, %v2190_v60  ;;  %v7538_v25 = vpop.f32.mrf.mxu0  ;;  %10493 = vst [vmem:[#allocation30_spill] sm:$0xff] %v7545_v55  ;;  %v10494_v60 = vld [vmem:[#allocation70_spill] sm:$0xff] }
 0x432   : > { %10487 = vst [vmem:[#allocation43_spill] sm:$0xff] %v7523_v19  ;;  %5361 = vmatmul.msk.bf16.gmra.mxu0 %vm605_vm0, %v7545_v55  ;;  %v10497_v19 = vld [vmem:[#allocation21_spill] sm:$0xff] }
 0x433   : > { %v1995_v58 = vpop.f32.mrf.mxu2  ;;  %v2511_v26 = vpop.f32.mrf.mxu3  ;;  %v7535_v30 = vadd.f32 %v2344_v35, %v10490_v39 }
 0x434   : > { %v2091_v45 = vadd.f32 %v7415_v29, %v1995_v58  ;;  %v7557_v35 = vadd.f32 %v2511_v26, %v7138_v28  ;;  %v7559_v58 = vpop.permute.xlu2 %2320 }
 0x435   : > { %10491 = vst [vmem:[#allocation46_spill] sm:$0xff] %v7535_v30  ;;  %v7540_v32 = vpop.f32.mrf.mxu1 }
 0x436   : > { %10492 = vst [vmem:[#allocation71_spill] sm:$0xff] %v7540_v32  ;;  %v2151_v48 = vrot.slane %v2091_v45, 1  ;;  %v7566_v32 = vpop.permute.xlu1 %2328  ;;  %v10232_v28 = vrot.slane %v7557_v35, 7 }
 0x437   : > { %10495 = vst [vmem:[#allocation67_spill] sm:$0xff] %v7557_v35 }
 0x438   : > { %v2189_v50 = vsel %vm2170_vm4, %v2150_v61, %v2151_v48  ;;  %5267 = vmatmul.msk.bf16.gmra.mxu2 %vm605_vm0, %v10494_v60  ;;  %5311 = vmatmul.msk.bf16.gmra.mxu1 %vm605_vm0, %v10494_v60  ;;  %10496 = vst [vmem:[#allocation47_spill] sm:$0xff] %v7559_v58 }
 0x439   : > { %v2345_v29 = vmul.f32 %v7406_v57, %v2189_v50  ;;  %10499 = vst [vmem:[#allocation72_spill] sm:$0xff] %v7566_v32  ;;  %v7568_v30 = vpop.f32.mrf.mxu0  ;;  %v7573_v50 = vpop.permute.xlu0 %2300 }
 0x43b   : > { %v1998_v39 = vpop.f32.mrf.mxu2  ;;  %v2513_v45 = vpop.f32.mrf.mxu3  ;;  %v7562_v55 = vadd.f32 %v2345_v29, %v10497_v19 }
 0x43c   : > { %v2094_v61 = vadd.f32 %v7437_v14, %v1998_v39  ;;  %v2514_v7 = vadd.f32 %v2513_v45, %v7182_v52  ;;  %v10502_v14 = vld [vmem:[#allocation22_spill] sm:$0xff]  ;;  %v7591_v58 = vpop.permute.xlu2 %2656 }
 0x43d   : > { %10498 = vst [vmem:[#allocation32_spill] sm:$0xff] %v7562_v55  ;;  %v7570_v60 = vpop.f32.mrf.mxu1  ;;  %v7598_v55 = vld [vmem:[%s5903_s18 + $0x10] sm:$0xff] }
 0x43e   : > { %10500 = vst [vmem:[#allocation33_spill] sm:$0xff] %v7570_v60  ;;  %v2152_v57 = vrot.slane %v2094_v61, 1  ;;  %v2592_v26 = vrot.slane %v2514_v7, 7  ;;  %v10503_v7 = vld [vmem:[#allocation16_spill] sm:$0xff] }
 0x43f   : > { %10504 = vst [vmem:[#allocation49_spill] sm:$0xff] %v7591_v58 }
 0x440   : > { %v2188_v19 = vsel %vm2170_vm4, %v2151_v48, %v2152_v57  ;;  %v7581_v52 = vsel %vm1265_vm3, %v10232_v28, %v2592_v26  ;;  %5325 = vmatmul.msk.bf16.gmra.mxu3 %vm605_vm0, %v10502_v14  ;;  %v2665_v14 = vpop.permute.xlu1 %2664  ;;  %10505 = vst [vmem:[#allocation50_spill] sm:$0xff] %v7598_v55 }
 0x441   : > { %10501 = vst [vmem:[#allocation57_spill] sm:$0xff] %v7581_v52  ;;  %v2346_v29 = vmul.f32 %v7478_v47, %v2188_v19  ;;  %v7593_v35 = vpop.f32.mrf.mxu0 }
 0x442   : > { %5362 = vmatmul.msk.bf16.gmra.mxu0 %vm605_vm0, %v7598_v55 }
 0x443   : > { %v2000_v39 = vpop.f32.mrf.mxu2  ;;  %v2516_v45 = vpop.f32.mrf.mxu3  ;;  %v7587_v61 = vadd.f32 %v2346_v29, %v10503_v7  ;;  %v10508_v7 = vld [vmem:[#allocation23_spill] sm:$0xff] }
 0x444   : > { %v2096_v32 = vadd.f32 %v7462_v9, %v2000_v39  ;;  %v2517_v48 = vadd.f32 %v2516_v45, %v7205_v56  ;;  %v10506_v9 = vld [vmem:[#allocation2_spill] sm:$0xff]  ;;  %v7611_v29 = vpop.permute.xlu0 %2312 }
 0x445   : > { %v7595_v28 = vpop.f32.mrf.mxu1 }
 0x446   : > { %v2153_v52 = vrot.slane %v2096_v32, 1  ;;  %v2593_v60 = vrot.slane %v2517_v48, 7 }
 0x448   : > { %v2187_v47 = vsel %vm2170_vm4, %v2152_v57, %v2153_v52  ;;  %v2652_v56 = vsel %vm1265_vm3, %v2592_v26, %v2593_v60  ;;  %5340 = vmatmul.msk.bf16.vlgmr.msra.gmra.mxu2 %vm605_vm0, %v10506_v9  ;;  %5384 = vmatmul.msk.bf16.vlgmr.msra.gmra.mxu1 %vm605_vm0, %v10506_v9  ;;  %v7630_v9 = vld [vmem:[%s5903_s18 + $0x50] sm:$0xff] }
 0x449   : > { %v2785_v32 = vmul.f32 %v2665_v14, %v2652_v56  ;;  %v2347_v19 = vmul.f32 %v7408_v63, %v2187_v47  ;;  %v7621_v55 = vpop.f32.mrf.mxu0  ;;  %v2669_v47 = vpop.permute.xlu2 %2668  ;;  %10509 = vst [vmem:[#allocation53_spill] sm:$0xff] %v7630_v9 }
 0x44b   : > { %v7614_v39 = vadd.f32 %v2785_v32, %v7235_v49  ;;  %v2003_v45 = vpop.f32.mrf.mxu2  ;;  %v2518_v57 = vpop.f32.mrf.mxu3  ;;  %v7617_v48 = vadd.f32 %v2347_v19, %v10508_v7 }
 0x44c   : > { %v2099_v26 = vadd.f32 %v7488_v13, %v2003_v45  ;;  %v2519_v58 = vadd.f32 %v2518_v57, %v7241_v20  ;;  %v10511_v57 = vld [vmem:[#allocation44_spill] sm:$0xff] }
 0x44d   : > { %10507 = vst [vmem:[#allocation62_spill] sm:$0xff] %v7614_v39  ;;  %v7623_v14 = vpop.f32.mrf.mxu1 }
 0x44e   : > { %v2154_v56 = vrot.slane %v2099_v26, 1  ;;  %v2594_v63 = vrot.slane %v2519_v58, 7 }
 0x450   : > { %v2186_v49 = vsel %vm2170_vm4, %v2153_v52, %v2154_v56  ;;  %v2651_v32 = vsel %vm1265_vm3, %v2593_v60, %v2594_v63  ;;  %5326 = vmatmul.msk.bf16.gmra.mxu3 %vm605_vm0, %v7630_v9  ;;  %v7641_v52 = vpop.permute.xlu0 %2324 }
 0x451   : > { %v2786_v20 = vmul.f32 %v2669_v47, %v2651_v32  ;;  %v2348_v13 = vmul.f32 %v7428_v17, %v2186_v49  ;;  %v7645_v39 = vpop.f32.mrf.mxu0  ;;  %v2673_v49 = vpop.permute.xlu1 %2672 }
 0x453   : > { %v7636_v19 = vadd.f32 %v2786_v20, %v7264_v0  ;;  %v2005_v58 = vpop.f32.mrf.mxu2  ;;  %v2521_v45 = vpop.f32.mrf.mxu3  ;;  %v7639_v7 = vadd.f32 %v2348_v13, %v10511_v57  ;;  %v7650_v0 = vld [vmem:[%s5903_s18 + $0x18] sm:$0xff]  ;;  %v10513_v20 = vld [vmem:[#allocation3_spill] sm:$0xff] }
 0x454   : > { %v2101_v60 = vadd.f32 %v7516_v27, %v2005_v58  ;;  %v2522_v26 = vadd.f32 %v2521_v45, %v7270_v37  ;;  %10512 = vst [vmem:[#allocation68_spill] sm:$0xff] %v7650_v0  ;;  %5363 = vmatmul.msk.bf16.gmra.mxu0 %vm605_vm0, %v7650_v0 }
 0x455   : > { %10510 = vst [vmem:[#allocation54_spill] sm:$0xff] %v7636_v19  ;;  %v7647_v9 = vpop.f32.mrf.mxu1 }
 0x456   : > { %v2155_v47 = vrot.slane %v2101_v60, 1  ;;  %v2595_v17 = vrot.slane %v2522_v26, 7  ;;  %v10515_v60 = vld [vmem:[#allocation55_spill] sm:$0xff] }
 0x458   : > { %v2185_v32 = vsel %vm2170_vm4, %v2154_v56, %v2155_v47  ;;  %v2650_v27 = vsel %vm1265_vm3, %v2594_v63, %v2595_v17  ;;  %5341 = vmatmul.msk.bf16.gmra.mxu2 %vm605_vm0, %v10513_v20  ;;  %5385 = vmatmul.msk.bf16.gmra.mxu1 %vm605_vm0, %v10513_v20  ;;  %v5608_v56 = vld [vmem:[%s10149_s7 + $0x30] sm:$0xff]  ;;  %v5605_v63 = vld [vmem:[%s10148_s6 + $0x28] sm:$0xff] }
 0x459   : > { %v2787_v37 = vmul.f32 %v2673_v49, %v2650_v27  ;;  %v2349_v13 = vmul.f32 %v7512_v11, %v2185_v32  ;;  %3546 = vmatpush.bf16.msrb.mxu2 %v5608_v56  ;;  %3189 = vmatpush.bf16.msrb.mxu3 %v5605_v63  ;;  %v7681_v27 = vpop.permute.xlu0 %2660 }
 0x45b   : > { %v7664_v58 = vadd.f32 %v2787_v37, %v7297_v21  ;;  %v2008_v45 = vpop.f32.mrf.mxu2  ;;  %v2523_v57 = vpop.f32.mrf.mxu3  ;;  %v7673_v26 = vadd.f32 %v2349_v13, %v10515_v60 }
 0x45c   : > { %v2104_v49 = vadd.f32 %v7538_v25, %v2008_v45  ;;  %v2524_v11 = vadd.f32 %v2523_v57, %v7303_v62  ;;  %v7677_v21 = vpop.f32.mrf.mxu0  ;;  %v7688_v25 = vld [vmem:[%s5903_s18 + $0x58] sm:$0xff]  ;;  %v5607_v62 = vld [vmem:[%s10148_s6 + $0x30] sm:$0xff] }
 0x45d   : > { %10514 = vst [vmem:[#allocation60_spill] sm:$0xff] %v7664_v58  ;;  %v7679_v32 = vpop.f32.mrf.mxu1  ;;  %v2677_v58 = vpop.permute.xlu2 %2676  ;;  %3641 = vmatpush.bf16.msrb.mxu0 %v5607_v62  ;;  %v10519_v62 = vld [vmem:[#allocation5_spill] sm:$0xff] }
 0x45e   : > { %v2156_v37 = vrot.slane %v2104_v49, 1  ;;  %v2596_v20 = vrot.slane %v2524_v11, 7  ;;  %10516 = vst [vmem:[#allocation61_spill] sm:$0xff] %v7688_v25 }
 0x460   : > { %v2184_v19 = vsel %vm2170_vm4, %v2155_v47, %v2156_v37  ;;  %v2649_v13 = vsel %vm1265_vm3, %v2595_v17, %v2596_v20  ;;  %5327 = vmatmul.msk.bf16.gmra.mxu3 %vm605_vm0, %v7688_v25  ;;  %v10518_v17 = vld [vmem:[#allocation28_spill] sm:$0xff] }
 0x461   : > { %v2788_v45 = vmul.f32 %v2677_v58, %v2649_v13  ;;  %v2350_v57 = vmul.f32 %v7435_v59, %v2184_v19  ;;  %v2681_v59 = vpop.permute.xlu0 %2680  ;;  %v7709_v19 = vld [vmem:[%s5903_s18 + $0x20] sm:$0xff] }
 0x463   : > { %v7697_v56 = vadd.f32 %v2788_v45, %v7324_v43  ;;  %v2010_v47 = vpop.f32.mrf.mxu2  ;;  %v2526_v63 = vpop.f32.mrf.mxu3  ;;  %v7700_v60 = vadd.f32 %v2350_v57, %v10518_v17  ;;  %v10520_v17 = vld [vmem:[#allocation25_spill] sm:$0xff] }
 0x464   : > { %v2106_v49 = vadd.f32 %v7568_v30, %v2010_v47  ;;  %v2527_v11 = vadd.f32 %v2526_v63, %v7330_v3  ;;  %v7704_v0 = vpop.f32.mrf.mxu0  ;;  %5364 = vmatmul.msk.bf16.gmra.mxu0 %vm605_vm0, %v7709_v19 }
 0x465   : > { %10517 = vst [vmem:[#allocation10_spill] sm:$0xff] %v7697_v56  ;;  %v7706_v25 = vpop.f32.mrf.mxu1 }
 0x466   : > { %v2157_v58 = vrot.slane %v2106_v49, 1  ;;  %v2597_v13 = vrot.slane %v2527_v11, 7 }
 0x468   : > { %v2183_v43 = vsel %vm2170_vm4, %v2156_v37, %v2157_v58  ;;  %v2648_v30 = vsel %vm1265_vm3, %v2596_v20, %v2597_v13  ;;  %5342 = vmatmul.msk.bf16.gmra.mxu2 %vm605_vm0, %v10519_v62  ;;  %5386 = vmatmul.msk.bf16.gmra.mxu1 %vm605_vm0, %v10519_v62 }
 0x469   : > { %v2789_v3 = vmul.f32 %v2681_v59, %v2648_v30  ;;  %v2351_v45 = vmul.f32 %v7460_v16, %v2183_v43  ;;  %v2685_v30 = vpop.permute.xlu1 %2684  ;;  %v7739_v43 = vld [vmem:[%s5903_s18 + $0x60] sm:$0xff] }
 0x46b   : > { %v7723_v57 = vadd.f32 %v2789_v3, %v7357_v10  ;;  %v2013_v47 = vpop.f32.mrf.mxu2  ;;  %v2528_v63 = vpop.f32.mrf.mxu3  ;;  %v7726_v37 = vadd.f32 %v2351_v45, %v10520_v17 }
 0x46c   : > { %v2109_v20 = vadd.f32 %v7593_v35, %v2013_v47  ;;  %v2529_v49 = vadd.f32 %v2528_v63, %v7363_v6  ;;  %v7730_v11 = vpop.f32.mrf.mxu0 }
 0x46d   : > { %v7732_v56 = vpop.f32.mrf.mxu1 }
 0x46e   : > { %v2158_v62 = vrot.slane %v2109_v20, 1  ;;  %v2598_v59 = vrot.slane %v2529_v49, 7 }
 0x470   : > { %v2182_v10 = vsel %vm2170_vm4, %v2157_v58, %v2158_v62  ;;  %v2647_v16 = vsel %vm1265_vm3, %v2597_v13, %v2598_v59  ;;  %5328 = vmatmul.msk.bf16.gmra.mxu3 %vm605_vm0, %v7739_v43 }
 0x471   : > { %v2790_v6 = vmul.f32 %v2685_v30, %v2647_v16  ;;  %v2352_v35 = vmul.f32 %v7542_v44, %v2182_v10  ;;  %v2689_v16 = vpop.permute.xlu2 %2688  ;;  %v7757_v44 = vld [vmem:[%s5903_s18 + $0x28] sm:$0xff] }
 0x473   : > { %v7745_v3 = vadd.f32 %v2790_v6, %v7385_v42  ;;  %v2015_v45 = vpop.f32.mrf.mxu2  ;;  %v2531_v47 = vpop.f32.mrf.mxu3  ;;  %v7748_v63 = vadd.f32 %v2352_v35, %v7192_v40 }
 0x474   : > { %v2111_v58 = vadd.f32 %v7621_v55, %v2015_v45  ;;  %v2532_v13 = vadd.f32 %v2531_v47, %v7391_v15  ;;  %v7752_v17 = vpop.f32.mrf.mxu0  ;;  %5365 = vmatmul.msk.bf16.gmra.mxu0 %vm605_vm0, %v7757_v44  ;;  %v10521_v55 = vld [vmem:[#allocation8_spill] sm:$0xff] }
 0x475   : > { %v7754_v20 = vpop.f32.mrf.mxu1 }
 0x476   : > { %v2159_v49 = vrot.slane %v2111_v58, 1  ;;  %v2599_v30 = vrot.slane %v2532_v13, 7 }
 0x478   : > { %v2181_v40 = vsel %vm2170_vm4, %v2158_v62, %v2159_v49  ;;  %v2646_v42 = vsel %vm1265_vm3, %v2598_v59, %v2599_v30  ;;  %5343 = vmatmul.msk.bf16.gmra.mxu2 %vm605_vm0, %v10521_v55  ;;  %5387 = vmatmul.msk.bf16.gmra.mxu1 %vm605_vm0, %v10521_v55 }
 0x479   : > { %v2791_v15 = vmul.f32 %v2689_v16, %v2646_v42  ;;  %v2353_v10 = vmul.f32 %v7469_v18, %v2181_v40  ;;  %v2693_v42 = vpop.permute.xlu0 %2692 }
 0x47b   : > { %v7771_v6 = vadd.f32 %v2791_v15, %v7411_v31  ;;  %v2018_v35 = vpop.f32.mrf.mxu2  ;;  %v2533_v45 = vpop.f32.mrf.mxu3  ;;  %v7774_v62 = vadd.f32 %v2353_v10, %v7222_v41  ;;  %v7787_v41 = vld [vmem:[%s5903_s18 + $0x68] sm:$0xff] }
 0x47c   : > { %v2114_v59 = vadd.f32 %v7645_v39, %v2018_v35  ;;  %v2534_v47 = vadd.f32 %v2533_v45, %v7417_v46  ;;  %v7778_v58 = vpop.f32.mrf.mxu0 }
 0x47d   : > { %10522 = vst [vmem:[#allocation4_spill] sm:$0xff] %v7771_v6  ;;  %v7780_v13 = vpop.f32.mrf.mxu1 }
 0x47e   : > { %v2160_v55 = vrot.slane %v2114_v59, 1  ;;  %v2600_v16 = vrot.slane %v2534_v47, 7 }
 0x480   : > { %v2180_v18 = vsel %vm2170_vm4, %v2159_v49, %v2160_v55  ;;  %v2645_v31 = vsel %vm1265_vm3, %v2599_v30, %v2600_v16  ;;  %5329 = vmatmul.msk.bf16.gmra.mxu3 %vm605_vm0, %v7787_v41 }
 0x481   : > { %v2792_v46 = vmul.f32 %v2693_v42, %v2645_v31  ;;  %v2354_v39 = vmul.f32 %v7495_v53, %v2180_v18  ;;  %v2697_v31 = vpop.permute.xlu1 %2696  ;;  %v7805_v53 = vld [vmem:[%s5903_s18 + $0x30] sm:$0xff] }
 0x482   : > { %10524 = vst [vmem:[#allocation73_spill] sm:$0xff] %v7805_v53 }
 0x483   : > { %v7793_v40 = vadd.f32 %v2792_v46, %v7431_v4  ;;  %v2020_v15 = vpop.f32.mrf.mxu2  ;;  %v2536_v10 = vpop.f32.mrf.mxu3  ;;  %v7796_v35 = vadd.f32 %v2354_v39, %v7252_v54 }
 0x484   : > { %v2116_v49 = vadd.f32 %v7677_v21, %v2020_v15  ;;  %v2537_v30 = vadd.f32 %v2536_v10, %v7439_v24  ;;  %v7800_v45 = vpop.f32.mrf.mxu0  ;;  %5366 = vmatmul.msk.bf16.gmra.mxu0 %vm605_vm0, %v7805_v53  ;;  %v10525_v21 = vld [vmem:[#allocation12_spill] sm:$0xff] }
 0x485   : > { %10523 = vst [vmem:[#allocation56_spill] sm:$0xff] %v7793_v40  ;;  %v7802_v59 = vpop.f32.mrf.mxu1 }
 0x486   : > { %v2161_v47 = vrot.slane %v2116_v49, 1  ;;  %v2601_v42 = vrot.slane %v2537_v30, 7 }
 0x488   : > { %v2179_v54 = vsel %vm2170_vm4, %v2160_v55, %v2161_v47  ;;  %v2644_v4 = vsel %vm1265_vm3, %v2600_v16, %v2601_v42  ;;  %5344 = vmatmul.msk.bf16.gmra.mxu2 %vm605_vm0, %v10525_v21  ;;  %5388 = vmatmul.msk.bf16.gmra.mxu1 %vm605_vm0, %v10525_v21 }
 0x489   : > { %v2793_v24 = vmul.f32 %v2697_v31, %v2644_v4  ;;  %v2355_v18 = vmul.f32 %v7573_v50, %v2179_v54  ;;  %v2701_v4 = vpop.permute.xlu2 %2700 }
 0x48b   : > { %v7819_v46 = vadd.f32 %v2793_v24, %v7456_v33  ;;  %v2023_v39 = vpop.f32.mrf.mxu2  ;;  %v2538_v15 = vpop.f32.mrf.mxu3  ;;  %v7822_v55 = vadd.f32 %v2355_v18, %v7283_v34  ;;  %v7835_v34 = vld [vmem:[%s5903_s18 + $0x70] sm:$0xff] }
 0x48c   : > { %v2119_v16 = vadd.f32 %v7704_v0, %v2023_v39  ;;  %v2539_v10 = vadd.f32 %v2538_v15, %v7464_v12  ;;  %v7826_v49 = vpop.f32.mrf.mxu0 }
 0x48d   : > { %10526 = vst [vmem:[#allocation38_spill] sm:$0xff] %v7819_v46  ;;  %v7828_v30 = vpop.f32.mrf.mxu1 }
 0x48e   : > { %v2162_v21 = vrot.slane %v2119_v16, 1  ;;  %v2602_v31 = vrot.slane %v2539_v10, 7 }
 0x490   : > { %v2178_v33 = vsel %vm2170_vm4, %v2161_v47, %v2162_v21  ;;  %v2643_v50 = vsel %vm1265_vm3, %v2601_v42, %v2602_v31  ;;  %5330 = vmatmul.msk.bf16.gmra.mxu3 %vm605_vm0, %v7835_v34 }
 0x491   : > { %v2794_v12 = vmul.f32 %v2701_v4, %v2643_v50  ;;  %v2356_v0 = vmul.f32 %v7507_v8, %v2178_v33  ;;  %v2705_v50 = vpop.permute.xlu0 %2704  ;;  %v7853_v8 = vld [vmem:[%s5903_s18 + $0x38] sm:$0xff] }
 0x492   : > { %10528 = vst [vmem:[#allocation19_spill] sm:$0xff] %v7853_v8 }
 0x493   : > { %v7841_v54 = vadd.f32 %v2794_v12, %v7484_v2  ;;  %v2025_v24 = vpop.f32.mrf.mxu2  ;;  %v2541_v18 = vpop.f32.mrf.mxu3  ;;  %v7844_v39 = vadd.f32 %v2356_v0, %v7314_v38 }
 0x494   : > { %v2121_v47 = vadd.f32 %v7730_v11, %v2025_v24  ;;  %v2542_v42 = vadd.f32 %v2541_v18, %v7490_v5  ;;  %v7848_v15 = vpop.f32.mrf.mxu0  ;;  %5367 = vmatmul.msk.bf16.gmra.mxu0 %vm605_vm0, %v7853_v8  ;;  %v10529_v11 = vld [vmem:[#allocation18_spill] sm:$0xff] }
 0x495   : > { %10527 = vst [vmem:[#allocation6_spill] sm:$0xff] %v7841_v54  ;;  %v7850_v16 = vpop.f32.mrf.mxu1 }
 0x496   : > { %v2163_v10 = vrot.slane %v2121_v47, 1  ;;  %v2603_v4 = vrot.slane %v2542_v42, 7  ;;  %v5830_v47 = vmov 5  }
 0x497   : > { %5647 = vset.pattern.permute.xlu1 %v5830_v47  ;;  %5646 = vset.pattern.permute.xlu0 %v5830_v47 }
 0x498   : > { %v2177_v38 = vsel %vm2170_vm4, %v2162_v21, %v2163_v10  ;;  %v2642_v2 = vsel %vm1265_vm3, %v2602_v31, %v2603_v4  ;;  %5345 = vmatmul.msk.bf16.gmra.mxu2 %vm605_vm0, %v10529_v11  ;;  %5389 = vmatmul.msk.bf16.gmra.mxu1 %vm605_vm0, %v10529_v11 }
 0x499   : > { %v2795_v5 = vmul.f32 %v2705_v50, %v2642_v2  ;;  %v2357_v33 = vmul.f32 %v7529_v23, %v2177_v38  ;;  %5645 = vset.pattern.permute.xlu2 %v5830_v47  ;;  %v7893_v38 = vld [vmem:[%s10151_s9] sm:$0xff] }
 0x49a   : > { %3336 = vperm.xlu2 %5645, %v7893_v38  }
 0x49b   : > { %v7867_v12 = vadd.f32 %v2795_v5, %v7510_v22  ;;  %v2028_v0 = vpop.f32.mrf.mxu2  ;;  %v2543_v24 = vpop.f32.mrf.mxu3  ;;  %v7870_v18 = vadd.f32 %v2357_v33, %v7345_v1  ;;  %v7881_v22 = vld [vmem:[%s10151_s9 + $0x10] sm:$0xff]  ;;  %v7887_v1 = vld [vmem:[%s10151_s9 + $0x8] sm:$0xff]  ;;  %v7901_v33 = vld [vmem:[%s5903_s18 + $0x78] sm:$0xff] }
 0x49c   : > { %v2124_v21 = vadd.f32 %v7752_v17, %v2028_v0  ;;  %v2544_v31 = vadd.f32 %v2543_v24, %v7518_v51  ;;  %v7874_v42 = vpop.f32.mrf.mxu0  ;;  %3344 = vperm.xlu1 %5647, %v7881_v22   ;;  %3340 = vperm.xlu0 %5646, %v7887_v1   ;;  %v2709_v17 = vpop.permute.xlu1 %2708  ;;  %10533 = vst [vmem:[#allocation26_spill] sm:$0xff] %v7901_v33 }
 0x49d   : > { %10530 = vst [vmem:[#allocation65_spill] sm:$0xff] %v7867_v12  ;;  %v7876_v50 = vpop.f32.mrf.mxu1  ;;  %v10536_v12 = vld [vmem:[#allocation20_spill] sm:$0xff] }
 0x49e   : > { %10531 = vst [vmem:[#allocation9_spill] sm:$0xff] %v7870_v18  ;;  %v2164_v51 = vrot.slane %v2124_v21, 1  ;;  %v2604_v23 = vrot.slane %v2544_v31, 7  ;;  %v10534_v21 = vld [vmem:[#allocation46_spill] sm:$0xff] }
 0x49f   : > { %10532 = vst [vmem:[#allocation15_spill] sm:$0xff] %v7876_v50 }
 0x4a0   : > { %v2176_v2 = vsel %vm2170_vm4, %v2163_v10, %v2164_v51  ;;  %v2641_v5 = vsel %vm1265_vm3, %v2603_v4, %v2604_v23  ;;  %5331 = vmatmul.msk.bf16.gmra.mxu3 %vm605_vm0, %v7901_v33  ;;  %v10538_v4 = vld [vmem:[#allocation71_spill] sm:$0xff] }
 0x4a1   : > { %v2796_v0 = vmul.f32 %v2709_v17, %v2641_v5  ;;  %v2358_v24 = vmul.f32 %v7611_v29, %v2176_v2  ;;  %v7921_v29 = vld [vmem:[%s10151_s9 + $0x20] sm:$0xff]  ;;  %v2713_v17 = vpop.permute.xlu2 %2712  ;;  %v7938_v5 = vld [vmem:[%s10151_s9 + $0x18] sm:$0xff] }
 0x4a2   : > { %v7931_v2 = vld [vmem:[%s5903_s18 + $0x40] sm:$0xff]  ;;  %3348 = vperm.xlu2 %5645, %v7938_v5  }
 0x4a3   : > { %v7907_v31 = vadd.f32 %v2796_v0, %v10534_v21  ;;  %v2030_v47 = vpop.f32.mrf.mxu2  ;;  %v2546_v11 = vpop.f32.mrf.mxu3  ;;  %v7910_v54 = vadd.f32 %v2358_v24, %v10536_v12  ;;  %v7927_v12 = vld [vmem:[%s10151_s9 + $0x30] sm:$0xff]  ;;  %10540 = vst [vmem:[#allocation14_spill] sm:$0xff] %v7931_v2 }
 0x4a4   : > { %v2126_v10 = vadd.f32 %v7778_v58, %v2030_v47  ;;  %v2547_v8 = vadd.f32 %v2546_v11, %v10538_v4  ;;  %v7914_v46 = vpop.f32.mrf.mxu0  ;;  %3352 = vperm.xlu1 %5647, %v7921_v29   ;;  %3360 = vperm.xlu0 %5646, %v7927_v12   ;;  %v10542_v47 = vld [vmem:[#allocation52_spill] sm:$0xff] }
 0x4a5   : > { %10535 = vst [vmem:[#allocation17_spill] sm:$0xff] %v7907_v31  ;;  %v7916_v40 = vpop.f32.mrf.mxu1  ;;  %5368 = vmatmul.msk.bf16.gmra.mxu0 %vm605_vm0, %v7931_v2  ;;  %v10543_v4 = vld [vmem:[#allocation32_spill] sm:$0xff] }
 0x4a6   : > { %10537 = vst [vmem:[#allocation35_spill] sm:$0xff] %v7910_v54  ;;  %v2165_v58 = vrot.slane %v2126_v10, 1  ;;  %v2605_v11 = vrot.slane %v2547_v8, 7  ;;  %v10541_v8 = vld [vmem:[#allocation24_spill] sm:$0xff] }
 0x4a7   : > { %10539 = vst [vmem:[#allocation66_spill] sm:$0xff] %v7916_v40  ;;  %v10545_v40 = vld [vmem:[#allocation27_spill] sm:$0xff] }
 0x4a8   : > { %v2175_v0 = vsel %vm2170_vm4, %v2164_v51, %v2165_v58  ;;  %v2640_v24 = vsel %vm1265_vm3, %v2604_v23, %v2605_v11  ;;  %5346 = vmatmul.msk.bf16.gmra.mxu2 %vm605_vm0, %v10541_v8  ;;  %5390 = vmatmul.msk.bf16.gmra.mxu1 %vm605_vm0, %v10541_v8  ;;  %v10547_v23 = vld [vmem:[#allocation33_spill] sm:$0xff] }
 0x4a9   : > { %v2797_v21 = vmul.f32 %v2713_v17, %v2640_v24  ;;  %v2359_v10 = vmul.f32 %v10542_v47, %v2175_v0  ;;  %v7965_v17 = vld [vmem:[%s10151_s9 + $0x38] sm:$0xff]  ;;  %v7977_v0 = vld [vmem:[%s10151_s9 + $0x28] sm:$0xff]  ;;  %v7985_v47 = vld [vmem:[%s5903_s18] sm:$0xff] }
 0x4aa   : > { %3356 = vperm.xlu2 %5645, %v7977_v0   ;;  %10549 = vst [vmem:[#allocation74_spill] sm:$0xff] %v7985_v47 }
 0x4ab   : > { %v7951_v31 = vadd.f32 %v2797_v21, %v10543_v4  ;;  %v2033_v2 = vpop.f32.mrf.mxu2  ;;  %v2548_v33 = vpop.f32.mrf.mxu3  ;;  %v7954_v54 = vadd.f32 %v2359_v10, %v10545_v40  ;;  %v7971_v40 = vld [vmem:[%s10151_s9 + $0x48] sm:$0xff] }
 0x4ac   : > { %v2129_v51 = vadd.f32 %v7800_v45, %v2033_v2  ;;  %v2549_v53 = vadd.f32 %v2548_v33, %v10547_v23  ;;  %v7958_v6 = vpop.f32.mrf.mxu0  ;;  %3364 = vperm.xlu1 %5647, %v7965_v17   ;;  %3372 = vperm.xlu0 %5646, %v7971_v40   ;;  %v2717_v2 = vpop.permute.xlu0 %2716  ;;  %v10550_v10 = vld [vmem:[#allocation47_spill] sm:$0xff] }
 0x4ad   : > { %10544 = vst [vmem:[#allocation7_spill] sm:$0xff] %v7951_v31  ;;  %v7960_v50 = vpop.f32.mrf.mxu1  ;;  %v10552_v31 = vld [vmem:[#allocation63_spill] sm:$0xff] }
 0x4ae   : > { %10546 = vst [vmem:[#allocation39_spill] sm:$0xff] %v7954_v54  ;;  %v2166_v45 = vrot.slane %v2129_v51, 1  ;;  %v2606_v33 = vrot.slane %v2549_v53, 7 }
 0x4af   : > { %10548 = vst [vmem:[#allocation37_spill] sm:$0xff] %v7960_v50 }
 0x4b0   : > { %v2174_v24 = vsel %vm2170_vm4, %v2165_v58, %v2166_v45  ;;  %v2639_v21 = vsel %vm1265_vm3, %v2605_v11, %v2606_v33  ;;  %5404 = vmatmul.msk.bf16.vlgmr.msrb.gmra.mxu3 %vm605_vm0, %v7985_v47 }
 0x4b1   : > { %v2798_v53 = vmul.f32 %v2717_v2, %v2639_v21  ;;  %v2360_v4 = vmul.f32 %v10550_v10, %v2174_v24  ;;  %v8005_v2 = vld [vmem:[%s10151_s9 + $0x50] sm:$0xff]  ;;  %v8022_v24 = vld [vmem:[%s10151_s9 + $0x40] sm:$0xff]  ;;  %v10556_v10 = vld [vmem:[#allocation29_spill] sm:$0xff] }
 0x4b2   : > { %3368 = vperm.xlu2 %5645, %v8022_v24  }
 0x4b3   : > { %v7991_v51 = vadd.f32 %v2798_v53, %v7587_v61  ;;  %v2035_v23 = vpop.f32.mrf.mxu2  ;;  %v2551_v8 = vpop.f32.mrf.mxu3  ;;  %v7994_v50 = vadd.f32 %v2360_v4, %v10552_v31  ;;  %v8011_v61 = vld [vmem:[%s10151_s9 + $0x60] sm:$0xff] }
 0x4b4   : > { %v2131_v58 = vadd.f32 %v7826_v49, %v2035_v23  ;;  %v2552_v11 = vadd.f32 %v2551_v8, %v7595_v28  ;;  %v7998_v54 = vpop.f32.mrf.mxu0  ;;  %3376 = vperm.xlu1 %5647, %v8005_v2   ;;  %3384 = vperm.xlu0 %5646, %v8011_v61   ;;  %v2721_v31 = vpop.permute.xlu1 %2720  ;;  %v8015_v8 = vld [vmem:[%s5903_s18 + $0x48] sm:$0xff] }
 0x4b5   : > { %10551 = vst [vmem:[#allocation11_spill] sm:$0xff] %v7991_v51  ;;  %v8000_v18 = vpop.f32.mrf.mxu1  ;;  %5369 = vmatmul.msk.bf16.gmra.mxu0 %vm605_vm0, %v8015_v8 }
 0x4b6   : > { %10553 = vst [vmem:[#allocation13_spill] sm:$0xff] %v7994_v50  ;;  %v2167_v49 = vrot.slane %v2131_v58, 1  ;;  %v2607_v28 = vrot.slane %v2552_v11, 7 }
 0x4b7   : > { %10554 = vst [vmem:[#allocation21_spill] sm:$0xff] %v8000_v18 }
 0x4b8   : > { %10555 = vst [vmem:[#allocation22_spill] sm:$0xff] %v8015_v8  ;;  %v2173_v21 = vsel %vm2170_vm4, %v2166_v45, %v2167_v49  ;;  %v2638_v53 = vsel %vm1265_vm3, %v2606_v33, %v2607_v28  ;;  %5347 = vmatmul.msk.bf16.gmra.mxu2 %vm605_vm0, %v10556_v10  ;;  %5391 = vmatmul.msk.bf16.gmra.mxu1 %vm605_vm0, %v10556_v10  ;;  %v10558_v8 = vld [vmem:[#allocation48_spill] sm:$0xff] }
 0x4b9   : > { %v2799_v4 = vmul.f32 %v2721_v31, %v2638_v53  ;;  %v2361_v23 = vmul.f32 %v7641_v52, %v2173_v21  ;;  %v8049_v52 = vld [vmem:[%s10151_s9 + $0x68] sm:$0xff]  ;;  %v8061_v31 = vld [vmem:[%s10151_s9 + $0x58] sm:$0xff]  ;;  %v10563_v53 = vld [vmem:[#allocation30_spill] sm:$0xff] }
 0x4ba   : > { %10562 = vst [vmem:[#allocation28_spill] sm:$0xff] %v8061_v31  ;;  %3380 = vperm.xlu2 %5645, %v8061_v31  }
 0x4bb   : > { %v8035_v58 = vadd.f32 %v2799_v4, %v7617_v48  ;;  %v2038_v11 = vpop.f32.mrf.mxu2  ;;  %v2553_v51 = vpop.f32.mrf.mxu3  ;;  %v8038_v47 = vadd.f32 %v2361_v23, %v10558_v8  ;;  %v8055_v48 = vld [vmem:[%s10151_s9 + $0x78] sm:$0xff]  ;;  %v10564_v4 = vld [vmem:[#allocation72_spill] sm:$0xff] }
 0x4bc   : > { %v2134_v45 = vadd.f32 %v7848_v15, %v2038_v11  ;;  %v2554_v33 = vadd.f32 %v2553_v51, %v7623_v14  ;;  %v8042_v18 = vpop.f32.mrf.mxu0  ;;  %3388 = vperm.xlu1 %5647, %v8049_v52   ;;  %10561 = vst [vmem:[#allocation55_spill] sm:$0xff] %v8055_v48  ;;  %3396 = vperm.xlu0 %5646, %v8055_v48   ;;  %v2725_v51 = vpop.permute.xlu2 %2724 }
 0x4bd   : > { %10557 = vst [vmem:[#allocation16_spill] sm:$0xff] %v8035_v58  ;;  %v8044_v50 = vpop.f32.mrf.mxu1  ;;  %v10566_v58 = vld [vmem:[#allocation69_spill] sm:$0xff] }
 0x4be   : > { %10559 = vst [vmem:[#allocation23_spill] sm:$0xff] %v8038_v47  ;;  %v2168_v15 = vrot.slane %v2134_v45, 1  ;;  %v2608_v14 = vrot.slane %v2554_v33, 7 }
 0x4bf   : > { %10560 = vst [vmem:[#allocation44_spill] sm:$0xff] %v8044_v50 }
 0x4c0   : > { %v2172_v8 = vsel %vm2170_vm4, %v2167_v49, %v2168_v15  ;;  %v2637_v21 = vsel %vm1265_vm3, %v2607_v28, %v2608_v14  ;;  %5405 = vmatmul.msk.bf16.gmra.mxu3 %vm605_vm0, %v10563_v53  ;;  %v10573_v53 = vld [vmem:[#allocation58_spill] sm:$0xff] }
 0x4c1   : > { %v2362_v23 = vmul.f32 %v10564_v4, %v2172_v8  ;;  %v2800_v11 = vmul.f32 %v2725_v51, %v2637_v21  ;;  %v8086_v51 = vld [vmem:[%s10151_s9 + $0x80] sm:$0xff]  ;;  %v8100_v8 = vld [vmem:[%s10151_s9 + $0x70] sm:$0xff]  ;;  %v10574_v4 = vrot.slane %v10573_v53, 1 }
 0x4c2   : > { %10569 = vst [vmem:[#allocation71_spill] sm:$0xff] %v8086_v51  ;;  %3392 = vperm.xlu2 %5645, %v8100_v8  }
 0x4c3   : > { %v8072_v45 = vadd.f32 %v2800_v11, %v7639_v7  ;;  %v2040_v33 = vpop.f32.mrf.mxu2  ;;  %v2556_v10 = vpop.f32.mrf.mxu3  ;;  %v8075_v50 = vadd.f32 %v2362_v23, %v10566_v58  ;;  %v8092_v7 = vld [vmem:[%s10151_s9 + $0x90] sm:$0xff]  ;;  %v10571_v58 = vld [vmem:[#allocation53_spill] sm:$0xff]  ;;  %10572 = vst [vmem:[#allocation32_spill] sm:$0xff] %v8100_v8  ;;  %v10575_v11 = vld [vmem:[#allocation31_spill] sm:$0xff] }
 0x4c4   : > { %v2136_v47 = vadd.f32 %v7874_v42, %v2040_v33  ;;  %v2557_v49 = vadd.f32 %v2556_v10, %v7647_v9  ;;  %v8079_v31 = vpop.f32.mrf.mxu0  ;;  %3400 = vperm.xlu1 %5647, %v8086_v51   ;;  %10570 = vst [vmem:[#allocation52_spill] sm:$0xff] %v8092_v7  ;;  %3408 = vperm.xlu0 %5646, %v8092_v7   ;;  %v2729_v10 = vpop.permute.xlu0 %2728  ;;  %v10576_v33 = vld [vmem:[#allocation64_spill] sm:$0xff]  ;;  %v10581_v7 = vld [vmem:[#allocation42_spill] sm:$0xff] }
 0x4c5   : > { %10565 = vst [vmem:[#allocation25_spill] sm:$0xff] %v8072_v45  ;;  %v8081_v28 = vpop.f32.mrf.mxu1  ;;  %5370 = vmatmul.msk.bf16.gmra.mxu0 %vm605_vm0, %v10571_v58  ;;  %v10577_v58 = vld [vmem:[#allocation40_spill] sm:$0xff] }
 0x4c6   : > { %10567 = vst [vmem:[#allocation46_spill] sm:$0xff] %v8075_v50  ;;  %v2169_v42 = vrot.slane %v2136_v47, 1  ;;  %v2609_v9 = vrot.slane %v2557_v49, 7 }
 0x4c7   : > { %10568 = vst [vmem:[#allocation20_spill] sm:$0xff] %v8081_v28 }
 0x4c8   : > { %v2171_v21 = vsel %vm2170_vm4, %v2168_v15, %v2169_v42  ;;  %v2202_v47 = vsel %vm2170_vm4, %v2169_v42, %v10574_v4  ;;  %v2636_v23 = vsel %vm1265_vm3, %v2608_v14, %v2609_v9  ;;  %5348 = vmatmul.msk.bf16.gmra.mxu2 %vm605_vm0, %v10575_v11  ;;  %5392 = vmatmul.msk.bf16.gmra.mxu1 %vm605_vm0, %v10575_v11  ;;  %v10578_v15 = vld [vmem:[#allocation57_spill] sm:$0xff]  ;;  %v10580_v14 = vld [vmem:[#allocation43_spill] sm:$0xff] }
 0x4c9   : > { %v2331_v49 = vmul.f32 %v10576_v33, %v2171_v21  ;;  %v2332_v45 = vmul.f32 %v10577_v58, %v2202_v47  ;;  %v2801_v28 = vmul.f32 %v2729_v10, %v2636_v23  ;;  %v2784_v53 = vmul.f32 %v7681_v27, %v10578_v15 }
 0x4cb   : > { %v8120_v50 = vadd.f32 %v2801_v28, %v7673_v26  ;;  %v2558_v42 = vpop.f32.mrf.mxu3  ;;  %v2868_v4 = vpop.f32.mrf.mxu2  ;;  %v2364_v8 = vadd.f32 %v2332_v45, %v10580_v14  ;;  %v8124_v51 = vadd.f32 %v2331_v49, %v10581_v7  ;;  %v8137_v26 = vld [vmem:[%s10151_s9 + $0x98] sm:$0xff]  ;;  %v8143_v45 = vld [vmem:[%s10151_s9 + $0xa8] sm:$0xff] }
 0x4cc   : > { %v2559_v11 = vadd.f32 %v2558_v42, %v7679_v32  ;;  %v8128_v21 = vadd.f32 %v7914_v46, %v2868_v4  ;;  %v8130_v47 = vpop.f32.mrf.mxu0  ;;  %10582 = vst [vmem:[#allocation33_spill] sm:$0xff] %v8137_v26  ;;  %3412 = vperm.xlu1 %5647, %v8137_v26   ;;  %3420 = vperm.xlu0 %5646, %v8143_v45   ;;  %v2733_v46 = vpop.permute.xlu1 %2732  ;;  %v8149_v28 = vld [vmem:[%s10151_s9 + $0x88] sm:$0xff]  ;;  %v10587_v14 = vld [vmem:[#allocation61_spill] sm:$0xff] }
 0x4cd   : > { %10579 = vst [vmem:[#allocation27_spill] sm:$0xff] %v8120_v50  ;;  %v8132_v10 = vpop.f32.mrf.mxu1  ;;  %v2816_v27 = vadd.f32 %v2784_v53, %v2364_v8  ;;  %3404 = vperm.xlu2 %5645, %v8149_v28   ;;  %v10584_v8 = vld [vmem:[#allocation50_spill] sm:$0xff]  ;;  %v2737_v4 = vpop.permute.xlu2 %2736 }
 0x4ce   : > { %10583 = vst [vmem:[#allocation47_spill] sm:$0xff] %v8143_v45  ;;  %v2610_v32 = vrot.slane %v2559_v11, 7 }
 0x4d0   : > { %v2635_v7 = vsel %vm1265_vm3, %v2609_v9, %v2610_v32  ;;  %5406 = vmatmul.msk.bf16.gmra.mxu3 %vm605_vm0, %v10584_v8  ;;  %v8168_v9 = vld [vmem:[%s10151_s9 + $0xb0] sm:$0xff]  ;;  %v10588_v8 = vld [vmem:[#allocation34_spill] sm:$0xff] }
 0x4d1   : > { %v2802_v23 = vmul.f32 %v2733_v46, %v2635_v7  ;;  %v8184_v46 = vld [vmem:[%s10151_s9 + $0xa0] sm:$0xff] }
 0x4d3   : > { %v8157_v33 = vadd.f32 %v2802_v23, %v7700_v60  ;;  %v2561_v49 = vpop.f32.mrf.mxu3  ;;  %v2870_v11 = vpop.f32.mrf.mxu2  ;;  %v8174_v60 = vld [vmem:[%s10151_s9 + $0xc0] sm:$0xff] }
 0x4d4   : > { %v2562_v58 = vadd.f32 %v2561_v49, %v7706_v25  ;;  %v2966_v15 = vadd.f32 %v7958_v6, %v2870_v11  ;;  %v8161_v53 = vpop.f32.mrf.mxu0  ;;  %3424 = vperm.xlu1 %5647, %v8168_v9   ;;  %3432 = vperm.xlu0 %5646, %v8174_v60  }
 0x4d5   : > { %10585 = vst [vmem:[#allocation63_spill] sm:$0xff] %v8157_v33  ;;  %v8163_v42 = vpop.f32.mrf.mxu1  ;;  %5371 = vmatmul.msk.bf16.gmra.mxu0 %vm605_vm0, %v10587_v14  ;;  %3416 = vperm.xlu2 %5645, %v8184_v46  }
 0x4d6   : > { %v2611_v25 = vrot.slane %v2562_v58, 7  ;;  %v8177_v6 = vadd.f32 %v2966_v15, %v2816_v27 }
 0x4d8   : > { %10586 = vst [vmem:[#allocation48_spill] sm:$0xff] %v8177_v6  ;;  %v2634_v7 = vsel %vm1265_vm3, %v2610_v32, %v2611_v25  ;;  %5349 = vmatmul.msk.bf16.gmra.mxu2 %vm605_vm0, %v10588_v8  ;;  %5393 = vmatmul.msk.bf16.gmra.mxu1 %vm605_vm0, %v10588_v8  ;;  %v8205_v32 = vld [vmem:[%s10151_s9 + $0xc8] sm:$0xff]  ;;  %v10607_v6 = vld [vmem:[#allocation10_spill] sm:$0xff] }
 0x4d9   : > { %v2803_v27 = vmul.f32 %v2737_v4, %v2634_v7  ;;  %v2741_v7 = vpop.permute.xlu0 %2740 }
 0x4db   : > { %v8194_v23 = vadd.f32 %v2803_v27, %v7726_v37  ;;  %v2563_v49 = vpop.f32.mrf.mxu3  ;;  %v2873_v11 = vpop.f32.mrf.mxu2  ;;  %v8211_v37 = vld [vmem:[%s10151_s9 + $0xd8] sm:$0xff] }
 0x4dc   : > { %v2564_v58 = vadd.f32 %v2563_v49, %v7732_v56  ;;  %v2969_v15 = vadd.f32 %v7998_v54, %v2873_v11  ;;  %v8198_v14 = vpop.f32.mrf.mxu0  ;;  %3436 = vperm.xlu1 %5647, %v8205_v32   ;;  %3444 = vperm.xlu0 %5646, %v8211_v37   ;;  %v10591_v54 = vld [vmem:[#allocation62_spill] sm:$0xff]  ;;  %v8220_v27 = vld [vmem:[%s10151_s9 + $0xb8] sm:$0xff]  ;;  %v10593_v11 = vld [vmem:[#allocation68_spill] sm:$0xff] }
 0x4dd   : > { %10589 = vst [vmem:[#allocation30_spill] sm:$0xff] %v8194_v23  ;;  %v8200_v33 = vpop.f32.mrf.mxu1  ;;  %3428 = vperm.xlu2 %5645, %v8220_v27  }
 0x4de   : > { %10590 = vst [vmem:[#allocation72_spill] sm:$0xff] %v8200_v33  ;;  %v2612_v56 = vrot.slane %v2564_v58, 7  ;;  %v8215_v4 = vadd.f32 %v2969_v15, %v10591_v54 }
 0x4e0   : > { %10592 = vst [vmem:[#allocation69_spill] sm:$0xff] %v8215_v4  ;;  %v2633_v49 = vsel %vm1265_vm3, %v2611_v25, %v2612_v56  ;;  %5407 = vmatmul.msk.bf16.gmra.mxu3 %vm605_vm0, %v10593_v11  ;;  %v8239_v25 = vld [vmem:[%s10151_s9 + $0xe0] sm:$0xff] }
 0x4e1   : > { %v2804_v8 = vmul.f32 %v2741_v7, %v2633_v49  ;;  %10596 = vst [vmem:[#allocation64_spill] sm:$0xff] %v8239_v25  ;;  %v2745_v7 = vpop.permute.xlu1 %2744  ;;  %v8256_v49 = vld [vmem:[%s10151_s9 + $0xd0] sm:$0xff] }
 0x4e3   : > { %v8228_v58 = vadd.f32 %v2804_v8, %v7748_v63  ;;  %v2566_v15 = vpop.f32.mrf.mxu3  ;;  %v2875_v54 = vpop.f32.mrf.mxu2  ;;  %v8245_v63 = vld [vmem:[%s10151_s9 + $0xf0] sm:$0xff] }
 0x4e4   : > { %v2567_v23 = vadd.f32 %v2566_v15, %v7754_v20  ;;  %v2971_v50 = vadd.f32 %v8042_v18, %v2875_v54  ;;  %v8232_v4 = vpop.f32.mrf.mxu0  ;;  %3448 = vperm.xlu1 %5647, %v8239_v25   ;;  %10597 = vst [vmem:[#allocation40_spill] sm:$0xff] %v8245_v63  ;;  %3456 = vperm.xlu0 %5646, %v8245_v63   ;;  %v10598_v18 = vld [vmem:[#allocation54_spill] sm:$0xff]  ;;  %v10600_v15 = vld [vmem:[#allocation36_spill] sm:$0xff] }
 0x4e5   : > { %10594 = vst [vmem:[#allocation53_spill] sm:$0xff] %v8228_v58  ;;  %v8234_v33 = vpop.f32.mrf.mxu1  ;;  %5372 = vmatmul.msk.bf16.gmra.mxu0 %vm605_vm0, %v7739_v43  ;;  %3440 = vperm.xlu2 %5645, %v8256_v49  }
 0x4e6   : > { %10595 = vst [vmem:[#allocation58_spill] sm:$0xff] %v8234_v33  ;;  %v2613_v20 = vrot.slane %v2567_v23, 7  ;;  %v8249_v8 = vadd.f32 %v2971_v50, %v10598_v18 }
 0x4e8   : > { %10599 = vst [vmem:[#allocation57_spill] sm:$0xff] %v8249_v8  ;;  %v2632_v11 = vsel %vm1265_vm3, %v2612_v56, %v2613_v20  ;;  %5350 = vmatmul.msk.bf16.gmra.mxu2 %vm605_vm0, %v10600_v15  ;;  %5394 = vmatmul.msk.bf16.gmra.mxu1 %vm605_vm0, %v10600_v15  ;;  %v8277_v56 = vld [vmem:[%s10151_s9 + $0xf8] sm:$0xff] }
 0x4e9   : > { %v2805_v50 = vmul.f32 %v2745_v7, %v2632_v11 }
 0x4eb   : > { %v8266_v23 = vadd.f32 %v2805_v50, %v7774_v62  ;;  %v2568_v43 = vpop.f32.mrf.mxu3  ;;  %v2878_v54 = vpop.f32.mrf.mxu2  ;;  %v10603_v62 = vld [vmem:[#allocation60_spill] sm:$0xff] }
 0x4ec   : > { %v2569_v18 = vadd.f32 %v2568_v43, %v7780_v13  ;;  %v2974_v58 = vadd.f32 %v8079_v31, %v2878_v54  ;;  %v8270_v8 = vpop.f32.mrf.mxu0  ;;  %3460 = vperm.xlu1 %5647, %v8277_v56   ;;  %v2749_v50 = vpop.permute.xlu2 %2748  ;;  %v8286_v13 = vld [vmem:[%s10151_s9 + $0xe8] sm:$0xff] }
 0x4ed   : > { %10601 = vst [vmem:[#allocation43_spill] sm:$0xff] %v8266_v23  ;;  %v8272_v33 = vpop.f32.mrf.mxu1  ;;  %3452 = vperm.xlu2 %5645, %v8286_v13  }
 0x4ee   : > { %10602 = vst [vmem:[#allocation42_spill] sm:$0xff] %v8272_v33  ;;  %v2614_v7 = vrot.slane %v2569_v18, 7  ;;  %v8281_v11 = vadd.f32 %v2974_v58, %v10603_v62  ;;  %v5831_v33 = vmov 6  }
 0x4ef   : > { %10605 = vst [vmem:[#allocation61_spill] sm:$0xff] %v8286_v13  ;;  %5649 = vset.pattern.permute.xlu0 %v5831_v33 }
 0x4f0   : > { %10604 = vst [vmem:[#allocation50_spill] sm:$0xff] %v8281_v11  ;;  %v2631_v31 = vsel %vm1265_vm3, %v2613_v20, %v2614_v7  ;;  %5408 = vmatmul.msk.bf16.gmra.mxu3 %vm605_vm0, %v7709_v19  ;;  %3792 = vperm.xlu0 %5649, %v7887_v1  }
 0x4f1   : > { %v2806_v43 = vmul.f32 %v2749_v50, %v2631_v31  ;;  %v2753_v50 = vpop.permute.xlu0 %2752 }
 0x4f3   : > { %v8294_v54 = vadd.f32 %v2806_v43, %v7796_v35  ;;  %v2571_v58 = vpop.f32.mrf.mxu3  ;;  %v2880_v18 = vpop.f32.mrf.mxu2 }
 0x4f4   : > { %v2572_v62 = vadd.f32 %v2571_v58, %v7802_v59  ;;  %v2976_v15 = vadd.f32 %v8130_v47, %v2880_v18  ;;  %v8298_v23 = vpop.f32.mrf.mxu0  ;;  %5650 = vset.pattern.permute.xlu1 %v5831_v33  ;;  %v2757_v35 = vpop.permute.xlu1 %2756  ;;  %v10608_v47 = vld [vmem:[#allocation41_spill] sm:$0xff] }
 0x4f5   : > { %10606 = vst [vmem:[#allocation62_spill] sm:$0xff] %v8294_v54  ;;  %v8300_v11 = vpop.f32.mrf.mxu1  ;;  %3796 = vperm.xlu1 %5650, %v7881_v22   ;;  %5373 = vmatmul.msk.bf16.gmra.mxu0 %vm605_vm0, %v7787_v41 }
 0x4f6   : > { %v2615_v20 = vrot.slane %v2572_v62, 7  ;;  %v8303_v19 = vadd.f32 %v2976_v15, %v10607_v6  ;;  %5648 = vset.pattern.permute.xlu2 %v5831_v33 }
 0x4f7   : > { %3788 = vperm.xlu2 %5648, %v7893_v38  }
 0x4f8   : > { %v2630_v59 = vsel %vm1265_vm3, %v2614_v7, %v2615_v20  ;;  %5351 = vmatmul.msk.bf16.gmra.mxu2 %vm605_vm0, %v10608_v47  ;;  %5395 = vmatmul.msk.bf16.gmra.mxu1 %vm605_vm0, %v10608_v47 }
 0x4f9   : > { %v2807_v6 = vmul.f32 %v2753_v50, %v2630_v59  ;;  %3812 = vperm.xlu0 %5649, %v7927_v12  }
 0x4fb   : > { %v8317_v15 = vadd.f32 %v2807_v6, %v7822_v55  ;;  %v2573_v31 = vpop.f32.mrf.mxu3  ;;  %v2883_v41 = vpop.f32.mrf.mxu2 }
 0x4fc   : > { %v2574_v43 = vadd.f32 %v2573_v31, %v7828_v30  ;;  %v2979_v33 = vadd.f32 %v8161_v53, %v2883_v41  ;;  %v8321_v58 = vpop.f32.mrf.mxu0  ;;  %v2769_v50 = vpop.permute.xlu1 %2768 }
 0x4fd   : > { %10609 = vst [vmem:[#allocation68_spill] sm:$0xff] %v8317_v15  ;;  %v8323_v7 = vpop.f32.mrf.mxu1  ;;  %3804 = vperm.xlu1 %5650, %v7921_v29  }
 0x4fe   : > { %v2616_v18 = vrot.slane %v2574_v43, 7  ;;  %v8326_v62 = vadd.f32 %v2979_v33, %v7723_v57 }
 0x4ff   : > { %3800 = vperm.xlu2 %5648, %v7938_v5  }
 0x500   : > { %v2629_v55 = vsel %vm1265_vm3, %v2615_v20, %v2616_v18  ;;  %5409 = vmatmul.msk.bf16.gmra.mxu3 %vm605_vm0, %v7757_v44  ;;  %v2761_v44 = vpop.permute.xlu2 %2760 }
 0x501   : > { %v2808_v30 = vmul.f32 %v2757_v35, %v2629_v55  ;;  %3824 = vperm.xlu0 %5649, %v7971_v40  }
 0x503   : > { %v8336_v53 = vadd.f32 %v2808_v30, %v7844_v39  ;;  %v2576_v59 = vpop.f32.mrf.mxu3  ;;  %v2885_v57 = vpop.f32.mrf.mxu2 }
 0x504   : > { %v2577_v6 = vadd.f32 %v2576_v59, %v7850_v16  ;;  %v2981_v31 = vadd.f32 %v8198_v14, %v2885_v57  ;;  %v8340_v41 = vpop.f32.mrf.mxu0  ;;  %v8348_v35 = vpop.permute.xlu1 %2780  ;;  %v10611_v16 = vld [vmem:[#allocation45_spill] sm:$0xff] }
 0x505   : > { %10610 = vst [vmem:[#allocation54_spill] sm:$0xff] %v8336_v53  ;;  %v8342_v43 = vpop.f32.mrf.mxu1  ;;  %3816 = vperm.xlu1 %5650, %v7965_v17   ;;  %5374 = vmatmul.msk.bf16.gmra.mxu0 %vm605_vm0, %v7835_v34  ;;  %v10612_v14 = vld [vmem:[#allocation9_spill] sm:$0xff]  ;;  %v10614_v34 = vld [vmem:[#allocation15_spill] sm:$0xff]  ;;  %v10615_v53 = vld [vmem:[#allocation4_spill] sm:$0xff] }
 0x506   : > { %v2617_v20 = vrot.slane %v2577_v6, 7  ;;  %v8345_v33 = vadd.f32 %v2981_v31, %v7745_v3 }
 0x507   : > { %3808 = vperm.xlu2 %5648, %v7977_v0  }
 0x508   : > { %v2628_v39 = vsel %vm1265_vm3, %v2616_v18, %v2617_v20  ;;  %5352 = vmatmul.msk.bf16.gmra.mxu2 %vm605_vm0, %v10611_v16  ;;  %5396 = vmatmul.msk.bf16.gmra.mxu1 %vm605_vm0, %v10611_v16 }
 0x509   : > { %v2809_v3 = vmul.f32 %v2761_v44, %v2628_v39  ;;  %v2765_v44 = vpop.permute.xlu0 %2764  ;;  %3836 = vperm.xlu0 %5649, %v8011_v61  }
 0x50b   : > { %v8361_v55 = vadd.f32 %v2809_v3, %v10612_v14  ;;  %v2578_v30 = vpop.f32.mrf.mxu3  ;;  %v2888_v59 = vpop.f32.mrf.mxu2  ;;  %v10617_v3 = vld [vmem:[#allocation73_spill] sm:$0xff] }
 0x50c   : > { %v2579_v57 = vadd.f32 %v2578_v30, %v10614_v34  ;;  %v2984_v6 = vadd.f32 %v8232_v4, %v2888_v59  ;;  %v8365_v31 = vpop.f32.mrf.mxu0  ;;  %v10618_v30 = vld [vmem:[#allocation35_spill] sm:$0xff] }
 0x50d   : > { %10613 = vst [vmem:[#allocation60_spill] sm:$0xff] %v8361_v55  ;;  %v8367_v18 = vpop.f32.mrf.mxu1  ;;  %3828 = vperm.xlu1 %5650, %v8005_v2  }
 0x50e   : > { %v2618_v47 = vrot.slane %v2579_v57, 7  ;;  %v8370_v15 = vadd.f32 %v2984_v6, %v10615_v53  ;;  %v8378_v4 = vpop.permute.xlu1 %3344  ;;  %v10620_v57 = vld [vmem:[#allocation66_spill] sm:$0xff] }
 0x50f   : > { %3820 = vperm.xlu2 %5648, %v8022_v24  }
 0x510   : > { %10616 = vst [vmem:[#allocation10_spill] sm:$0xff] %v8370_v15  ;;  %v2627_v39 = vsel %vm1265_vm3, %v2617_v20, %v2618_v47  ;;  %5410 = vmatmul.msk.bf16.gmra.mxu3 %vm605_vm0, %v10617_v3  ;;  %v10622_v3 = vld [vmem:[#allocation56_spill] sm:$0xff] }
 0x511   : > { %v2810_v14 = vmul.f32 %v2765_v44, %v2627_v39  ;;  %v10624_v44 = vld [vmem:[#allocation26_spill] sm:$0xff]  ;;  %3848 = vperm.xlu0 %5649, %v8055_v48  }
 0x513   : > { %v8382_v59 = vadd.f32 %v2810_v14, %v10618_v30  ;;  %v2581_v53 = vpop.f32.mrf.mxu3  ;;  %v2890_v34 = vpop.f32.mrf.mxu2  ;;  %v10625_v14 = vld [vmem:[#allocation51_spill] sm:$0xff]  ;;  %v10626_v30 = vld [vmem:[#allocation28_spill] sm:$0xff] }
 0x514   : > { %v2582_v6 = vadd.f32 %v2581_v53, %v10620_v57  ;;  %v2986_v16 = vadd.f32 %v8270_v8, %v2890_v34  ;;  %v8386_v55 = vpop.f32.mrf.mxu0  ;;  %v10627_v53 = vld [vmem:[#allocation39_spill] sm:$0xff] }
 0x515   : > { %10619 = vst [vmem:[#allocation9_spill] sm:$0xff] %v8382_v59  ;;  %v8388_v20 = vpop.f32.mrf.mxu1  ;;  %3840 = vperm.xlu1 %5650, %v8049_v52   ;;  %5375 = vmatmul.msk.bf16.gmra.mxu0 %vm605_vm0, %v10624_v44 }
 0x516   : > { %10621 = vst [vmem:[#allocation15_spill] sm:$0xff] %v8388_v20  ;;  %v2619_v54 = vrot.slane %v2582_v6, 7  ;;  %v8391_v15 = vadd.f32 %v2986_v16, %v10622_v3  ;;  %v8403_v8 = vpop.permute.xlu1 %3352  ;;  %v10629_v3 = vld [vmem:[#allocation37_spill] sm:$0xff]  ;;  %v10630_v20 = vld [vmem:[#allocation38_spill] sm:$0xff] }
 0x517   : > { %3832 = vperm.xlu2 %5648, %v10626_v30   ;;  %v10634_v30 = vld [vmem:[#allocation52_spill] sm:$0xff] }
 0x518   : > { %10623 = vst [vmem:[#allocation4_spill] sm:$0xff] %v8391_v15  ;;  %v2626_v39 = vsel %vm1265_vm3, %v2618_v47, %v2619_v54  ;;  %5353 = vmatmul.msk.bf16.gmra.mxu2 %vm605_vm0, %v10625_v14  ;;  %5397 = vmatmul.msk.bf16.gmra.mxu1 %vm605_vm0, %v10625_v14 }
 0x519   : > { %v2811_v16 = vmul.f32 %v2769_v50, %v2626_v39  ;;  %v2773_v50 = vpop.permute.xlu2 %2772  ;;  %v10633_v39 = vld [vmem:[#allocation71_spill] sm:$0xff]  ;;  %3860 = vperm.xlu0 %5649, %v10634_v30  }
 0x51b   : > { %v8407_v34 = vadd.f32 %v2811_v16, %v10627_v53  ;;  %v2583_v57 = vpop.f32.mrf.mxu3  ;;  %v2893_v6 = vpop.f32.mrf.mxu2  ;;  %v10635_v53 = vld [vmem:[#allocation19_spill] sm:$0xff] }
 0x51c   : > { %v2584_v44 = vadd.f32 %v2583_v57, %v10629_v3  ;;  %v2989_v47 = vadd.f32 %v8298_v23, %v2893_v6  ;;  %v8411_v59 = vpop.f32.mrf.mxu0  ;;  %v10636_v6 = vld [vmem:[#allocation32_spill] sm:$0xff] }
 0x51d   : > { %10628 = vst [vmem:[#allocation73_spill] sm:$0xff] %v8407_v34  ;;  %v8416_v14 = vpop.f32.mrf.mxu1  ;;  %3852 = vperm.xlu1 %5650, %v10633_v39   ;;  %v5610_v34 = vld [vmem:[%s10149_s7 + $0x38] sm:$0xff] }
 0x51e   : > { %v2620_v15 = vrot.slane %v2584_v44, 7  ;;  %v8414_v48 = vadd.f32 %v2989_v47, %v10630_v20  ;;  %10632 = vst [vmem:[#allocation66_spill] sm:$0xff] %v8416_v14  ;;  %v8424_v23 = vpop.permute.xlu1 %3364  ;;  %v10637_v20 = vld [vmem:[#allocation13_spill] sm:$0xff]  ;;  %3998 = vmatpush.bf16.msrb.mxu1 %v5610_v34 }
 0x51f   : > { %3844 = vperm.xlu2 %5648, %v10636_v6  }
 0x520   : > { %10631 = vst [vmem:[#allocation35_spill] sm:$0xff] %v8414_v48  ;;  %v2625_v16 = vsel %vm1265_vm3, %v2619_v54, %v2620_v15  ;;  %5411 = vmatmul.msk.bf16.gmra.mxu3 %vm605_vm0, %v10635_v53  ;;  %v10639_v48 = vld [vmem:[#allocation21_spill] sm:$0xff]  ;;  %v2777_v53 = vpop.permute.xlu0 %2776 }
 0x521   : > { %v2812_v57 = vmul.f32 %v2773_v50, %v2625_v16  ;;  %v10640_v16 = vld [vmem:[#allocation6_spill] sm:$0xff]  ;;  %3872 = vperm.xlu0 %5649, %v8143_v45  }
 0x523   : > { %v8428_v3 = vadd.f32 %v2812_v57, %v10637_v20  ;;  %v2586_v44 = vpop.f32.mrf.mxu3  ;;  %v2895_v47 = vpop.f32.mrf.mxu2  ;;  %v10642_v57 = vld [vmem:[#allocation74_spill] sm:$0xff] }
 0x524   : > { %v2587_v14 = vadd.f32 %v2586_v44, %v10639_v48  ;;  %v2991_v54 = vadd.f32 %v8321_v58, %v2895_v47  ;;  %v8435_v30 = vpop.f32.mrf.mxu0  ;;  %v10644_v58 = vld [vmem:[#allocation59_spill] sm:$0xff] }
 0x525   : > { %10638 = vst [vmem:[#allocation56_spill] sm:$0xff] %v8428_v3  ;;  %3864 = vperm.xlu1 %5650, %v8137_v26   ;;  %5448 = vmatmul.msk.bf16.vlgmr.msrb.gmra.mxu0 %vm605_vm0, %v10642_v57  ;;  %v8444_v20 = vpop.f32.mrf.mxu1  ;;  %v10645_v44 = vld [vmem:[#allocation23_spill] sm:$0xff]  ;;  %v10647_v57 = vld [vmem:[#allocation44_spill] sm:$0xff] }
 0x526   : > { %v2621_v50 = vrot.slane %v2587_v14, 7  ;;  %v8438_v6 = vadd.f32 %v2991_v54, %v10640_v16  ;;  %10643 = vst [vmem:[#allocation39_spill] sm:$0xff] %v8444_v20  ;;  %v8452_v14 = vpop.permute.xlu1 %3376 }
 0x527   : > { %3856 = vperm.xlu2 %5648, %v8149_v28  }
 0x528   : > { %10641 = vst [vmem:[#allocation26_spill] sm:$0xff] %v8438_v6  ;;  %v2624_v48 = vsel %vm1265_vm3, %v2620_v15, %v2621_v50  ;;  %5354 = vmatmul.msk.bf16.gmra.mxu2 %vm605_vm0, %v10644_v58  ;;  %5398 = vmatmul.msk.bf16.gmra.mxu1 %vm605_vm0, %v10644_v58  ;;  %v8462_v20 = vpop.permute.xlu0 %3340  ;;  %v10648_v58 = vld [vmem:[#allocation65_spill] sm:$0xff] }
 0x529   : > { %v2813_v34 = vmul.f32 %v2777_v53, %v2624_v48  ;;  %3884 = vperm.xlu0 %5649, %v8174_v60   ;;  %v10649_v48 = vld [vmem:[#allocation67_spill] sm:$0xff] }
 0x52b   : > { %v8456_v47 = vadd.f32 %v2813_v34, %v10645_v44  ;;  %v2588_v54 = vpop.f32.mrf.mxu3  ;;  %v2898_v16 = vpop.f32.mrf.mxu2  ;;  %v10650_v34 = vrot.slane %v10649_v48, 7  ;;  %v10651_v44 = vld [vmem:[#allocation14_spill] sm:$0xff] }
 0x52c   : > { %v2589_v3 = vadd.f32 %v2588_v54, %v10647_v57  ;;  %v2994_v15 = vadd.f32 %v8340_v41, %v2898_v16  ;;  %v8460_v6 = vpop.f32.mrf.mxu0 }
 0x52d   : > { %10646 = vst [vmem:[#allocation37_spill] sm:$0xff] %v8456_v47  ;;  %3876 = vperm.xlu1 %5650, %v8168_v9   ;;  %v8482_v57 = vpop.f32.mrf.mxu1  ;;  %v10654_v47 = vld [vmem:[#allocation46_spill] sm:$0xff] }
 0x52e   : > { %v2622_v45 = vrot.slane %v2589_v3, 7  ;;  %v8465_v26 = vadd.f32 %v2994_v15, %v10648_v58  ;;  %v8477_v3 = vpop.permute.xlu1 %3388  ;;  %v10653_v58 = vld [vmem:[#allocation49_spill] sm:$0xff] }
 0x52f   : > { %10652 = vst [vmem:[#allocation38_spill] sm:$0xff] %v8477_v3  ;;  %3868 = vperm.xlu2 %5648, %v8184_v46  }
 0x530   : > { %v2623_v53 = vsel %vm1265_vm3, %v2621_v50, %v2622_v45  ;;  %v2654_v41 = vsel %vm1265_vm3, %v2622_v45, %v10650_v34  ;;  %5412 = vmatmul.msk.bf16.gmra.mxu3 %vm605_vm0, %v10651_v44 }
 0x531   : > { %v2783_v54 = vmul.f32 %v10653_v58, %v2654_v41  ;;  %v2814_v16 = vmul.f32 %v8348_v35, %v2623_v53  ;;  %v8492_v41 = vpop.permute.xlu0 %3360  ;;  %v10656_v35 = vld [vmem:[#allocation17_spill] sm:$0xff]  ;;  %v8499_v58 = vld [vmem:[%s5903_s18 + $0x8] sm:$0xff]  ;;  %3896 = vperm.xlu0 %5649, %v8211_v37  }
 0x532   : > { %10658 = vst [vmem:[#allocation13_spill] sm:$0xff] %v8499_v58 }
 0x533   : > { %v2900_v50 = vpop.f32.mrf.mxu2  ;;  %v3191_v15 = vpop.f32.mrf.mxu3  ;;  %v2815_v48 = vadd.f32 %v2783_v54, %v8124_v51  ;;  %v8486_v45 = vadd.f32 %v2814_v16, %v10654_v47  ;;  %v10659_v51 = vld [vmem:[#allocation70_spill] sm:$0xff] }
 0x534   : > { %v2996_v34 = vadd.f32 %v8365_v31, %v2900_v50  ;;  %v8489_v44 = vpop.f32.mrf.mxu0  ;;  %v10661_v31 = vld [vmem:[#allocation20_spill] sm:$0xff] }
 0x535   : > { %10655 = vst [vmem:[#allocation71_spill] sm:$0xff] %v8486_v45  ;;  %v3043_v3 = vadd.f32 %v8128_v21, %v2815_v48  ;;  %3888 = vperm.xlu1 %5650, %v8205_v32   ;;  %5449 = vmatmul.msk.bf16.gmra.mxu0 %vm605_vm0, %v8499_v58  ;;  %v8512_v47 = vadd.f32 %v3191_v15, %v10661_v31  ;;  %v8514_v50 = vpop.f32.mrf.mxu1  ;;  %v3337_v15 = vpop.permute.xlu2 %3336 }
 0x536   : > { %v8495_v53 = vadd.f32 %v2996_v34, %v10656_v35  ;;  %v8508_v21 = vpop.permute.xlu1 %3400 }
 0x537   : > { %10660 = vst [vmem:[#allocation21_spill] sm:$0xff] %v8508_v21  ;;  %3880 = vperm.xlu2 %5648, %v8220_v27   ;;  %v10663_v21 = vld [vmem:[#allocation7_spill] sm:$0xff] }
 0x538   : > { %10657 = vst [vmem:[#allocation19_spill] sm:$0xff] %v8495_v53  ;;  %5355 = vmatmul.msk.bf16.gmra.mxu2 %vm605_vm0, %v10659_v51  ;;  %5399 = vmatmul.msk.bf16.gmra.mxu1 %vm605_vm0, %v10659_v51  ;;  %v10272_v51 = vrot.slane %v8512_v47, 1 }
 0x539   : > { %10662 = vst [vmem:[#allocation6_spill] sm:$0xff] %v8512_v47  ;;  %v8520_v45 = vpop.permute.xlu0 %3372  ;;  %3908 = vperm.xlu0 %5649, %v8245_v63  }
 0x53b   : > { %v2903_v54 = vpop.f32.mrf.mxu2  ;;  %v3193_v16 = vpop.f32.mrf.mxu3 }
 0x53c   : > { %v2999_v48 = vadd.f32 %v8386_v55, %v2903_v54  ;;  %v3194_v34 = vadd.f32 %v3193_v16, %v8132_v10  ;;  %v8518_v35 = vpop.f32.mrf.mxu0  ;;  %v10665_v55 = vld [vmem:[#allocation22_spill] sm:$0xff] }
 0x53d   : > { %3900 = vperm.xlu1 %5650, %v8239_v25   ;;  %v8545_v63 = vpop.f32.mrf.mxu1 }
 0x53e   : > { %v8524_v58 = vadd.f32 %v2999_v48, %v10663_v21  ;;  %v3272_v53 = vrot.slane %v3194_v34, 1  ;;  %v8534_v31 = vpop.permute.xlu1 %3412 }
 0x53f   : > { %10666 = vst [vmem:[#allocation23_spill] sm:$0xff] %v8534_v31  ;;  %3892 = vperm.xlu2 %5648, %v8256_v49  }
 0x540   : > { %10664 = vst [vmem:[#allocation74_spill] sm:$0xff] %v8524_v58  ;;  %v3333_v10 = vsel %vm2170_vm4, %v10272_v51, %v3272_v53  ;;  %5413 = vmatmul.msk.bf16.gmra.mxu3 %vm605_vm0, %v10665_v55  ;;  %v10668_v55 = vld [vmem:[#allocation11_spill] sm:$0xff] }
 0x541   : > { %v3463_v54 = vmul.f32 %v3337_v15, %v3333_v10  ;;  %v8543_v51 = vpop.permute.xlu0 %3384 }
 0x543   : > { %v8537_v21 = vadd.f32 %v3463_v54, %v3043_v3  ;;  %v2905_v16 = vpop.f32.mrf.mxu2  ;;  %v3196_v48 = vpop.f32.mrf.mxu3  ;;  %v8552_v3 = vld [vmem:[%s5903_s18 + $0x10] sm:$0xff] }
 0x544   : > { %v3001_v34 = vadd.f32 %v8411_v59, %v2905_v16  ;;  %v3197_v47 = vadd.f32 %v3196_v48, %v8163_v42  ;;  %v8541_v58 = vpop.f32.mrf.mxu0  ;;  %10670 = vst [vmem:[#allocation67_spill] sm:$0xff] %v8552_v3  ;;  %v10671_v59 = vld [vmem:[#allocation2_spill] sm:$0xff]  ;;  %v10673_v54 = vld [vmem:[#allocation48_spill] sm:$0xff] }
 0x545   : > { %10667 = vst [vmem:[#allocation44_spill] sm:$0xff] %v8537_v21  ;;  %3912 = vperm.xlu1 %5650, %v8277_v56   ;;  %5450 = vmatmul.msk.bf16.gmra.mxu0 %vm605_vm0, %v8552_v3 }
 0x546   : > { %v8548_v25 = vadd.f32 %v3001_v34, %v10668_v55  ;;  %v3273_v15 = vrot.slane %v3197_v47, 1  ;;  %v8562_v10 = vpop.permute.xlu1 %3424  ;;  %v10675_v55 = vld [vmem:[#allocation72_spill] sm:$0xff] }
 0x547   : > { %10672 = vst [vmem:[#allocation14_spill] sm:$0xff] %v8562_v10  ;;  %3904 = vperm.xlu2 %5648, %v8286_v13   ;;  %v8603_v13 = vld [vmem:[%s5903_s18 + $0x18] sm:$0xff] }
 0x548   : > { %10669 = vst [vmem:[#allocation65_spill] sm:$0xff] %v8548_v25  ;;  %v3332_v42 = vsel %vm2170_vm4, %v3272_v53, %v3273_v15  ;;  %5428 = vmatmul.msk.bf16.vlgmr.msrb.gmra.mxu2 %vm605_vm0, %v10671_v59  ;;  %5472 = vmatmul.msk.bf16.vlgmr.msrb.gmra.mxu1 %vm605_vm0, %v10671_v59  ;;  %v10677_v59 = vld [vmem:[#allocation16_spill] sm:$0xff] }
 0x549   : > { %v3464_v47 = vmul.f32 %v8462_v20, %v3332_v42  ;;  %v8573_v3 = vpop.permute.xlu0 %3396  ;;  %v8578_v20 = vpop.f32.mrf.mxu1 }
 0x54a   : > { %10676 = vst [vmem:[#allocation46_spill] sm:$0xff] %v8573_v3  ;;  %v10685_v3 = vld [vmem:[#allocation25_spill] sm:$0xff] }
 0x54b   : > { %v8567_v16 = vadd.f32 %v3464_v47, %v10673_v54  ;;  %v2908_v48 = vpop.f32.mrf.mxu2  ;;  %v3198_v34 = vpop.f32.mrf.mxu3  ;;  %10679 = vst [vmem:[#allocation20_spill] sm:$0xff] %v8578_v20  ;;  %v8583_v47 = vld [vmem:[%s5903_s18 + $0x50] sm:$0xff] }
 0x54c   : > { %v3004_v53 = vadd.f32 %v8435_v30, %v2908_v48  ;;  %v3199_v21 = vadd.f32 %v3198_v34, %v10675_v55  ;;  %v8571_v31 = vpop.f32.mrf.mxu0  ;;  %10680 = vst [vmem:[#allocation7_spill] sm:$0xff] %v8583_v47  ;;  %v10684_v55 = vld [vmem:[#allocation58_spill] sm:$0xff] }
 0x54d   : > { %10674 = vst [vmem:[#allocation49_spill] sm:$0xff] %v8567_v16 }
 0x54e   : > { %v8576_v25 = vadd.f32 %v3004_v53, %v10677_v59  ;;  %v3274_v10 = vrot.slane %v3199_v21, 1  ;;  %v8587_v30 = vpop.permute.xlu1 %3436  ;;  %v10682_v59 = vld [vmem:[#allocation69_spill] sm:$0xff] }
 0x54f   : > { %10681 = vst [vmem:[#allocation22_spill] sm:$0xff] %v8587_v30  ;;  %v3349_v30 = vpop.permute.xlu2 %3348 }
 0x550   : > { %10678 = vst [vmem:[#allocation17_spill] sm:$0xff] %v8576_v25  ;;  %v3331_v42 = vsel %vm2170_vm4, %v3273_v15, %v3274_v10  ;;  %5414 = vmatmul.msk.bf16.gmra.mxu3 %vm605_vm0, %v8583_v47 }
 0x551   : > { %v3465_v54 = vmul.f32 %v8378_v4, %v3331_v42  ;;  %v8597_v15 = vpop.permute.xlu0 %3408 }
 0x553   : > { %v2910_v48 = vpop.f32.mrf.mxu2  ;;  %v3201_v34 = vpop.f32.mrf.mxu3  ;;  %v8591_v53 = vadd.f32 %v3465_v54, %v10682_v59  ;;  %v5609_v54 = vld [vmem:[%s10148_s6 + $0x38] sm:$0xff] }
 0x554   : > { %v3006_v21 = vadd.f32 %v8460_v6, %v2910_v48  ;;  %v3202_v16 = vadd.f32 %v3201_v34, %v10684_v55  ;;  %v8595_v25 = vpop.f32.mrf.mxu0  ;;  %v10686_v6 = vld [vmem:[#allocation3_spill] sm:$0xff]  ;;  %v8621_v48 = vpop.f32.mrf.mxu1  ;;  %v10688_v34 = vld [vmem:[#allocation57_spill] sm:$0xff]  ;;  %4093 = vmatpush.bf16.msra.mxu3 %v5609_v54 }
 0x555   : > { %10683 = vst [vmem:[#allocation11_spill] sm:$0xff] %v8591_v53  ;;  %5451 = vmatmul.msk.bf16.gmra.mxu0 %vm605_vm0, %v8603_v13 }
 0x556   : > { %v8600_v20 = vadd.f32 %v3006_v21, %v10685_v3  ;;  %v3275_v47 = vrot.slane %v3202_v16, 1  ;;  %v8613_v42 = vpop.permute.xlu1 %3448  ;;  %v5612_v16 = vld [vmem:[%s10149_s7 + $0x40] sm:$0xff] }
 0x557   : > { %10687 = vst [vmem:[#allocation48_spill] sm:$0xff] %v8613_v42  ;;  %4386 = vmatpush.bf16.msra.mxu2 %v5612_v16  ;;  %v5611_v16 = vld [vmem:[%s10148_s6 + $0x40] sm:$0xff] }
 0x558   : > { %v3330_v4 = vsel %vm2170_vm4, %v3274_v10, %v3275_v47  ;;  %5429 = vmatmul.msk.bf16.gmra.mxu2 %vm605_vm0, %v10686_v6  ;;  %5473 = vmatmul.msk.bf16.gmra.mxu1 %vm605_vm0, %v10686_v6  ;;  %v5832_v10 = vmov 7  }
 0x559   : > { %v3466_v3 = vmul.f32 %v3349_v30, %v3330_v4  ;;  %5653 = vset.pattern.permute.xlu1 %v5832_v10  ;;  %5652 = vset.pattern.permute.xlu0 %v5832_v10  ;;  %v10690_v4 = vld [vmem:[#allocation42_spill] sm:$0xff]  ;;  %v8632_v53 = vpop.permute.xlu0 %3420 }
 0x55a   : > { %4184 = vperm.xlu1 %5653, %v7881_v22   ;;  %4180 = vperm.xlu0 %5652, %v7887_v1  }
 0x55b   : > { %v8624_v59 = vadd.f32 %v3466_v3, %v10688_v34  ;;  %v2913_v21 = vpop.f32.mrf.mxu2  ;;  %v3203_v55 = vpop.f32.mrf.mxu3  ;;  %5651 = vset.pattern.permute.xlu2 %v5832_v10  ;;  %v10691_v3 = vld [vmem:[#allocation27_spill] sm:$0xff]  ;;  %4481 = vmatpush.bf16.msra.mxu0 %v5611_v16 }
 0x55c   : > { %v3009_v30 = vadd.f32 %v8489_v44, %v2913_v21  ;;  %v3204_v6 = vadd.f32 %v3203_v55, %v10690_v4  ;;  %v8630_v42 = vpop.f32.mrf.mxu0  ;;  %4176 = vperm.xlu2 %5651, %v7893_v38   ;;  %v8644_v44 = vld [vmem:[%s5903_s18 + $0x58] sm:$0xff]  ;;  %v10693_v21 = vld [vmem:[#allocation50_spill] sm:$0xff]  ;;  %v8654_v38 = vpop.f32.mrf.mxu1 }
 0x55d   : > { %10689 = vst [vmem:[#allocation72_spill] sm:$0xff] %v8624_v59 }
 0x55e   : > { %v8635_v34 = vadd.f32 %v3009_v30, %v10691_v3  ;;  %v3276_v59 = vrot.slane %v3204_v6, 1  ;;  %v8648_v1 = vpop.permute.xlu1 %3460 }
 0x55f   : > { %10692 = vst [vmem:[#allocation16_spill] sm:$0xff] %v8648_v1 }
 0x560   : > { %v3329_v22 = vsel %vm2170_vm4, %v3275_v47, %v3276_v59  ;;  %5415 = vmatmul.msk.bf16.gmra.mxu3 %vm605_vm0, %v8644_v44 }
 0x561   : > { %v3467_v6 = vmul.f32 %v8403_v8, %v3329_v22  ;;  %v8662_v3 = vpop.permute.xlu0 %3432  ;;  %v10694_v8 = vld [vmem:[#allocation63_spill] sm:$0xff] }
 0x562   : > { %4192 = vperm.xlu1 %5653, %v7921_v29   ;;  %4200 = vperm.xlu0 %5652, %v7927_v12   ;;  %v10695_v12 = vld [vmem:[#allocation5_spill] sm:$0xff] }
 0x563   : > { %v2915_v54 = vpop.f32.mrf.mxu2  ;;  %v3206_v10 = vpop.f32.mrf.mxu3  ;;  %v8652_v55 = vadd.f32 %v3467_v6, %v10693_v21  ;;  %v8668_v21 = vld [vmem:[%s5903_s18 + $0x20] sm:$0xff] }
 0x564   : > { %v3011_v47 = vadd.f32 %v8518_v35, %v2915_v54  ;;  %v3207_v30 = vadd.f32 %v3206_v10, %v8300_v11  ;;  %v8660_v4 = vpop.f32.mrf.mxu0  ;;  %v3357_v6 = vpop.permute.xlu2 %3356  ;;  %4188 = vperm.xlu2 %5651, %v7938_v5  }
 0x565   : > { %5452 = vmatmul.msk.bf16.gmra.mxu0 %vm605_vm0, %v8668_v21 }
 0x566   : > { %v8665_v16 = vadd.f32 %v3011_v47, %v10694_v8  ;;  %v3277_v22 = vrot.slane %v3207_v30, 1 }
 0x567   : > { %v8679_v11 = vpop.permute.xlu1 %3796 }
 0x568   : > { %v3328_v29 = vsel %vm2170_vm4, %v3276_v59, %v3277_v22  ;;  %5430 = vmatmul.msk.bf16.gmra.mxu2 %vm605_vm0, %v10695_v12  ;;  %5474 = vmatmul.msk.bf16.gmra.mxu1 %vm605_vm0, %v10695_v12  ;;  %v8692_v12 = vpop.f32.mrf.mxu1 }
 0x569   : > { %v3468_v35 = vmul.f32 %v3357_v6, %v3328_v29  ;;  %v8690_v8 = vpop.permute.xlu0 %3444  ;;  %v10697_v6 = vld [vmem:[#allocation30_spill] sm:$0xff] }
 0x56a   : > { %4204 = vperm.xlu1 %5653, %v7965_v17   ;;  %4212 = vperm.xlu0 %5652, %v7971_v40   ;;  %10696 = vst [vmem:[#allocation69_spill] sm:$0xff] %v8690_v8 }
 0x56b   : > { %v8682_v54 = vadd.f32 %v3468_v35, %v8303_v19  ;;  %v2918_v10 = vpop.f32.mrf.mxu2  ;;  %v3208_v47 = vpop.f32.mrf.mxu3 }
 0x56c   : > { %v3014_v5 = vadd.f32 %v8541_v58, %v2918_v10  ;;  %v3209_v30 = vadd.f32 %v3208_v47, %v8323_v7  ;;  %v8688_v59 = vpop.f32.mrf.mxu0  ;;  %4196 = vperm.xlu2 %5651, %v7977_v0   ;;  %v8701_v7 = vld [vmem:[%s5903_s18 + $0x60] sm:$0xff] }
 0x56e   : > { %v8695_v29 = vadd.f32 %v3014_v5, %v10697_v6  ;;  %v3278_v19 = vrot.slane %v3209_v30, 1  ;;  %v10700_v6 = vld [vmem:[#allocation53_spill] sm:$0xff] }
 0x56f   : > { %v8705_v17 = vpop.permute.xlu1 %3804 }
 0x570   : > { %v3327_v58 = vsel %vm2170_vm4, %v3277_v22, %v3278_v19  ;;  %5416 = vmatmul.msk.bf16.gmra.mxu3 %vm605_vm0, %v8701_v7 }
 0x571   : > { %v3469_v40 = vmul.f32 %v8492_v41, %v3327_v58  ;;  %v8717_v30 = vpop.permute.xlu0 %3456  ;;  %v8723_v58 = vld [vmem:[%s5903_s18 + $0x28] sm:$0xff] }
 0x572   : > { %4216 = vperm.xlu1 %5653, %v8005_v2   ;;  %4224 = vperm.xlu0 %5652, %v8011_v61   ;;  %10699 = vst [vmem:[#allocation25_spill] sm:$0xff] %v8717_v30  ;;  %v10701_v61 = vld [vmem:[#allocation8_spill] sm:$0xff]  ;;  %v3369_v30 = vpop.permute.xlu2 %3368 }
 0x573   : > { %v2920_v35 = vpop.f32.mrf.mxu2  ;;  %v3211_v10 = vpop.f32.mrf.mxu3  ;;  %v8709_v47 = vadd.f32 %v3469_v40, %v8326_v62 }
 0x574   : > { %v3016_v0 = vadd.f32 %v8571_v31, %v2920_v35  ;;  %v3212_v5 = vadd.f32 %v3211_v10, %v8342_v43  ;;  %v8715_v22 = vpop.f32.mrf.mxu0  ;;  %4208 = vperm.xlu2 %5651, %v8022_v24   ;;  %v8728_v62 = vpop.f32.mrf.mxu1 }
 0x575   : > { %10698 = vst [vmem:[#allocation58_spill] sm:$0xff] %v8709_v47  ;;  %5453 = vmatmul.msk.bf16.gmra.mxu0 %vm605_vm0, %v8723_v58  ;;  %v10721_v47 = vld [vmem:[#allocation47_spill] sm:$0xff] }
 0x576   : > { %v8720_v1 = vadd.f32 %v3016_v0, %v10700_v6  ;;  %v3279_v41 = vrot.slane %v3212_v5, 1  ;;  %v10704_v0 = vld [vmem:[#allocation55_spill] sm:$0xff] }
 0x577   : > { %v8737_v31 = vpop.permute.xlu1 %3816 }
 0x578   : > { %v3326_v2 = vsel %vm2170_vm4, %v3278_v19, %v3279_v41  ;;  %5431 = vmatmul.msk.bf16.gmra.mxu2 %vm605_vm0, %v10701_v61  ;;  %5475 = vmatmul.msk.bf16.gmra.mxu1 %vm605_vm0, %v10701_v61  ;;  %10702 = vst [vmem:[#allocation57_spill] sm:$0xff] %v8737_v31  ;;  %v10706_v31 = vld [vmem:[#allocation28_spill] sm:$0xff] }
 0x579   : > { %v3470_v43 = vmul.f32 %v8424_v23, %v3326_v2  ;;  %v8748_v6 = vpop.permute.xlu0 %3792  ;;  %v10705_v23 = vld [vmem:[#allocation43_spill] sm:$0xff] }
 0x57a   : > { %4228 = vperm.xlu1 %5653, %v8049_v52   ;;  %4236 = vperm.xlu0 %5652, %v10704_v0  }
 0x57b   : > { %v2923_v40 = vpop.f32.mrf.mxu2  ;;  %v3213_v35 = vpop.f32.mrf.mxu3  ;;  %v8740_v24 = vadd.f32 %v3470_v43, %v8345_v33  ;;  %v8757_v33 = vld [vmem:[%s5903_s18 + $0x68] sm:$0xff]  ;;  %v10707_v43 = vld [vmem:[#allocation10_spill] sm:$0xff] }
 0x57c   : > { %v3019_v10 = vadd.f32 %v8595_v25, %v2923_v40  ;;  %v3214_v19 = vadd.f32 %v3213_v35, %v8367_v18  ;;  %v8746_v5 = vpop.f32.mrf.mxu0  ;;  %4220 = vperm.xlu2 %5651, %v10706_v31   ;;  %v8761_v18 = vpop.f32.mrf.mxu1  ;;  %v10709_v31 = vld [vmem:[#allocation15_spill] sm:$0xff] }
 0x57d   : > { %10703 = vst [vmem:[#allocation42_spill] sm:$0xff] %v8740_v24 }
 0x57e   : > { %v8751_v2 = vadd.f32 %v3019_v10, %v10705_v23  ;;  %v3280_v61 = vrot.slane %v3214_v19, 1 }
 0x57f   : > { %v8768_v23 = vpop.permute.xlu1 %3828 }
 0x580   : > { %v3325_v25 = vsel %vm2170_vm4, %v3279_v41, %v3280_v61  ;;  %5417 = vmatmul.msk.bf16.gmra.mxu3 %vm605_vm0, %v8757_v33  ;;  %10710 = vst [vmem:[#allocation50_spill] sm:$0xff] %v8768_v23  ;;  %v10711_v41 = vld [vmem:[#allocation52_spill] sm:$0xff]  ;;  %v10719_v23 = vld [vmem:[#allocation66_spill] sm:$0xff] }
 0x581   : > { %v3471_v52 = vmul.f32 %v3369_v30, %v3325_v25  ;;  %v8774_v30 = vpop.permute.xlu0 %3812  ;;  %v10713_v25 = vld [vmem:[#allocation62_spill] sm:$0xff] }
 0x582   : > { %4240 = vperm.xlu1 %5653, %v10633_v39   ;;  %4248 = vperm.xlu0 %5652, %v10711_v41   ;;  %10712 = vst [vmem:[#allocation63_spill] sm:$0xff] %v8774_v30 }
 0x583   : > { %v8764_v40 = vadd.f32 %v3471_v52, %v10707_v43  ;;  %v2925_v35 = vpop.f32.mrf.mxu2  ;;  %v3216_v10 = vpop.f32.mrf.mxu3  ;;  %v8780_v43 = vld [vmem:[%s5903_s18 + $0x30] sm:$0xff] }
 0x584   : > { %v3021_v19 = vadd.f32 %v8630_v42, %v2925_v35  ;;  %v3217_v0 = vadd.f32 %v3216_v10, %v10709_v31  ;;  %v8772_v24 = vpop.f32.mrf.mxu0  ;;  %10714 = vst [vmem:[#allocation30_spill] sm:$0xff] %v8780_v43  ;;  %v10715_v42 = vld [vmem:[#allocation32_spill] sm:$0xff] }
 0x585   : > { %10708 = vst [vmem:[#allocation27_spill] sm:$0xff] %v8764_v40  ;;  %5454 = vmatmul.msk.bf16.gmra.mxu0 %vm605_vm0, %v8780_v43  ;;  %4232 = vperm.xlu2 %5651, %v10715_v42   ;;  %v10716_v35 = vld [vmem:[#allocation12_spill] sm:$0xff]  ;;  %v10720_v40 = vld [vmem:[#allocation33_spill] sm:$0xff] }
 0x586   : > { %v8777_v8 = vadd.f32 %v3021_v19, %v10713_v25  ;;  %v3281_v52 = vrot.slane %v3217_v0, 1  ;;  %v10717_v0 = vld [vmem:[#allocation4_spill] sm:$0xff]  ;;  %v8795_v25 = vpop.f32.mrf.mxu1 }
 0x588   : > { %v3324_v39 = vsel %vm2170_vm4, %v3280_v61, %v3281_v52  ;;  %5432 = vmatmul.msk.bf16.gmra.mxu2 %vm605_vm0, %v10716_v35  ;;  %5476 = vmatmul.msk.bf16.gmra.mxu1 %vm605_vm0, %v10716_v35 }
 0x589   : > { %v3472_v10 = vmul.f32 %v8520_v45, %v3324_v39  ;;  %v8803_v35 = vpop.permute.xlu0 %3824  ;;  %v10723_v45 = vld [vmem:[#allocation68_spill] sm:$0xff] }
 0x58a   : > { %4252 = vperm.xlu1 %5653, %v10720_v40   ;;  %4260 = vperm.xlu0 %5652, %v10721_v47   ;;  %10722 = vst [vmem:[#allocation55_spill] sm:$0xff] %v8803_v35  ;;  %v3381_v40 = vpop.permute.xlu2 %3380 }
 0x58b   : > { %v2928_v19 = vpop.f32.mrf.mxu2  ;;  %v3218_v31 = vpop.f32.mrf.mxu3  ;;  %v8793_v41 = vadd.f32 %v3472_v10, %v10717_v0  ;;  %v10725_v0 = vld [vmem:[#allocation35_spill] sm:$0xff] }
 0x58c   : > { %v3024_v42 = vadd.f32 %v8660_v4, %v2928_v19  ;;  %v3219_v61 = vadd.f32 %v3218_v31, %v10719_v23  ;;  %v8801_v30 = vpop.f32.mrf.mxu0  ;;  %v8808_v10 = vpop.permute.xlu1 %3840  ;;  %v8814_v23 = vld [vmem:[%s5903_s18 + $0x70] sm:$0xff] }
 0x58d   : > { %10718 = vst [vmem:[#allocation53_spill] sm:$0xff] %v8793_v41  ;;  %4244 = vperm.xlu2 %5651, %v8149_v28   ;;  %v10727_v28 = vld [vmem:[#allocation39_spill] sm:$0xff] }
 0x58e   : > { %v8806_v39 = vadd.f32 %v3024_v42, %v10723_v45  ;;  %v3282_v43 = vrot.slane %v3219_v61, 1  ;;  %10724 = vst [vmem:[#allocation43_spill] sm:$0xff] %v8808_v10  ;;  %v8830_v41 = vpop.f32.mrf.mxu1 }
 0x590   : > { %v3323_v4 = vsel %vm2170_vm4, %v3281_v52, %v3282_v43  ;;  %5418 = vmatmul.msk.bf16.gmra.mxu3 %vm605_vm0, %v8814_v23 }
 0x591   : > { %v3473_v47 = vmul.f32 %v8452_v14, %v3323_v4  ;;  %v8828_v10 = vpop.permute.xlu0 %3836  ;;  %v10729_v14 = vld [vmem:[#allocation54_spill] sm:$0xff] }
 0x592   : > { %4264 = vperm.xlu1 %5653, %v8168_v9   ;;  %4272 = vperm.xlu0 %5652, %v8174_v60   ;;  %10728 = vst [vmem:[#allocation10_spill] sm:$0xff] %v8828_v10  ;;  %v10730_v60 = vld [vmem:[#allocation18_spill] sm:$0xff] }
 0x593   : > { %v2930_v19 = vpop.f32.mrf.mxu2  ;;  %v3221_v31 = vpop.f32.mrf.mxu3  ;;  %v8820_v42 = vadd.f32 %v3473_v47, %v10725_v0  ;;  %v8836_v47 = vld [vmem:[%s5903_s18 + $0x38] sm:$0xff]  ;;  %v10732_v0 = vld [vmem:[#allocation26_spill] sm:$0xff] }
 0x594   : > { %v3026_v61 = vadd.f32 %v8688_v59, %v2930_v19  ;;  %v3222_v45 = vadd.f32 %v3221_v31, %v10727_v28  ;;  %v8826_v52 = vpop.f32.mrf.mxu0  ;;  %v8847_v59 = vpop.permute.xlu1 %3852 }
 0x595   : > { %10726 = vst [vmem:[#allocation28_spill] sm:$0xff] %v8820_v42  ;;  %5455 = vmatmul.msk.bf16.gmra.mxu0 %vm605_vm0, %v8836_v47  ;;  %4256 = vperm.xlu2 %5651, %v8184_v46   ;;  %v3393_v31 = vpop.permute.xlu2 %3392 }
 0x596   : > { %v8833_v4 = vadd.f32 %v3026_v61, %v10729_v14  ;;  %v3283_v35 = vrot.slane %v3222_v45, 1  ;;  %10731 = vst [vmem:[#allocation15_spill] sm:$0xff] %v8847_v59 }
 0x598   : > { %v3322_v9 = vsel %vm2170_vm4, %v3282_v43, %v3283_v35  ;;  %5433 = vmatmul.msk.bf16.gmra.mxu2 %vm605_vm0, %v10730_v60  ;;  %5477 = vmatmul.msk.bf16.gmra.mxu1 %vm605_vm0, %v10730_v60 }
 0x599   : > { %v3474_v19 = vmul.f32 %v3381_v40, %v3322_v9  ;;  %v8858_v60 = vpop.permute.xlu0 %3848  ;;  %v10735_v40 = vld [vmem:[#allocation60_spill] sm:$0xff] }
 0x59a   : > { %4276 = vperm.xlu1 %5653, %v8205_v32   ;;  %4284 = vperm.xlu0 %5652, %v8211_v37   ;;  %10734 = vst [vmem:[#allocation62_spill] sm:$0xff] %v8858_v60 }
 0x59b   : > { %v8850_v61 = vadd.f32 %v3474_v19, %v10732_v0  ;;  %v2933_v28 = vpop.f32.mrf.mxu2  ;;  %v3223_v45 = vpop.f32.mrf.mxu3 }
 0x59c   : > { %v3029_v46 = vadd.f32 %v8715_v22, %v2933_v28  ;;  %v3224_v43 = vadd.f32 %v3223_v45, %v8482_v57  ;;  %v8856_v14 = vpop.f32.mrf.mxu0  ;;  %v8864_v19 = vpop.f32.mrf.mxu1  ;;  %v8869_v57 = vld [vmem:[%s5903_s18 + $0x78] sm:$0xff] }
 0x59d   : > { %10733 = vst [vmem:[#allocation52_spill] sm:$0xff] %v8850_v61  ;;  %4268 = vperm.xlu2 %5651, %v8220_v27   ;;  %v8874_v37 = vpop.permute.xlu1 %3864  ;;  %v10749_v61 = vld [vmem:[#allocation61_spill] sm:$0xff] }
 0x59e   : > { %v8861_v9 = vadd.f32 %v3029_v46, %v10735_v40  ;;  %v3284_v59 = vrot.slane %v3224_v43, 1  ;;  %10736 = vst [vmem:[#allocation32_spill] sm:$0xff] %v8874_v37  ;;  %v10738_v43 = vld [vmem:[#allocation64_spill] sm:$0xff] }
 0x59f   : > { %v10739_v40 = vld [vmem:[#allocation40_spill] sm:$0xff] }
 0x5a0   : > { %v3321_v22 = vsel %vm2170_vm4, %v3283_v35, %v3284_v59  ;;  %5419 = vmatmul.msk.bf16.gmra.mxu3 %vm605_vm0, %v8869_v57  ;;  %v8881_v35 = vpop.permute.xlu2 %3404 }
 0x5a1   : > { %v3475_v32 = vmul.f32 %v8543_v51, %v3321_v22  ;;  %v10740_v51 = vld [vmem:[#allocation9_spill] sm:$0xff]  ;;  %v8890_v10 = vpop.permute.xlu0 %3860 }
 0x5a2   : > { %4288 = vperm.xlu1 %5653, %v10738_v43   ;;  %4296 = vperm.xlu0 %5652, %v10739_v40   ;;  %10741 = vst [vmem:[#allocation66_spill] sm:$0xff] %v8890_v10  ;;  %v10745_v43 = vld [vmem:[#allocation19_spill] sm:$0xff]  ;;  %v10747_v10 = vld [vmem:[#allocation73_spill] sm:$0xff] }
 0x5a3   : > { %v2935_v0 = vpop.f32.mrf.mxu2  ;;  %v3226_v28 = vpop.f32.mrf.mxu3  ;;  %v8877_v45 = vadd.f32 %v3475_v32, %v8465_v26  ;;  %v8893_v26 = vld [vmem:[%s5903_s18 + $0x40] sm:$0xff] }
 0x5a4   : > { %v3031_v27 = vadd.f32 %v8746_v5, %v2935_v0  ;;  %v3227_v46 = vadd.f32 %v3226_v28, %v8514_v50  ;;  %v8885_v60 = vpop.f32.mrf.mxu0  ;;  %10742 = vst [vmem:[#allocation33_spill] sm:$0xff] %v8893_v26  ;;  %v10743_v5 = vld [vmem:[#allocation24_spill] sm:$0xff]  ;;  %v10744_v32 = vld [vmem:[#allocation38_spill] sm:$0xff]  ;;  %v8905_v28 = vpop.f32.mrf.mxu1 }
 0x5a5   : > { %10737 = vst [vmem:[#allocation4_spill] sm:$0xff] %v8877_v45  ;;  %5456 = vmatmul.msk.bf16.gmra.mxu0 %vm605_vm0, %v8893_v26  ;;  %4280 = vperm.xlu2 %5651, %v8256_v49  }
 0x5a6   : > { %v8888_v22 = vadd.f32 %v3031_v27, %v10740_v51  ;;  %v3285_v37 = vrot.slane %v3227_v46, 1 }
 0x5a8   : > { %v3320_v50 = vsel %vm2170_vm4, %v3284_v59, %v3285_v37  ;;  %5434 = vmatmul.msk.bf16.gmra.mxu2 %vm605_vm0, %v10743_v5  ;;  %5478 = vmatmul.msk.bf16.gmra.mxu1 %vm605_vm0, %v10743_v5 }
 0x5a9   : > { %v3476_v0 = vmul.f32 %v10744_v32, %v3320_v50  ;;  %v8918_v50 = vpop.permute.xlu1 %3876  ;;  %v8920_v32 = vpop.permute.xlu2 %3416 }
 0x5aa   : > { %4300 = vperm.xlu1 %5653, %v8277_v56   ;;  %10748 = vst [vmem:[#allocation68_spill] sm:$0xff] %v8918_v50 }
 0x5ab   : > { %v2938_v27 = vpop.f32.mrf.mxu2  ;;  %v3228_v46 = vpop.f32.mrf.mxu3  ;;  %v8908_v40 = vadd.f32 %v3476_v0, %v10745_v43  ;;  %v8926_v0 = vld [vmem:[%s5903_s18] sm:$0xff] }
 0x5ac   : > { %v3034_v49 = vadd.f32 %v8772_v24, %v2938_v27  ;;  %v3229_v59 = vadd.f32 %v3228_v46, %v8545_v63  ;;  %v8913_v51 = vpop.f32.mrf.mxu0  ;;  %10750 = vst [vmem:[#allocation35_spill] sm:$0xff] %v8926_v0  ;;  %v8930_v63 = vpop.permute.xlu0 %3872 }
 0x5ad   : > { %10746 = vst [vmem:[#allocation47_spill] sm:$0xff] %v8908_v40  ;;  %4292 = vperm.xlu2 %5651, %v10749_v61   ;;  %v10755_v40 = vld [vmem:[#allocation56_spill] sm:$0xff] }
 0x5ae   : > { %v8916_v5 = vadd.f32 %v3034_v49, %v10747_v10  ;;  %v3286_v45 = vrot.slane %v3229_v59, 1  ;;  %10751 = vst [vmem:[#allocation39_spill] sm:$0xff] %v8930_v63  ;;  %v10752_v10 = vld [vmem:[#allocation74_spill] sm:$0xff]  ;;  %v8935_v49 = vpop.f32.mrf.mxu1  ;;  %v10754_v59 = vld [vmem:[#allocation20_spill] sm:$0xff] }
 0x5b0   : > { %v3319_v24 = vsel %vm2170_vm4, %v3285_v37, %v3286_v45  ;;  %5492 = vmatmul.msk.bf16.vlgmr.msra.gmra.mxu3 %vm605_vm0, %v8926_v0  ;;  %v8945_v0 = vld [vmem:[%s5903_s18 + $0x48] sm:$0xff] }
 0x5b1   : > { %v3477_v56 = vmul.f32 %v3393_v31, %v3319_v24  ;;  %10757 = vst [vmem:[#allocation60_spill] sm:$0xff] %v8945_v0  ;;  %v10758_v24 = vld [vmem:[#allocation29_spill] sm:$0xff] }
 0x5b3   : > { %v8933_v27 = vadd.f32 %v3477_v56, %v10752_v10  ;;  %v2940_v46 = vpop.f32.mrf.mxu2  ;;  %v3231_v43 = vpop.f32.mrf.mxu3 }
 0x5b4   : > { %v3036_v61 = vadd.f32 %v8801_v30, %v2940_v46  ;;  %v3232_v50 = vadd.f32 %v3231_v43, %v10754_v59  ;;  %v8939_v37 = vpop.f32.mrf.mxu0  ;;  %v8955_v30 = vpop.permute.xlu1 %3888 }
 0x5b5   : > { %10753 = vst [vmem:[#allocation54_spill] sm:$0xff] %v8933_v27  ;;  %5457 = vmatmul.msk.bf16.gmra.mxu0 %vm605_vm0, %v8945_v0  ;;  %v8957_v56 = vpop.permute.xlu2 %3428  ;;  %v8960_v10 = vpop.permute.xlu0 %3884 }
 0x5b6   : > { %v8942_v42 = vadd.f32 %v3036_v61, %v10755_v40  ;;  %v3287_v26 = vrot.slane %v3232_v50, 1  ;;  %10759 = vst [vmem:[#allocation64_spill] sm:$0xff] %v8955_v30  ;;  %v10760_v40 = vld [vmem:[#allocation46_spill] sm:$0xff]  ;;  %v10762_v61 = vld [vmem:[#allocation65_spill] sm:$0xff] }
 0x5b7   : > { %10761 = vst [vmem:[#allocation40_spill] sm:$0xff] %v8960_v10  ;;  %v10764_v30 = vld [vmem:[#allocation37_spill] sm:$0xff] }
 0x5b8   : > { %10756 = vst [vmem:[#allocation26_spill] sm:$0xff] %v8942_v42  ;;  %v3318_v31 = vsel %vm2170_vm4, %v3286_v45, %v3287_v26  ;;  %5435 = vmatmul.msk.bf16.gmra.mxu2 %vm605_vm0, %v10758_v24  ;;  %5479 = vmatmul.msk.bf16.gmra.mxu1 %vm605_vm0, %v10758_v24  ;;  %v8969_v24 = vpop.f32.mrf.mxu1 }
 0x5b9   : > { %v3478_v50 = vmul.f32 %v10760_v40, %v3318_v31  ;;  %v10766_v40 = vld [vmem:[#allocation13_spill] sm:$0xff] }
 0x5bb   : > { %v2943_v46 = vpop.f32.mrf.mxu2  ;;  %v3233_v43 = vpop.f32.mrf.mxu3  ;;  %v8963_v59 = vadd.f32 %v3478_v50, %v10762_v61  ;;  %v10767_v50 = vld [vmem:[#allocation21_spill] sm:$0xff] }
 0x5bc   : > { %v3039_v45 = vadd.f32 %v8826_v52, %v2943_v46  ;;  %v3234_v63 = vadd.f32 %v3233_v43, %v8621_v48  ;;  %v8967_v27 = vpop.f32.mrf.mxu0  ;;  %v8979_v10 = vpop.permute.xlu1 %3900  ;;  %v10769_v43 = vld [vmem:[#allocation17_spill] sm:$0xff] }
 0x5bd   : > { %10763 = vst [vmem:[#allocation9_spill] sm:$0xff] %v8963_v59  ;;  %v8981_v52 = vpop.permute.xlu2 %3440 }
 0x5be   : > { %v8972_v0 = vadd.f32 %v3039_v45, %v10764_v30  ;;  %v3288_v42 = vrot.slane %v3234_v63, 1  ;;  %10768 = vst [vmem:[#allocation19_spill] sm:$0xff] %v8979_v10  ;;  %v8988_v45 = vpop.permute.xlu0 %3896 }
 0x5bf   : > { %10771 = vst [vmem:[#allocation61_spill] sm:$0xff] %v8988_v45 }
 0x5c0   : > { %10765 = vst [vmem:[#allocation38_spill] sm:$0xff] %v8972_v0  ;;  %v3317_v31 = vsel %vm2170_vm4, %v3287_v26, %v3288_v42  ;;  %5493 = vmatmul.msk.bf16.gmra.mxu3 %vm605_vm0, %v10766_v40  ;;  %v10772_v40 = vld [vmem:[#allocation71_spill] sm:$0xff]  ;;  %v8997_v10 = vpop.f32.mrf.mxu1 }
 0x5c1   : > { %v3479_v61 = vmul.f32 %v10767_v50, %v3317_v31  ;;  %v10774_v50 = vld [vmem:[#allocation7_spill] sm:$0xff] }
 0x5c3   : > { %v2945_v48 = vpop.f32.mrf.mxu2  ;;  %v3236_v46 = vpop.f32.mrf.mxu3  ;;  %v8984_v59 = vadd.f32 %v3479_v61, %v10769_v43  ;;  %v10775_v43 = vld [vmem:[#allocation31_spill] sm:$0xff] }
 0x5c4   : > { %v3041_v30 = vadd.f32 %v8856_v14, %v2945_v48  ;;  %v3237_v63 = vadd.f32 %v3236_v46, %v8654_v38  ;;  %v8990_v26 = vpop.f32.mrf.mxu0  ;;  %v3913_v45 = vpop.permute.xlu1 %3912 }
 0x5c5   : > { %10770 = vst [vmem:[#allocation73_spill] sm:$0xff] %v8984_v59  ;;  %5458 = vmatmul.msk.bf16.gmra.mxu0 %vm605_vm0, %v10774_v50 }
 0x5c6   : > { %v8993_v0 = vadd.f32 %v3041_v30, %v10772_v40  ;;  %v3289_v31 = vrot.slane %v3237_v63, 1  ;;  %v9013_v40 = vpop.permute.xlu2 %3452  ;;  %v9017_v59 = vpop.permute.xlu0 %3908 }
 0x5c7   : > { %10778 = vst [vmem:[#allocation46_spill] sm:$0xff] %v9017_v59 }
 0x5c8   : > { %10773 = vst [vmem:[#allocation74_spill] sm:$0xff] %v8993_v0  ;;  %v3316_v61 = vsel %vm2170_vm4, %v3288_v42, %v3289_v31  ;;  %5436 = vmatmul.msk.bf16.gmra.mxu2 %vm605_vm0, %v10775_v43  ;;  %5480 = vmatmul.msk.bf16.gmra.mxu1 %vm605_vm0, %v10775_v43 }
 0x5c9   : > { %v3480_v38 = vmul.f32 %v8881_v35, %v3316_v61  ;;  %v10779_v61 = vld [vmem:[#allocation67_spill] sm:$0xff] }
 0x5cb   : > { %v3238_v14 = vpop.f32.mrf.mxu3  ;;  %v3548_v48 = vpop.f32.mrf.mxu2  ;;  %v9007_v46 = vadd.f32 %v3480_v38, %v8600_v20 }
 0x5cc   : > { %v3239_v30 = vadd.f32 %v3238_v14, %v8692_v12  ;;  %v9011_v63 = vadd.f32 %v8885_v60, %v3548_v48  ;;  %v9015_v42 = vpop.f32.mrf.mxu0  ;;  %v9024_v12 = vpop.f32.mrf.mxu1 }
 0x5cd   : > { %10776 = vst [vmem:[#allocation20_spill] sm:$0xff] %v9007_v46  ;;  %v9034_v0 = vpop.permute.xlu1 %4184 }
 0x5ce   : > { %10777 = vst [vmem:[#allocation56_spill] sm:$0xff] %v9011_v63  ;;  %v3290_v50 = vrot.slane %v3239_v30, 1 }
 0x5cf   : > { %10781 = vst [vmem:[#allocation37_spill] sm:$0xff] %v9034_v0 }
 0x5d0   : > { %v3315_v35 = vsel %vm2170_vm4, %v3289_v31, %v3290_v50  ;;  %5494 = vmatmul.msk.bf16.gmra.mxu3 %vm605_vm0, %v10779_v61  ;;  %v10291_v31 = vrot.slane %v9011_v63, 7  ;;  %v3789_v61 = vpop.permute.xlu2 %3788 }
 0x5d1   : > { %v3481_v20 = vmul.f32 %v8597_v15, %v3315_v35  ;;  %v10783_v35 = vld [vmem:[#allocation23_spill] sm:$0xff] }
 0x5d3   : > { %v3241_v60 = vpop.f32.mrf.mxu3  ;;  %v3550_v38 = vpop.f32.mrf.mxu2  ;;  %v9027_v14 = vadd.f32 %v3481_v20, %v8635_v34 }
 0x5d4   : > { %v3242_v48 = vadd.f32 %v3241_v60, %v8728_v62  ;;  %v3646_v30 = vadd.f32 %v8913_v51, %v3550_v38  ;;  %v9031_v59 = vpop.f32.mrf.mxu0  ;;  %v10782_v62 = vld [vmem:[#allocation34_spill] sm:$0xff]  ;;  %v9048_v51 = vpop.permute.xlu0 %4180 }
 0x5d5   : > { %10780 = vst [vmem:[#allocation65_spill] sm:$0xff] %v9027_v14  ;;  %5459 = vmatmul.msk.bf16.gmra.mxu0 %vm605_vm0, %v8644_v44 }
 0x5d6   : > { %v3291_v43 = vrot.slane %v3242_v48, 1  ;;  %v3724_v46 = vrot.slane %v3646_v30, 7  ;;  %v9056_v48 = vpop.f32.mrf.mxu1 }
 0x5d8   : > { %v3314_v15 = vsel %vm2170_vm4, %v3290_v50, %v3291_v43  ;;  %v3785_v34 = vsel %vm1265_vm3, %v10291_v31, %v3724_v46  ;;  %5437 = vmatmul.msk.bf16.gmra.mxu2 %vm605_vm0, %v10782_v62  ;;  %5481 = vmatmul.msk.bf16.gmra.mxu1 %vm605_vm0, %v10782_v62  ;;  %v3801_v0 = vpop.permute.xlu2 %3800 }
 0x5d9   : > { %v3482_v20 = vmul.f32 %v10783_v35, %v3314_v15  ;;  %v9051_v60 = vmul.f32 %v3913_v45, %v3785_v34  ;;  %v10785_v35 = vld [vmem:[#allocation44_spill] sm:$0xff] }
 0x5db   : > { %v3243_v44 = vpop.f32.mrf.mxu3  ;;  %v3553_v38 = vpop.f32.mrf.mxu2  ;;  %v9054_v50 = vadd.f32 %v3482_v20, %v8665_v16 }
 0x5dc   : > { %v3244_v30 = vadd.f32 %v3243_v44, %v8761_v18  ;;  %v3649_v31 = vadd.f32 %v8939_v37, %v3553_v38  ;;  %v9060_v63 = vpop.f32.mrf.mxu0  ;;  %v9068_v16 = vpop.permute.xlu1 %4192 }
 0x5dd   : > { %v9071_v37 = vpop.permute.xlu0 %4200 }
 0x5de   : > { %v3292_v62 = vrot.slane %v3244_v30, 1  ;;  %v3725_v14 = vrot.slane %v3649_v31, 7  ;;  %10784 = vst [vmem:[#allocation13_spill] sm:$0xff] %v9071_v37  ;;  %v9083_v30 = vpop.f32.mrf.mxu1 }
 0x5e0   : > { %v3313_v45 = vsel %vm2170_vm4, %v3291_v43, %v3292_v62  ;;  %v3784_v15 = vsel %vm1265_vm3, %v3724_v46, %v3725_v14  ;;  %5495 = vmatmul.msk.bf16.gmra.mxu3 %vm605_vm0, %v8603_v13 }
 0x5e1   : > { %v3483_v18 = vmul.f32 %v8920_v32, %v3313_v45  ;;  %v3915_v34 = vmul.f32 %v3789_v61, %v3784_v15  ;;  %v10786_v15 = vld [vmem:[#allocation36_spill] sm:$0xff] }
 0x5e3   : > { %v9074_v20 = vadd.f32 %v3915_v34, %v10785_v35  ;;  %v3246_v31 = vpop.f32.mrf.mxu3  ;;  %v3555_v44 = vpop.f32.mrf.mxu2  ;;  %v9077_v43 = vadd.f32 %v3483_v18, %v8695_v29 }
 0x5e4   : > { %v3247_v46 = vadd.f32 %v3246_v31, %v8795_v25  ;;  %v3651_v38 = vadd.f32 %v8967_v27, %v3555_v44  ;;  %v9081_v13 = vpop.f32.mrf.mxu0  ;;  %v9095_v25 = vpop.permute.xlu2 %3808 }
 0x5e5   : > { %5460 = vmatmul.msk.bf16.gmra.mxu0 %vm605_vm0, %v8701_v7  ;;  %v9099_v34 = vpop.permute.xlu1 %4204 }
 0x5e6   : > { %v3293_v32 = vrot.slane %v3247_v46, 1  ;;  %v3726_v61 = vrot.slane %v3651_v38, 7  ;;  %10787 = vst [vmem:[#allocation21_spill] sm:$0xff] %v9099_v34  ;;  %v9109_v38 = vpop.permute.xlu0 %4212 }
 0x5e7   : > { %10789 = vst [vmem:[#allocation17_spill] sm:$0xff] %v9109_v38 }
 0x5e8   : > { %v3312_v45 = vsel %vm2170_vm4, %v3292_v62, %v3293_v32  ;;  %v3783_v29 = vsel %vm1265_vm3, %v3725_v14, %v3726_v61  ;;  %5438 = vmatmul.msk.bf16.gmra.mxu2 %vm605_vm0, %v10786_v15  ;;  %5482 = vmatmul.msk.bf16.gmra.mxu1 %vm605_vm0, %v10786_v15  ;;  %v10788_v62 = vld [vmem:[#allocation49_spill] sm:$0xff] }
 0x5e9   : > { %v3484_v27 = vmul.f32 %v8632_v53, %v3312_v45  ;;  %v3916_v18 = vmul.f32 %v8748_v6, %v3783_v29  ;;  %v9113_v45 = vpop.f32.mrf.mxu1 }
 0x5eb   : > { %v3248_v7 = vpop.f32.mrf.mxu3  ;;  %v3558_v35 = vpop.f32.mrf.mxu2  ;;  %v9102_v31 = vadd.f32 %v3916_v18, %v10788_v62  ;;  %v9105_v14 = vadd.f32 %v3484_v27, %v8720_v1  ;;  %v10790_v1 = vld [vmem:[#allocation14_spill] sm:$0xff]  ;;  %v10791_v62 = vld [vmem:[#allocation11_spill] sm:$0xff] }
 0x5ec   : > { %v3249_v44 = vadd.f32 %v3248_v7, %v8830_v41  ;;  %v3654_v46 = vadd.f32 %v8990_v26, %v3558_v35  ;;  %v9111_v37 = vpop.f32.mrf.mxu0  ;;  %v9123_v27 = vpop.permute.xlu2 %3820 }
 0x5ed   : > { %v9133_v38 = vpop.permute.xlu1 %4216 }
 0x5ee   : > { %v3294_v53 = vrot.slane %v3249_v44, 1  ;;  %v3727_v6 = vrot.slane %v3654_v46, 7  ;;  %10792 = vst [vmem:[#allocation71_spill] sm:$0xff] %v9133_v38 }
 0x5f0   : > { %v3311_v29 = vsel %vm2170_vm4, %v3293_v32, %v3294_v53  ;;  %v3782_v18 = vsel %vm1265_vm3, %v3726_v61, %v3727_v6  ;;  %5496 = vmatmul.msk.bf16.gmra.mxu3 %vm605_vm0, %v8668_v21 }
 0x5f1   : > { %v3485_v41 = vmul.f32 %v10790_v1, %v3311_v29  ;;  %v3917_v26 = vmul.f32 %v8679_v11, %v3782_v18  ;;  %v9137_v18 = vpop.permute.xlu0 %4224 }
 0x5f2   : > { %10793 = vst [vmem:[#allocation7_spill] sm:$0xff] %v9137_v18 }
 0x5f3   : > { %v3251_v7 = vpop.f32.mrf.mxu3  ;;  %v3560_v35 = vpop.f32.mrf.mxu2  ;;  %v9126_v44 = vadd.f32 %v3917_v26, %v10791_v62  ;;  %v9129_v46 = vadd.f32 %v3485_v41, %v8751_v2 }
 0x5f4   : > { %v3252_v32 = vadd.f32 %v3251_v7, %v8864_v19  ;;  %v3656_v61 = vadd.f32 %v9015_v42, %v3560_v35  ;;  %v9135_v21 = vpop.f32.mrf.mxu0  ;;  %v10794_v19 = vld [vmem:[#allocation41_spill] sm:$0xff]  ;;  %v9150_v26 = vpop.f32.mrf.mxu1  ;;  %v10795_v7 = vld [vmem:[#allocation72_spill] sm:$0xff] }
 0x5f5   : > { %5461 = vmatmul.msk.bf16.gmra.mxu0 %vm605_vm0, %v8757_v33 }
 0x5f6   : > { %v3295_v29 = vrot.slane %v3252_v32, 1  ;;  %v3728_v11 = vrot.slane %v3656_v61, 7  ;;  %v9160_v61 = vpop.permute.xlu2 %3832 }
 0x5f8   : > { %v3310_v1 = vsel %vm2170_vm4, %v3294_v53, %v3295_v29  ;;  %v3781_v2 = vsel %vm1265_vm3, %v3727_v6, %v3728_v11  ;;  %5439 = vmatmul.msk.bf16.gmra.mxu2 %vm605_vm0, %v10794_v19  ;;  %5483 = vmatmul.msk.bf16.gmra.mxu1 %vm605_vm0, %v10794_v19 }
 0x5f9   : > { %v3486_v42 = vmul.f32 %v8957_v56, %v3310_v1  ;;  %v3918_v41 = vmul.f32 %v3801_v0, %v3781_v2  ;;  %v5833_v56 = vmov 8   ;;  %v9164_v2 = vpop.permute.xlu1 %4228 }
 0x5fa   : > { %5656 = vset.pattern.permute.xlu1 %v5833_v56  ;;  %5655 = vset.pattern.permute.xlu0 %v5833_v56  ;;  %10796 = vst [vmem:[#allocation67_spill] sm:$0xff] %v9164_v2 }
 0x5fb   : > { %v9153_v35 = vadd.f32 %v3918_v41, %v10795_v7  ;;  %v3253_v33 = vpop.f32.mrf.mxu3  ;;  %v3563_v62 = vpop.f32.mrf.mxu2  ;;  %v9156_v53 = vadd.f32 %v3486_v42, %v8777_v8  ;;  %v5771_v8 = vld [vmem:[%s10151_s9 + $0x10] sm:$0xff]  ;;  %5654 = vset.pattern.permute.xlu2 %v5833_v56  ;;  %v5773_v7 = vld [vmem:[%s10151_s9] sm:$0xff] }
 0x5fc   : > { %v3254_v6 = vadd.f32 %v3253_v33, %v8905_v28  ;;  %v3659_v32 = vadd.f32 %v9031_v59, %v3563_v62  ;;  %v9162_v18 = vpop.f32.mrf.mxu0  ;;  %4636 = vperm.xlu1 %5656, %v5771_v8   ;;  %v5772_v28 = vld [vmem:[%s10151_s9 + $0x8] sm:$0xff]  ;;  %v9178_v41 = vpop.permute.xlu0 %4236  ;;  %4628 = vperm.xlu2 %5654, %v5773_v7  }
 0x5fd   : > { %4632 = vperm.xlu0 %5655, %v5772_v28   ;;  %10797 = vst [vmem:[#allocation23_spill] sm:$0xff] %v9178_v41 }
 0x5fe   : > { %v3296_v0 = vrot.slane %v3254_v6, 1  ;;  %v3729_v1 = vrot.slane %v3659_v32, 7 }
 0x600   : > { %v3309_v59 = vsel %vm2170_vm4, %v3295_v29, %v3296_v0  ;;  %v3780_v42 = vsel %vm1265_vm3, %v3728_v11, %v3729_v1  ;;  %5497 = vmatmul.msk.bf16.gmra.mxu3 %vm605_vm0, %v8723_v58  ;;  %v9191_v58 = vpop.f32.mrf.mxu1 }
 0x601   : > { %v3487_v33 = vmul.f32 %v8662_v3, %v3309_v59  ;;  %v3919_v62 = vmul.f32 %v8705_v17, %v3780_v42  ;;  %v9197_v59 = vpop.permute.xlu2 %3844  ;;  %v5775_v17 = vld [vmem:[%s10151_s9 + $0x30] sm:$0xff]  ;;  %v9215_v42 = vpop.permute.xlu1 %4240 }
 0x602   : > { %10799 = vst [vmem:[#allocation44_spill] sm:$0xff] %v9215_v42 }
 0x603   : > { %v3256_v6 = vpop.f32.mrf.mxu3  ;;  %v3565_v32 = vpop.f32.mrf.mxu2  ;;  %v9186_v29 = vadd.f32 %v3919_v62, %v8652_v55  ;;  %v9189_v11 = vadd.f32 %v3487_v33, %v8806_v39  ;;  %v5774_v55 = vld [vmem:[%s10151_s9 + $0x20] sm:$0xff] }
 0x604   : > { %v3257_v56 = vadd.f32 %v3256_v6, %v8935_v49  ;;  %v3661_v8 = vadd.f32 %v9060_v63, %v3565_v32  ;;  %v9195_v28 = vpop.f32.mrf.mxu0  ;;  %4644 = vperm.xlu1 %5656, %v5774_v55   ;;  %v10798_v63 = vld [vmem:[#allocation45_spill] sm:$0xff]  ;;  %v10800_v33 = vld [vmem:[#allocation22_spill] sm:$0xff] }
 0x605   : > { %4652 = vperm.xlu0 %5655, %v5775_v17   ;;  %5462 = vmatmul.msk.bf16.gmra.mxu0 %vm605_vm0, %v8814_v23  ;;  %v5776_v23 = vld [vmem:[%s10151_s9 + $0x18] sm:$0xff] }
 0x606   : > { %v3297_v7 = vrot.slane %v3257_v56, 1  ;;  %v3730_v3 = vrot.slane %v3661_v8, 7  ;;  %4640 = vperm.xlu2 %5654, %v5776_v23   ;;  %v5777_v23 = vld [vmem:[%s10151_s9 + $0x38] sm:$0xff] }
 0x608   : > { %v3308_v39 = vsel %vm2170_vm4, %v3296_v0, %v3297_v7  ;;  %v3779_v49 = vsel %vm1265_vm3, %v3729_v1, %v3730_v3  ;;  %5440 = vmatmul.msk.bf16.gmra.mxu2 %vm605_vm0, %v10798_v63  ;;  %5484 = vmatmul.msk.bf16.gmra.mxu1 %vm605_vm0, %v10798_v63  ;;  %v9222_v0 = vpop.permute.xlu0 %4248 }
 0x609   : > { %v3488_v62 = vmul.f32 %v10800_v33, %v3308_v39  ;;  %v3920_v6 = vmul.f32 %v9095_v25, %v3779_v49  ;;  %10801 = vst [vmem:[#allocation36_spill] sm:$0xff] %v9222_v0  ;;  %v9234_v39 = vpop.f32.mrf.mxu1 }
 0x60b   : > { %v3258_v1 = vpop.f32.mrf.mxu3  ;;  %v3568_v32 = vpop.f32.mrf.mxu2  ;;  %v9225_v56 = vadd.f32 %v3920_v6, %v8682_v54  ;;  %v9228_v8 = vadd.f32 %v3488_v62, %v8833_v4  ;;  %v5778_v54 = vld [vmem:[%s10151_s9 + $0x48] sm:$0xff] }
 0x60c   : > { %v3259_v55 = vadd.f32 %v3258_v1, %v8969_v24  ;;  %v3664_v17 = vadd.f32 %v9081_v13, %v3568_v32  ;;  %v9232_v25 = vpop.f32.mrf.mxu0  ;;  %4656 = vperm.xlu1 %5656, %v5777_v23   ;;  %v10802_v13 = vld [vmem:[#allocation30_spill] sm:$0xff]  ;;  %v9248_v62 = vpop.permute.xlu2 %3856  ;;  %v10803_v1 = vld [vmem:[#allocation63_spill] sm:$0xff] }
 0x60d   : > { %4664 = vperm.xlu0 %5655, %v5778_v54   ;;  %v10805_v54 = vld [vmem:[#allocation58_spill] sm:$0xff] }
 0x60e   : > { %v3298_v49 = vrot.slane %v3259_v55, 1  ;;  %v3731_v33 = vrot.slane %v3664_v17, 7  ;;  %v5779_v55 = vld [vmem:[%s10151_s9 + $0x28] sm:$0xff]  ;;  %v9255_v17 = vpop.permute.xlu1 %4252 }
 0x60f   : > { %4648 = vperm.xlu2 %5654, %v5779_v55   ;;  %10804 = vst [vmem:[#allocation49_spill] sm:$0xff] %v9255_v17  ;;  %v5780_v17 = vld [vmem:[%s10151_s9 + $0x50] sm:$0xff] }
 0x610   : > { %v3307_v4 = vsel %vm2170_vm4, %v3297_v7, %v3298_v49  ;;  %v3778_v24 = vsel %vm1265_vm3, %v3730_v3, %v3731_v33  ;;  %5498 = vmatmul.msk.bf16.gmra.mxu3 %vm605_vm0, %v10802_v13 }
 0x611   : > { %v3489_v6 = vmul.f32 %v8981_v52, %v3307_v4  ;;  %v3921_v32 = vmul.f32 %v10803_v1, %v3778_v24  ;;  %v9265_v4 = vpop.permute.xlu0 %4260 }
 0x612   : > { %10806 = vst [vmem:[#allocation14_spill] sm:$0xff] %v9265_v4 }
 0x613   : > { %v3261_v7 = vpop.f32.mrf.mxu3  ;;  %v3570_v23 = vpop.f32.mrf.mxu2  ;;  %v9258_v3 = vadd.f32 %v3921_v32, %v10805_v54  ;;  %v9261_v13 = vadd.f32 %v3489_v6, %v8861_v9  ;;  %v5781_v9 = vld [vmem:[%s10151_s9 + $0x60] sm:$0xff]  ;;  %v10807_v6 = vld [vmem:[#allocation51_spill] sm:$0xff]  ;;  %v10808_v32 = vld [vmem:[#allocation69_spill] sm:$0xff] }
 0x614   : > { %v3262_v0 = vadd.f32 %v3261_v7, %v8997_v10  ;;  %v3666_v52 = vadd.f32 %v9111_v37, %v3570_v23  ;;  %v9267_v24 = vpop.f32.mrf.mxu0  ;;  %4668 = vperm.xlu1 %5656, %v5780_v17   ;;  %v9277_v10 = vpop.f32.mrf.mxu1  ;;  %v10809_v7 = vld [vmem:[#allocation57_spill] sm:$0xff] }
 0x615   : > { %4676 = vperm.xlu0 %5655, %v5781_v9   ;;  %5463 = vmatmul.msk.bf16.gmra.mxu0 %vm605_vm0, %v8869_v57  ;;  %v5782_v57 = vld [vmem:[%s10151_s9 + $0x40] sm:$0xff]  ;;  %v9292_v54 = vpop.permute.xlu2 %3868 }
 0x616   : > { %v3299_v1 = vrot.slane %v3262_v0, 1  ;;  %v3732_v55 = vrot.slane %v3666_v52, 7 }
 0x617   : > { %4660 = vperm.xlu2 %5654, %v5782_v57  }
 0x618   : > { %v3306_v37 = vsel %vm2170_vm4, %v3298_v49, %v3299_v1  ;;  %v3777_v0 = vsel %vm1265_vm3, %v3731_v33, %v3732_v55  ;;  %5441 = vmatmul.msk.bf16.gmra.mxu2 %vm605_vm0, %v10807_v6  ;;  %5485 = vmatmul.msk.bf16.gmra.mxu1 %vm605_vm0, %v10807_v6  ;;  %v10810_v33 = vld [vmem:[#allocation42_spill] sm:$0xff] }
 0x619   : > { %v3490_v17 = vmul.f32 %v10808_v32, %v3306_v37  ;;  %v3922_v23 = vmul.f32 %v10809_v7, %v3777_v0  ;;  %v9302_v0 = vpop.permute.xlu1 %4264  ;;  %v9306_v41 = vpop.permute.xlu0 %4272 }
 0x61a   : > { %10812 = vst [vmem:[#allocation41_spill] sm:$0xff] %v9302_v0 }
 0x61b   : > { %v3263_v49 = vpop.f32.mrf.mxu3  ;;  %v3573_v52 = vpop.f32.mrf.mxu2  ;;  %v9295_v9 = vadd.f32 %v3922_v23, %v10810_v33  ;;  %v9298_v4 = vadd.f32 %v3490_v17, %v8888_v22  ;;  %10813 = vst [vmem:[#allocation72_spill] sm:$0xff] %v9306_v41  ;;  %v5783_v23 = vld [vmem:[%s10151_s9 + $0x68] sm:$0xff]  ;;  %v5784_v22 = vld [vmem:[%s10151_s9 + $0x78] sm:$0xff] }
 0x61c   : > { %v3264_v42 = vadd.f32 %v3263_v49, %v9024_v12  ;;  %v3669_v37 = vadd.f32 %v9135_v21, %v3573_v52  ;;  %v9304_v32 = vpop.f32.mrf.mxu0  ;;  %4680 = vperm.xlu1 %5656, %v5783_v23   ;;  %v5785_v52 = vld [vmem:[%s10151_s9 + $0x58] sm:$0xff]  ;;  %v9325_v33 = vpop.f32.mrf.mxu1 }
 0x61d   : > { %10811 = vst [vmem:[#allocation11_spill] sm:$0xff] %v9295_v9  ;;  %4688 = vperm.xlu0 %5655, %v5784_v22  }
 0x61e   : > { %v3300_v7 = vrot.slane %v3264_v42, 1  ;;  %v3733_v57 = vrot.slane %v3669_v37, 7  ;;  %v10814_v42 = vld [vmem:[#allocation48_spill] sm:$0xff] }
 0x61f   : > { %4672 = vperm.xlu2 %5654, %v5785_v52  }
 0x620   : > { %v3305_v12 = vsel %vm2170_vm4, %v3299_v1, %v3300_v7  ;;  %v3776_v21 = vsel %vm1265_vm3, %v3732_v55, %v3733_v57  ;;  %5499 = vmatmul.msk.bf16.gmra.mxu3 %vm605_vm0, %v8836_v47  ;;  %v10815_v1 = vld [vmem:[#allocation27_spill] sm:$0xff] }
 0x621   : > { %v3491_v17 = vmul.f32 %v10814_v42, %v3305_v12  ;;  %v3923_v49 = vmul.f32 %v9123_v27, %v3776_v21  ;;  %v9335_v27 = vpop.permute.xlu2 %3880  ;;  %v9339_v41 = vpop.permute.xlu1 %4276 }
 0x622   : > { %10816 = vst [vmem:[#allocation45_spill] sm:$0xff] %v9339_v41  ;;  %v10823_v41 = vld [vmem:[#allocation26_spill] sm:$0xff] }
 0x623   : > { %v3266_v37 = vpop.f32.mrf.mxu3  ;;  %v3575_v23 = vpop.f32.mrf.mxu2  ;;  %v9328_v22 = vadd.f32 %v3923_v49, %v10815_v1  ;;  %v9331_v55 = vadd.f32 %v3491_v17, %v8916_v5  ;;  %v5786_v49 = vld [vmem:[%s10151_s9 + $0x80] sm:$0xff]  ;;  %v5787_v5 = vld [vmem:[%s10151_s9 + $0x90] sm:$0xff] }
 0x624   : > { %v3267_v47 = vadd.f32 %v3266_v37, %v9056_v48  ;;  %v3671_v12 = vadd.f32 %v9162_v18, %v3575_v23  ;;  %v9337_v21 = vpop.f32.mrf.mxu0  ;;  %4692 = vperm.xlu1 %5656, %v5786_v49   ;;  %v10817_v48 = vld [vmem:[#allocation35_spill] sm:$0xff]  ;;  %v9357_v23 = vpop.permute.xlu0 %4284  ;;  %v5788_v49 = vld [vmem:[%s10151_s9 + $0x70] sm:$0xff] }
 0x625   : > { %4700 = vperm.xlu0 %5655, %v5787_v5   ;;  %5536 = vmatmul.msk.bf16.vlgmr.msra.gmra.mxu0 %vm605_vm0, %v10817_v48  ;;  %v10818_v37 = vld [vmem:[#allocation59_spill] sm:$0xff]  ;;  %10819 = vst [vmem:[#allocation22_spill] sm:$0xff] %v9357_v23 }
 0x626   : > { %v3301_v42 = vrot.slane %v3267_v47, 1  ;;  %v3734_v52 = vrot.slane %v3671_v12, 7  ;;  %v10820_v47 = vld [vmem:[#allocation55_spill] sm:$0xff] }
 0x627   : > { %4684 = vperm.xlu2 %5654, %v5788_v49   ;;  %v10826_v49 = vld [vmem:[#allocation33_spill] sm:$0xff] }
 0x628   : > { %v3304_v18 = vsel %vm2170_vm4, %v3300_v7, %v3301_v42  ;;  %v3775_v17 = vsel %vm1265_vm3, %v3733_v57, %v3734_v52  ;;  %5442 = vmatmul.msk.bf16.gmra.mxu2 %vm605_vm0, %v10818_v37  ;;  %5486 = vmatmul.msk.bf16.gmra.mxu1 %vm605_vm0, %v10818_v37  ;;  %v10821_v57 = vld [vmem:[#allocation53_spill] sm:$0xff] }
 0x629   : > { %v3492_v1 = vmul.f32 %v9013_v40, %v3304_v18  ;;  %v3924_v12 = vmul.f32 %v10820_v47, %v3775_v17  ;;  %v9374_v18 = vpop.f32.mrf.mxu1  ;;  %v9376_v38 = vpop.permute.xlu2 %3892 }
 0x62b   : > { %v3268_v7 = vpop.f32.mrf.mxu3  ;;  %v3578_v5 = vpop.f32.mrf.mxu2  ;;  %v9365_v48 = vadd.f32 %v3924_v12, %v10821_v57  ;;  %v9368_v0 = vadd.f32 %v3492_v1, %v10823_v41  ;;  %v5789_v12 = vld [vmem:[%s10151_s9 + $0x98] sm:$0xff]  ;;  %v5790_v41 = vld [vmem:[%s10151_s9 + $0xa8] sm:$0xff] }
 0x62c   : > { %v3269_v2 = vadd.f32 %v3268_v7, %v9083_v30  ;;  %v3674_v23 = vadd.f32 %v9195_v28, %v3578_v5  ;;  %v9372_v40 = vpop.f32.mrf.mxu0  ;;  %4704 = vperm.xlu1 %5656, %v5789_v12   ;;  %v10824_v28 = vld [vmem:[#allocation6_spill] sm:$0xff]  ;;  %v9394_v7 = vpop.permute.xlu1 %4288  ;;  %v10828_v5 = vld [vmem:[#allocation25_spill] sm:$0xff]  ;;  %v10829_v12 = vld [vmem:[#allocation16_spill] sm:$0xff] }
 0x62d   : > { %10822 = vst [vmem:[#allocation30_spill] sm:$0xff] %v9365_v48  ;;  %4712 = vperm.xlu0 %5655, %v5790_v41   ;;  %v10825_v1 = vrot.slane %v10824_v28, 1  ;;  %v10830_v48 = vld [vmem:[#allocation50_spill] sm:$0xff] }
 0x62e   : > { %v3302_v17 = vrot.slane %v3269_v2, 1  ;;  %v3735_v47 = vrot.slane %v3674_v23, 7  ;;  %10827 = vst [vmem:[#allocation63_spill] sm:$0xff] %v9394_v7  ;;  %v10834_v7 = vld [vmem:[#allocation38_spill] sm:$0xff] }
 0x630   : > { %v3303_v30 = vsel %vm2170_vm4, %v3301_v42, %v3302_v17  ;;  %v3334_v2 = vsel %vm2170_vm4, %v3302_v17, %v10825_v1  ;;  %v3774_v23 = vsel %vm1265_vm3, %v3734_v52, %v3735_v47  ;;  %5500 = vmatmul.msk.bf16.gmra.mxu3 %vm605_vm0, %v10826_v49  ;;  %v5791_v42 = vld [vmem:[%s10151_s9 + $0x88] sm:$0xff]  ;;  %v4297_v17 = vpop.permute.xlu0 %4296  ;;  %v10831_v1 = vld [vmem:[#allocation74_spill] sm:$0xff]  ;;  %v10832_v49 = vld [vmem:[#allocation28_spill] sm:$0xff] }
 0x631   : > { %v3493_v57 = vmul.f32 %v10828_v5, %v3303_v30  ;;  %v3494_v41 = vmul.f32 %v10829_v12, %v3334_v2  ;;  %v3925_v37 = vmul.f32 %v10830_v48, %v3774_v23  ;;  %4696 = vperm.xlu2 %5654, %v5791_v42  }
 0x633   : > { %v3580_v28 = vpop.f32.mrf.mxu2  ;;  %v4095_v52 = vpop.f32.mrf.mxu3  ;;  %v3526_v9 = vadd.f32 %v3494_v41, %v10831_v1  ;;  %v9404_v34 = vadd.f32 %v3925_v37, %v10832_v49  ;;  %v9407_v30 = vadd.f32 %v3493_v57, %v10834_v7  ;;  %v5792_v41 = vld [vmem:[%s10151_s9 + $0xb0] sm:$0xff]  ;;  %v5793_v37 = vld [vmem:[%s10151_s9 + $0xc0] sm:$0xff] }
 0x634   : > { %v3676_v2 = vadd.f32 %v9232_v25, %v3580_v28  ;;  %v4096_v48 = vadd.f32 %v4095_v52, %v9113_v45  ;;  %v9411_v23 = vpop.f32.mrf.mxu0  ;;  %4716 = vperm.xlu1 %5656, %v5792_v41   ;;  %v5794_v25 = vld [vmem:[%s5903_s18 + $0x8] sm:$0xff]  ;;  %v9424_v45 = vpop.f32.mrf.mxu1  ;;  %v10836_v49 = vld [vmem:[#allocation52_spill] sm:$0xff] }
 0x635   : > { %10833 = vst [vmem:[#allocation58_spill] sm:$0xff] %v9404_v34  ;;  %v3978_v5 = vadd.f32 %v9051_v60, %v3526_v9  ;;  %4724 = vperm.xlu0 %5655, %v5793_v37   ;;  %5537 = vmatmul.msk.bf16.gmra.mxu0 %vm605_vm0, %v5794_v25  ;;  %v10835_v9 = vld [vmem:[#allocation70_spill] sm:$0xff]  ;;  %v9432_v7 = vpop.permute.xlu2 %3904  ;;  %v4301_v28 = vpop.permute.xlu1 %4300 }
 0x636   : > { %v3736_v12 = vrot.slane %v3676_v2, 7  ;;  %v9414_v42 = vmul.f32 %v4297_v17, %v4096_v48  ;;  %v5795_v17 = vld [vmem:[%s10151_s9 + $0xa0] sm:$0xff] }
 0x638   : > { %v3773_v60 = vsel %vm1265_vm3, %v3735_v47, %v3736_v12  ;;  %5443 = vmatmul.msk.bf16.gmra.mxu2 %vm605_vm0, %v10835_v9  ;;  %5487 = vmatmul.msk.bf16.gmra.mxu1 %vm605_vm0, %v10835_v9 }
 0x639   : > { %v3926_v57 = vmul.f32 %v9160_v61, %v3773_v60  ;;  %4708 = vperm.xlu2 %5654, %v5795_v17   ;;  %v5796_v61 = vld [vmem:[%s10151_s9 + $0xc8] sm:$0xff]  ;;  %v5797_v60 = vld [vmem:[%s10151_s9 + $0xd8] sm:$0xff]  ;;  %v10838_v17 = vld [vmem:[#allocation10_spill] sm:$0xff] }
 0x63b   : > { %v3583_v52 = vpop.f32.mrf.mxu2  ;;  %v4097_v1 = vpop.f32.mrf.mxu3  ;;  %v9439_v47 = vadd.f32 %v3926_v57, %v10836_v49 }
 0x63c   : > { %v3679_v2 = vadd.f32 %v9267_v24, %v3583_v52  ;;  %v4098_v48 = vadd.f32 %v4097_v1, %v9150_v26  ;;  %v9443_v41 = vpop.f32.mrf.mxu0  ;;  %4728 = vperm.xlu1 %5656, %v5796_v61   ;;  %v10837_v26 = vld [vmem:[#allocation60_spill] sm:$0xff]  ;;  %v5798_v52 = vld [vmem:[%s10151_s9 + $0xb8] sm:$0xff] }
 0x63d   : > { %4736 = vperm.xlu0 %5655, %v5797_v60   ;;  %v4177_v1 = vpop.permute.xlu2 %4176 }
 0x63e   : > { %v3737_v37 = vrot.slane %v3679_v2, 7  ;;  %v4334_v25 = vmul.f32 %v4301_v28, %v4098_v48  ;;  %v10839_v48 = vld [vmem:[#allocation4_spill] sm:$0xff] }
 0x640   : > { %v3772_v57 = vsel %vm1265_vm3, %v3736_v12, %v3737_v37  ;;  %v9453_v24 = vadd.f32 %v4334_v25, %v3978_v5  ;;  %5501 = vmatmul.msk.bf16.gmra.mxu3 %vm605_vm0, %v10837_v26  ;;  %v5799_v26 = vld [vmem:[%s10151_s9 + $0xe0] sm:$0xff] }
 0x641   : > { %v3927_v28 = vmul.f32 %v10838_v17, %v3772_v57  ;;  %4720 = vperm.xlu2 %5654, %v5798_v52   ;;  %v5800_v17 = vld [vmem:[%s10151_s9 + $0xf0] sm:$0xff]  ;;  %v10841_v52 = vld [vmem:[#allocation2_spill] sm:$0xff] }
 0x643   : > { %v3585_v49 = vpop.f32.mrf.mxu2  ;;  %v4100_v2 = vpop.f32.mrf.mxu3  ;;  %v9462_v61 = vadd.f32 %v3927_v28, %v10839_v48  ;;  %v5801_v28 = vld [vmem:[%s5903_s18 + $0x10] sm:$0xff] }
 0x644   : > { %v3681_v5 = vadd.f32 %v9304_v32, %v3585_v49  ;;  %v4101_v12 = vadd.f32 %v4100_v2, %v9191_v58  ;;  %v9466_v25 = vpop.f32.mrf.mxu0  ;;  %4740 = vperm.xlu1 %5656, %v5799_v26   ;;  %v5802_v2 = vld [vmem:[%s10151_s9 + $0xd0] sm:$0xff] }
 0x645   : > { %10840 = vst [vmem:[#allocation51_spill] sm:$0xff] %v9462_v61  ;;  %4748 = vperm.xlu0 %5655, %v5800_v17   ;;  %5538 = vmatmul.msk.bf16.gmra.mxu0 %vm605_vm0, %v5801_v28 }
 0x646   : > { %v3738_v60 = vrot.slane %v3681_v5, 7  ;;  %v4303_v57 = vmul.f32 %v4177_v1, %v4101_v12  ;;  %v10842_v1 = vld [vmem:[#allocation43_spill] sm:$0xff] }
 0x647   : > { %v10843_v12 = vld [vmem:[#allocation47_spill] sm:$0xff] }
 0x648   : > { %v3771_v58 = vsel %vm1265_vm3, %v3737_v37, %v3738_v60  ;;  %v9479_v32 = vadd.f32 %v4303_v57, %v9074_v20  ;;  %5516 = vmatmul.msk.bf16.vlgmr.msra.gmra.mxu2 %vm605_vm0, %v10841_v52 }
 0x649   : > { %v3928_v49 = vmul.f32 %v10842_v1, %v3771_v58  ;;  %4732 = vperm.xlu2 %5654, %v5802_v2   ;;  %v5803_v58 = vld [vmem:[%s10151_s9 + $0xf8] sm:$0xff] }
 0x64b   : > { %v3588_v48 = vpop.f32.mrf.mxu2  ;;  %v4102_v5 = vpop.f32.mrf.mxu3  ;;  %v9488_v26 = vadd.f32 %v3928_v49, %v10843_v12 }
 0x64c   : > { %v3684_v37 = vadd.f32 %v9337_v21, %v3588_v48  ;;  %v4103_v20 = vadd.f32 %v4102_v5, %v9234_v39  ;;  %v9492_v57 = vpop.f32.mrf.mxu0  ;;  %4752 = vperm.xlu1 %5656, %v5803_v58   ;;  %v9504_v21 = vld [vmem:[%s5903_s18 + $0x50] sm:$0xff]  ;;  %v10845_v48 = vld [vmem:[#allocation54_spill] sm:$0xff]  ;;  %v5806_v58 = vld [vmem:[%s5903_s18 + $0x18] sm:$0xff] }
 0x64d   : > { %10844 = vst [vmem:[#allocation69_spill] sm:$0xff] %v9488_v26 }
 0x64e   : > { %v3739_v17 = vrot.slane %v3684_v37, 7  ;;  %v4304_v28 = vmul.f32 %v9048_v51, %v4103_v20  ;;  %v5805_v51 = vld [vmem:[%s10151_s9 + $0xe8] sm:$0xff]  ;;  %v9519_v37 = vpop.f32.mrf.mxu1 }
 0x650   : > { %v3770_v52 = vsel %vm1265_vm3, %v3738_v60, %v3739_v17  ;;  %v9501_v1 = vadd.f32 %v4304_v28, %v9102_v31  ;;  %5502 = vmatmul.msk.bf16.gmra.mxu3 %vm605_vm0, %v9504_v21 }
 0x651   : > { %v3929_v39 = vmul.f32 %v9197_v59, %v3770_v52  ;;  %4744 = vperm.xlu2 %5654, %v5805_v51   ;;  %v10846_v59 = vld [vmem:[#allocation37_spill] sm:$0xff] }
 0x653   : > { %v3590_v49 = vpop.f32.mrf.mxu2  ;;  %v4105_v2 = vpop.f32.mrf.mxu3  ;;  %v9513_v60 = vadd.f32 %v3929_v39, %v10845_v48 }
 0x654   : > { %v3686_v31 = vadd.f32 %v9372_v40, %v3590_v49  ;;  %v4106_v5 = vadd.f32 %v4105_v2, %v9277_v10  ;;  %v9517_v12 = vpop.f32.mrf.mxu0  ;;  %v10847_v40 = vld [vmem:[#allocation3_spill] sm:$0xff]  ;;  %v10848_v10 = vld [vmem:[#allocation62_spill] sm:$0xff]  ;;  %v4189_v49 = vpop.permute.xlu2 %4188 }
 0x655   : > { %5539 = vmatmul.msk.bf16.gmra.mxu0 %vm605_vm0, %v5806_v58 }
 0x656   : > { %v3740_v20 = vrot.slane %v3686_v31, 7  ;;  %v4305_v28 = vmul.f32 %v10846_v59, %v4106_v5  ;;  %v10849_v31 = vld [vmem:[#allocation9_spill] sm:$0xff] }
 0x658   : > { %v3769_v52 = vsel %vm1265_vm3, %v3739_v17, %v3740_v20  ;;  %v9527_v39 = vadd.f32 %v4305_v28, %v9126_v44  ;;  %5517 = vmatmul.msk.bf16.gmra.mxu2 %vm605_vm0, %v10847_v40  ;;  %v9539_v28 = vpop.f32.mrf.mxu1 }
 0x659   : > { %v3930_v51 = vmul.f32 %v10848_v10, %v3769_v52  ;;  %v9547_v10 = vld [vmem:[%s5903_s18 + $0x58] sm:$0xff] }
 0x65b   : > { %v3593_v2 = vpop.f32.mrf.mxu2  ;;  %v4107_v48 = vpop.f32.mrf.mxu3  ;;  %v9533_v5 = vadd.f32 %v3930_v51, %v10849_v31 }
 0x65c   : > { %v3689_v59 = vadd.f32 %v9411_v23, %v3593_v2  ;;  %v4108_v58 = vadd.f32 %v4107_v48, %v9325_v33  ;;  %v9537_v17 = vpop.f32.mrf.mxu0  ;;  %v10851_v23 = vld [vmem:[#allocation15_spill] sm:$0xff]  ;;  %v10852_v48 = vld [vmem:[#allocation73_spill] sm:$0xff] }
 0x65d   : > { %10850 = vst [vmem:[#allocation57_spill] sm:$0xff] %v9533_v5 }
 0x65e   : > { %v3741_v26 = vrot.slane %v3689_v59, 7  ;;  %v4306_v44 = vmul.f32 %v4189_v49, %v4108_v58 }
 0x660   : > { %v3768_v52 = vsel %vm1265_vm3, %v3740_v20, %v3741_v26  ;;  %v9544_v40 = vadd.f32 %v4306_v44, %v9153_v35  ;;  %5503 = vmatmul.msk.bf16.gmra.mxu3 %vm605_vm0, %v9547_v10  ;;  %v5808_v44 = vld [vmem:[%s5903_s18 + $0x20] sm:$0xff] }
 0x661   : > { %v3931_v33 = vmul.f32 %v10851_v23, %v3768_v52 }
 0x663   : > { %v3595_v51 = vpop.f32.mrf.mxu2  ;;  %v4110_v2 = vpop.f32.mrf.mxu3  ;;  %v9553_v31 = vadd.f32 %v3931_v33, %v10852_v48  ;;  %v10854_v33 = vld [vmem:[#allocation5_spill] sm:$0xff] }
 0x664   : > { %v3691_v49 = vadd.f32 %v9443_v41, %v3595_v51  ;;  %v4111_v59 = vadd.f32 %v4110_v2, %v9374_v18  ;;  %v9557_v20 = vpop.f32.mrf.mxu0  ;;  %v4025_v41 = vpop.f32.mrf.mxu1 }
 0x665   : > { %10853 = vst [vmem:[#allocation42_spill] sm:$0xff] %v9553_v31  ;;  %5540 = vmatmul.msk.bf16.gmra.mxu0 %vm605_vm0, %v5808_v44  ;;  %v4197_v51 = vpop.permute.xlu2 %4196 }
 0x666   : > { %v3742_v35 = vrot.slane %v3691_v49, 7  ;;  %v4307_v58 = vmul.f32 %v9068_v16, %v4111_v59  ;;  %v10855_v16 = vld [vmem:[#allocation20_spill] sm:$0xff] }
 0x668   : > { %v3767_v52 = vsel %vm1265_vm3, %v3741_v26, %v3742_v35  ;;  %v9565_v23 = vadd.f32 %v4307_v58, %v9186_v29  ;;  %5518 = vmatmul.msk.bf16.gmra.mxu2 %vm605_vm0, %v10854_v33 }
 0x669   : > { %v3932_v18 = vmul.f32 %v9248_v62, %v3767_v52  ;;  %v9583_v52 = vld [vmem:[%s5903_s18 + $0x60] sm:$0xff] }
 0x66b   : > { %v3598_v2 = vpop.f32.mrf.mxu2  ;;  %v4112_v48 = vpop.f32.mrf.mxu3  ;;  %v9571_v49 = vadd.f32 %v3932_v18, %v10855_v16  ;;  %v10856_v18 = vld [vmem:[#allocation66_spill] sm:$0xff] }
 0x66c   : > { %v3694_v59 = vadd.f32 %v9466_v25, %v3598_v2  ;;  %v4113_v26 = vadd.f32 %v4112_v48, %v9424_v45  ;;  %v9575_v44 = vpop.f32.mrf.mxu0  ;;  %v10857_v48 = vld [vmem:[#allocation65_spill] sm:$0xff] }
 0x66e   : > { %v3743_v29 = vrot.slane %v3694_v59, 7  ;;  %v4308_v58 = vmul.f32 %v4197_v51, %v4113_v26  ;;  %v9593_v51 = vpop.f32.mrf.mxu1  ;;  %v5810_v26 = vld [vmem:[%s5903_s18 + $0x28] sm:$0xff] }
 0x66f   : > { %10859 = vst [vmem:[#allocation27_spill] sm:$0xff] %v9593_v51  ;;  %v5812_v51 = vld [vmem:[%s5903_s18 + $0x30] sm:$0xff] }
 0x670   : > { %v3766_v33 = vsel %vm1265_vm3, %v3742_v35, %v3743_v29  ;;  %v9580_v62 = vadd.f32 %v4308_v58, %v9225_v56  ;;  %5504 = vmatmul.msk.bf16.gmra.mxu3 %vm605_vm0, %v9583_v52 }
 0x671   : > { %v3933_v25 = vmul.f32 %v10856_v18, %v3766_v33  ;;  %v10860_v33 = vld [vmem:[#allocation8_spill] sm:$0xff] }
 0x672   : > { %v10861_v18 = vld [vmem:[#allocation32_spill] sm:$0xff] }
 0x673   : > { %v3600_v2 = vpop.f32.mrf.mxu2  ;;  %v9588_v45 = vpop.f32.mrf.mxu3  ;;  %v9591_v16 = vadd.f32 %v3933_v25, %v10857_v48 }
 0x674   : > { %v3696_v35 = vadd.f32 %v9492_v57, %v3600_v2  ;;  %v9596_v59 = vpop.f32.mrf.mxu0  ;;  %v9605_v48 = vpop.permute.xlu1 %4636 }
 0x675   : > { %10858 = vst [vmem:[#allocation48_spill] sm:$0xff] %v9591_v16  ;;  %5541 = vmatmul.msk.bf16.gmra.mxu0 %vm605_vm0, %v5810_v26 }
 0x676   : > { %v3744_v56 = vrot.slane %v3696_v35, 7  ;;  %v9613_v35 = vpop.permute.xlu0 %4632 }
 0x678   : > { %v3765_v58 = vsel %vm1265_vm3, %v3743_v29, %v3744_v56  ;;  %5519 = vmatmul.msk.bf16.gmra.mxu2 %vm605_vm0, %v10860_v33  ;;  %v9617_v29 = vpop.f32.mrf.mxu1  ;;  %v9622_v33 = vld [vmem:[%s5903_s18 + $0x68] sm:$0xff] }
 0x679   : > { %v3934_v25 = vmul.f32 %v10861_v18, %v3765_v58  ;;  %10863 = vst [vmem:[#allocation55_spill] sm:$0xff] %v9617_v29  ;;  %v4209_v18 = vpop.permute.xlu2 %4208 }
 0x67b   : > { %v3603_v16 = vpop.f32.mrf.mxu2  ;;  %v9607_v31 = vpop.f32.mrf.mxu3  ;;  %v9610_v57 = vadd.f32 %v3934_v25, %v9054_v50 }
 0x67c   : > { %v3699_v2 = vadd.f32 %v9517_v12, %v3603_v16  ;;  %v9615_v26 = vpop.f32.mrf.mxu0  ;;  %v9631_v61 = vpop.permute.xlu1 %4644 }
 0x67d   : > { %10862 = vst [vmem:[#allocation35_spill] sm:$0xff] %v9610_v57 }
 0x67e   : > { %v3745_v5 = vrot.slane %v3699_v2, 7  ;;  %v9635_v29 = vpop.permute.xlu0 %4652 }
 0x680   : > { %v3764_v58 = vsel %vm1265_vm3, %v3744_v56, %v3745_v5  ;;  %5505 = vmatmul.msk.bf16.gmra.mxu3 %vm605_vm0, %v9622_v33 }
 0x681   : > { %v3935_v50 = vmul.f32 %v9292_v54, %v3764_v58  ;;  %v4032_v54 = vpop.f32.mrf.mxu1 }
 0x683   : > { %v3605_v12 = vpop.f32.mrf.mxu2  ;;  %v4120_v16 = vpop.f32.mrf.mxu3  ;;  %v9628_v25 = vadd.f32 %v3935_v50, %v9077_v43 }
 0x684   : > { %v3701_v57 = vadd.f32 %v9537_v17, %v3605_v12  ;;  %v4121_v2 = vadd.f32 %v4120_v16, %v4025_v41  ;;  %v9633_v34 = vpop.f32.mrf.mxu0  ;;  %v10865_v17 = vld [vmem:[#allocation12_spill] sm:$0xff]  ;;  %v10866_v41 = vld [vmem:[#allocation39_spill] sm:$0xff] }
 0x685   : > { %5542 = vmatmul.msk.bf16.gmra.mxu0 %vm605_vm0, %v5812_v51 }
 0x686   : > { %v3746_v56 = vrot.slane %v3701_v57, 7  ;;  %v4311_v9 = vmul.f32 %v4209_v18, %v4121_v2  ;;  %v9655_v2 = vpop.permute.xlu1 %4656 }
 0x688   : > { %v3763_v43 = vsel %vm1265_vm3, %v3745_v5, %v3746_v56  ;;  %v9642_v58 = vadd.f32 %v4311_v9, %v9328_v22  ;;  %5520 = vmatmul.msk.bf16.gmra.mxu2 %vm605_vm0, %v10865_v17  ;;  %v9660_v9 = vld [vmem:[%s5903_s18 + $0x70] sm:$0xff] }
 0x689   : > { %v3936_v50 = vmul.f32 %v10866_v41, %v3763_v43  ;;  %v9664_v43 = vpop.permute.xlu0 %4664  ;;  %v9667_v41 = vpop.f32.mrf.mxu1 }
 0x68a   : > { %10864 = vst [vmem:[#allocation53_spill] sm:$0xff] %v9642_v58  ;;  %v5814_v58 = vld [vmem:[%s5903_s18 + $0x38] sm:$0xff] }
 0x68b   : > { %v3608_v57 = vpop.f32.mrf.mxu2  ;;  %v9647_v18 = vpop.f32.mrf.mxu3  ;;  %v9650_v12 = vadd.f32 %v3936_v50, %v9105_v14  ;;  %10868 = vst [vmem:[#allocation6_spill] sm:$0xff] %v9664_v43  ;;  %v10869_v14 = vld [vmem:[#allocation68_spill] sm:$0xff] }
 0x68c   : > { %v3704_v51 = vadd.f32 %v9557_v20, %v3608_v57  ;;  %v9653_v16 = vpop.f32.mrf.mxu0  ;;  %10870 = vst [vmem:[#allocation33_spill] sm:$0xff] %v9667_v41 }
 0x68d   : > { %10867 = vst [vmem:[#allocation26_spill] sm:$0xff] %v9650_v12 }
 0x68e   : > { %v3747_v5 = vrot.slane %v3704_v51, 7 }
 0x690   : > { %v3762_v22 = vsel %vm1265_vm3, %v3746_v56, %v3747_v5  ;;  %5506 = vmatmul.msk.bf16.gmra.mxu3 %vm605_vm0, %v9660_v9 }
 0x691   : > { %v3937_v17 = vmul.f32 %v10869_v14, %v3762_v22  ;;  %v10873_v22 = vld [vmem:[#allocation18_spill] sm:$0xff]  ;;  %v9683_v14 = vpop.permute.xlu1 %4668 }
 0x692   : > { %10874 = vst [vmem:[#allocation50_spill] sm:$0xff] %v9683_v14 }
 0x693   : > { %v3610_v20 = vpop.f32.mrf.mxu2  ;;  %v9669_v50 = vpop.f32.mrf.mxu3  ;;  %v9672_v57 = vadd.f32 %v3937_v17, %v9129_v46 }
 0x694   : > { %10871 = vst [vmem:[#allocation25_spill] sm:$0xff] %v9669_v50  ;;  %v3706_v51 = vadd.f32 %v9575_v44, %v3610_v20  ;;  %v9675_v56 = vpop.f32.mrf.mxu0  ;;  %v4221_v17 = vpop.permute.xlu2 %4220 }
 0x695   : > { %10872 = vst [vmem:[#allocation16_spill] sm:$0xff] %v9672_v57  ;;  %5543 = vmatmul.msk.bf16.gmra.mxu0 %vm605_vm0, %v5814_v58  ;;  %v9686_v57 = vpop.permute.xlu0 %4676  ;;  %v9691_v58 = vpop.f32.mrf.mxu1 }
 0x696   : > { %v3748_v12 = vrot.slane %v3706_v51, 7  ;;  %10875 = vst [vmem:[#allocation74_spill] sm:$0xff] %v9686_v57  ;;  %v9702_v57 = vld [vmem:[%s5903_s18 + $0x78] sm:$0xff] }
 0x697   : > { %10877 = vst [vmem:[#allocation38_spill] sm:$0xff] %v9691_v58 }
 0x698   : > { %v3761_v43 = vsel %vm1265_vm3, %v3747_v5, %v3748_v12  ;;  %5521 = vmatmul.msk.bf16.gmra.mxu2 %vm605_vm0, %v10873_v22 }
 0x699   : > { %v3938_v46 = vmul.f32 %v9335_v27, %v3761_v43 }
 0x69b   : > { %v3613_v44 = vpop.f32.mrf.mxu2  ;;  %v4127_v20 = vpop.f32.mrf.mxu3  ;;  %v9689_v51 = vadd.f32 %v3938_v46, %v9156_v53  ;;  %v10878_v53 = vld [vmem:[#allocation40_spill] sm:$0xff] }
 0x69c   : > { %v3709_v5 = vadd.f32 %v9596_v59, %v3613_v44  ;;  %v4128_v41 = vadd.f32 %v4127_v20, %v4032_v54  ;;  %v9694_v50 = vpop.f32.mrf.mxu0  ;;  %v9707_v59 = vpop.permute.xlu1 %4680 }
 0x69d   : > { %10876 = vst [vmem:[#allocation28_spill] sm:$0xff] %v9689_v51  ;;  %v10883_v51 = vld [vmem:[#allocation64_spill] sm:$0xff] }
 0x69e   : > { %v3749_v22 = vrot.slane %v3709_v5, 7  ;;  %v4314_v14 = vmul.f32 %v4221_v17, %v4128_v41  ;;  %10879 = vst [vmem:[#allocation52_spill] sm:$0xff] %v9707_v59  ;;  %v9715_v17 = vpop.permute.xlu0 %4688  ;;  %v5816_v5 = vld [vmem:[%s5903_s18 + $0x40] sm:$0xff] }
 0x69f   : > { %10881 = vst [vmem:[#allocation10_spill] sm:$0xff] %v9715_v17 }
 0x6a0   : > { %v3760_v27 = vsel %vm1265_vm3, %v3748_v12, %v3749_v22  ;;  %v9699_v43 = vadd.f32 %v4314_v14, %v9439_v47  ;;  %5507 = vmatmul.msk.bf16.gmra.mxu3 %vm605_vm0, %v9702_v57  ;;  %v4040_v14 = vpop.f32.mrf.mxu1 }
 0x6a1   : > { %v3939_v46 = vmul.f32 %v10878_v53, %v3760_v27  ;;  %v10882_v53 = vld [vmem:[#allocation24_spill] sm:$0xff] }
 0x6a3   : > { %v3615_v54 = vpop.f32.mrf.mxu2  ;;  %v9709_v44 = vpop.f32.mrf.mxu3  ;;  %v9712_v41 = vadd.f32 %v3939_v46, %v9189_v11 }
 0x6a4   : > { %v3711_v12 = vadd.f32 %v9615_v26, %v3615_v54  ;;  %v9717_v47 = vpop.f32.mrf.mxu0  ;;  %v4233_v46 = vpop.permute.xlu2 %4232 }
 0x6a5   : > { %10880 = vst [vmem:[#allocation60_spill] sm:$0xff] %v9712_v41  ;;  %5544 = vmatmul.msk.bf16.gmra.mxu0 %vm605_vm0, %v5816_v5  ;;  %v9732_v17 = vpop.permute.xlu1 %4692 }
 0x6a6   : > { %v3750_v20 = vrot.slane %v3711_v12, 7  ;;  %10886 = vst [vmem:[#allocation43_spill] sm:$0xff] %v9732_v17  ;;  %v9736_v59 = vpop.permute.xlu0 %4700 }
 0x6a7   : > { %10887 = vst [vmem:[#allocation47_spill] sm:$0xff] %v9736_v59 }
 0x6a8   : > { %v3759_v27 = vsel %vm1265_vm3, %v3749_v22, %v3750_v20  ;;  %5522 = vmatmul.msk.bf16.gmra.mxu2 %vm605_vm0, %v10882_v53  ;;  %v9738_v53 = vpop.f32.mrf.mxu1 }
 0x6a9   : > { %v3940_v11 = vmul.f32 %v10883_v51, %v3759_v27  ;;  %10888 = vst [vmem:[#allocation54_spill] sm:$0xff] %v9738_v53  ;;  %v5817_v53 = vld [vmem:[%s5903_s18 + $0x48] sm:$0xff] }
 0x6ab   : > { %v3618_v41 = vpop.f32.mrf.mxu2  ;;  %v9726_v26 = vpop.f32.mrf.mxu3  ;;  %v9729_v54 = vadd.f32 %v3940_v11, %v9228_v8 }
 0x6ac   : > { %10884 = vst [vmem:[#allocation4_spill] sm:$0xff] %v9726_v26  ;;  %v3714_v12 = vadd.f32 %v9633_v34, %v3618_v41  ;;  %v9734_v5 = vpop.f32.mrf.mxu0 }
 0x6ad   : > { %10885 = vst [vmem:[#allocation2_spill] sm:$0xff] %v9729_v54  ;;  %v4245_v54 = vpop.permute.xlu2 %4244  ;;  %v9749_v58 = vpop.permute.xlu1 %4704 }
 0x6ae   : > { %v3751_v22 = vrot.slane %v3714_v12, 7 }
 0x6b0   : > { %v3758_v51 = vsel %vm1265_vm3, %v3750_v20, %v3751_v22 }
 0x6b1   : > { %v3941_v27 = vmul.f32 %v9376_v38, %v3758_v51  ;;  %v9763_v51 = vpop.f32.mrf.mxu1 }
 0x6b3   : > { %v3620_v26 = vpop.f32.mrf.mxu2  ;;  %v4135_v8 = vpop.f32.mrf.mxu3  ;;  %v9744_v11 = vadd.f32 %v3941_v27, %v9261_v13  ;;  %v10890_v13 = vld [vmem:[#allocation29_spill] sm:$0xff] }
 0x6b4   : > { %v3716_v34 = vadd.f32 %v9653_v16, %v3620_v26  ;;  %v4136_v41 = vadd.f32 %v4135_v8, %v4040_v14  ;;  %v9747_v17 = vpop.f32.mrf.mxu0  ;;  %v9760_v16 = vpop.permute.xlu0 %4712  ;;  %v10892_v14 = vld [vmem:[#allocation61_spill] sm:$0xff] }
 0x6b5   : > { %10889 = vst [vmem:[#allocation37_spill] sm:$0xff] %v9744_v11  ;;  %5545 = vmatmul.msk.bf16.gmra.mxu0 %vm605_vm0, %v5817_v53 }
 0x6b6   : > { %v3752_v12 = vrot.slane %v3716_v34, 7  ;;  %v4317_v59 = vmul.f32 %v4233_v46, %v4136_v41  ;;  %10891 = vst [vmem:[#allocation3_spill] sm:$0xff] %v9760_v16  ;;  %v9777_v41 = vpop.permute.xlu1 %4716 }
 0x6b7   : > { %10894 = vst [vmem:[#allocation9_spill] sm:$0xff] %v9777_v41 }
 0x6b8   : > { %v3757_v38 = vsel %vm1265_vm3, %v3751_v22, %v3752_v12  ;;  %v9756_v20 = vadd.f32 %v4317_v59, %v9513_v60  ;;  %5523 = vmatmul.msk.bf16.gmra.mxu2 %vm605_vm0, %v10890_v13  ;;  %v9773_v59 = vpop.permute.xlu2 %4256 }
 0x6b9   : > { %v3942_v26 = vmul.f32 %v10892_v14, %v3757_v38  ;;  %v10895_v38 = vld [vmem:[#allocation19_spill] sm:$0xff] }
 0x6bb   : > { %v3623_v46 = vpop.f32.mrf.mxu2  ;;  %v9765_v27 = vpop.f32.mrf.mxu3  ;;  %v9768_v53 = vadd.f32 %v3942_v26, %v9298_v4 }
 0x6bc   : > { %v3719_v22 = vadd.f32 %v9675_v56, %v3623_v46  ;;  %v9771_v8 = vpop.f32.mrf.mxu0  ;;  %v9780_v14 = vpop.permute.xlu0 %4724 }
 0x6bd   : > { %10893 = vst [vmem:[#allocation62_spill] sm:$0xff] %v9768_v53  ;;  %v4047_v56 = vpop.f32.mrf.mxu1 }
 0x6be   : > { %v3753_v60 = vrot.slane %v3719_v22, 7  ;;  %10896 = vst [vmem:[#allocation15_spill] sm:$0xff] %v9780_v14  ;;  %v10900_v14 = vld [vmem:[#allocation31_spill] sm:$0xff] }
 0x6c0   : > { %v3756_v34 = vsel %vm1265_vm3, %v3752_v12, %v3753_v60 }
 0x6c1   : > { %v3943_v13 = vmul.f32 %v10895_v38, %v3756_v34  ;;  %v10898_v34 = vld [vmem:[#allocation56_spill] sm:$0xff] }
 0x6c2   : > { %v10899_v38 = vrot.slane %v10898_v34, 7 }
 0x6c3   : > { %v3625_v11 = vpop.f32.mrf.mxu2  ;;  %v9782_v16 = vpop.f32.mrf.mxu3  ;;  %v9785_v4 = vadd.f32 %v3943_v13, %v9331_v55 }
 0x6c4   : > { %v3721_v26 = vadd.f32 %v9694_v50, %v3625_v11  ;;  %v9788_v46 = vpop.f32.mrf.mxu0  ;;  %v9800_v55 = vpop.permute.xlu2 %4268  ;;  %v10902_v11 = vld [vmem:[#allocation46_spill] sm:$0xff] }
 0x6c5   : > { %10897 = vst [vmem:[#allocation73_spill] sm:$0xff] %v9785_v4  ;;  %5546 = vmatmul.msk.bf16.gmra.mxu0 %vm605_vm0, %v9504_v21 }
 0x6c6   : > { %v3754_v22 = vrot.slane %v3721_v26, 7  ;;  %10901 = vst [vmem:[#allocation5_spill] sm:$0xff] %v9800_v55  ;;  %v9804_v26 = vpop.permute.xlu1 %4728  ;;  %v9815_v55 = vpop.f32.mrf.mxu1 }
 0x6c7   : > { %10903 = vst [vmem:[#allocation20_spill] sm:$0xff] %v9804_v26 }
 0x6c8   : > { %v3755_v12 = vsel %vm1265_vm3, %v3753_v60, %v3754_v22  ;;  %v3786_v53 = vsel %vm1265_vm3, %v3754_v22, %v10899_v38  ;;  %5524 = vmatmul.msk.bf16.gmra.mxu2 %vm605_vm0, %v10900_v14  ;;  %v9810_v22 = vpop.permute.xlu0 %4736 }
 0x6c9   : > { %v3944_v50 = vmul.f32 %v9432_v7, %v3755_v12  ;;  %v3945_v13 = vmul.f32 %v10902_v11, %v3786_v53  ;;  %10905 = vst [vmem:[#allocation65_spill] sm:$0xff] %v9810_v22 }
 0x6cb   : > { %v4142_v21 = vpop.f32.mrf.mxu3  ;;  %v4388_v4 = vpop.f32.mrf.mxu2  ;;  %v3977_v60 = vadd.f32 %v3945_v13, %v9407_v30  ;;  %v9808_v34 = vadd.f32 %v3944_v50, %v9368_v0  ;;  %v10909_v13 = vld [vmem:[#allocation34_spill] sm:$0xff] }
 0x6cc   : > { %v4143_v41 = vadd.f32 %v4142_v21, %v4047_v56  ;;  %v9812_v38 = vpop.f32.mrf.mxu0  ;;  %v9821_v12 = vadd.f32 %v9717_v47, %v4388_v4  ;;  %v9823_v30 = vpop.permute.xlu2 %4280 }
 0x6cd   : > { %10904 = vst [vmem:[#allocation66_spill] sm:$0xff] %v9808_v34  ;;  %v4365_v14 = vadd.f32 %v9414_v42, %v3977_v60 }
 0x6ce   : > { %v4320_v7 = vmul.f32 %v4245_v54, %v4143_v41  ;;  %10906 = vst [vmem:[#allocation8_spill] sm:$0xff] %v9821_v12  ;;  %v9828_v11 = vpop.permute.xlu1 %4740  ;;  %v10296_v54 = vrot.slane %v9821_v12, 1  ;;  %v9835_v47 = vpop.f32.mrf.mxu1 }
 0x6cf   : > { %10907 = vst [vmem:[#allocation32_spill] sm:$0xff] %v9823_v30 }
 0x6d0   : > { %v9818_v53 = vadd.f32 %v4320_v7, %v9571_v49  ;;  %10908 = vst [vmem:[#allocation12_spill] sm:$0xff] %v9828_v11  ;;  %v4749_v49 = vpop.permute.xlu0 %4748 }
 0x6d3   : > { %v9825_v0 = vpop.f32.mrf.mxu3  ;;  %v4390_v56 = vpop.f32.mrf.mxu2 }
 0x6d4   : > { %v4486_v50 = vadd.f32 %v9734_v5, %v4390_v56  ;;  %v9830_v42 = vpop.f32.mrf.mxu0  ;;  %v9846_v5 = vld [vmem:[%s10150_s8] ss:$0 sm:$0xff] }
 0x6d5   : > { %5547 = vmatmul.msk.bf16.gmra.mxu0 %vm605_vm0, %v9547_v10 }
 0x6d6   : > { %v4564_v41 = vrot.slane %v4486_v50, 1  ;;  %v9852_v50 = vpop.permute.xlu2 %4292 }
 0x6d7   : > { %10910 = vst [vmem:[#allocation39_spill] sm:$0xff] %v9852_v50 }
 0x6d8   : > { %v4625_v4 = vsel %vm2170_vm4, %v10296_v54, %v4564_v41  ;;  %5525 = vmatmul.msk.bf16.gmra.mxu2 %vm605_vm0, %v10909_v13 }
 0x6d9   : > { %v4785_v21 = vmul.f32 %v4749_v49, %v4625_v4 }
 0x6db   : > { %v4817_v60 = vadd.f32 %v4785_v21, %v4365_v14  ;;  %v9849_v7 = vpop.f32.mrf.mxu3  ;;  %v4393_v10 = vpop.f32.mrf.mxu2 }
 0x6dc   : > { %v4489_v56 = vadd.f32 %v9747_v17, %v4393_v10  ;;  %v9854_v11 = vpop.f32.mrf.mxu0  ;;  %v4753_v14 = vpop.permute.xlu1 %4752 }
 0x6dd   : > { %v4853_v54 = vadd.f32 %v9846_v5, %v4817_v60  ;;  %v4055_v21 = vpop.f32.mrf.mxu1 }
 0x6de   : > { %v4565_v49 = vrot.slane %v4489_v56, 1  ;;  %v4629_v26 = vpop.permute.xlu2 %4628 }
 0x6df   : > { %v4885_v4 = vmax.f32 %v4853_v54, 0.0 }
 0x6e0   : > { %v4624_v13 = vsel %vm2170_vm4, %v4564_v41, %v4565_v49 }
 0x6e1   : > { %4918 = vst.msk [vmem:[%s9860_s16 + $0xf0] sm:$0xff] %vm4887_vm5, %v4885_v4  ;;  %v4786_v17 = vmul.f32 %v4753_v14, %v4624_v13 }
 0x6e3   : > { %v4818_v60 = vadd.f32 %v4786_v17, %v9453_v24  ;;  %v4150_v10 = vpop.f32.mrf.mxu3  ;;  %v4395_v34 = vpop.f32.mrf.mxu2 }
 0x6e4   : > { %v4151_v12 = vadd.f32 %v4150_v10, %v4055_v21  ;;  %v4491_v50 = vadd.f32 %v9771_v8, %v4395_v34  ;;  %v4503_v22 = vpop.f32.mrf.mxu0 }
 0x6e5   : > { %v4854_v56 = vadd.f32 %v9846_v5, %v4818_v60  ;;  %5548 = vmatmul.msk.bf16.gmra.mxu0 %vm605_vm0, %v9583_v52 }
 0x6e6   : > { %v4323_v54 = vmul.f32 %v9773_v59, %v4151_v12  ;;  %v4566_v30 = vrot.slane %v4491_v50, 1 }
 0x6e7   : > { %v4886_v41 = vmax.f32 %v4854_v56, 0.0 }
 0x6e8   : > { %v4623_v24 = vsel %vm2170_vm4, %v4565_v49, %v4566_v30  ;;  %5526 = vmatmul.msk.bf16.gmra.mxu2 %vm605_vm0, %v10786_v15  ;;  %v9877_v8 = vadd.f32 %v4323_v54, %v9628_v25 }
 0x6e9   : > { %4919 = vst.msk [vmem:[%s9860_s16 + $0xf8] sm:$0xff] %vm4887_vm5, %v4886_v41  ;;  %v4755_v34 = vmul.f32 %v4629_v26, %v4623_v24 }
 0x6eb   : > { %v4787_v59 = vadd.f32 %v4755_v34, %v9479_v32  ;;  %v4398_v12 = vpop.f32.mrf.mxu2 }
 0x6ec   : > { %v4494_v50 = vadd.f32 %v9788_v46, %v4398_v12  ;;  %v4505_v14 = vpop.f32.mrf.mxu0 }
 0x6ed   : > { %v4823_v52 = vadd.f32 %v9846_v5, %v4787_v59 }
 0x6ee   : > { %v4567_v4 = vrot.slane %v4494_v50, 1 }
 0x6ef   : > { %v4855_v49 = vmax.f32 %v4823_v52, 0.0 }
 0x6f0   : > { %v4622_v15 = vsel %vm2170_vm4, %v4566_v30, %v4567_v4 }
 0x6f1   : > { %4888 = vst.msk [vmem:[%s9860_s16] sm:$0xff] %vm4887_vm5, %v4855_v49  ;;  %v4756_v25 = vmul.f32 %v9613_v35, %v4622_v15 }
 0x6f3   : > { %v4788_v26 = vadd.f32 %v4756_v25, %v9501_v1  ;;  %v4400_v13 = vpop.f32.mrf.mxu2 }
 0x6f4   : > { %v4496_v32 = vadd.f32 %v9812_v38, %v4400_v13  ;;  %v4508_v17 = vpop.f32.mrf.mxu0 }
 0x6f5   : > { %v4824_v46 = vadd.f32 %v9846_v5, %v4788_v26  ;;  %5549 = vmatmul.msk.bf16.gmra.mxu0 %vm605_vm0, %v9622_v33  ;;  %v4641_v33 = vpop.permute.xlu2 %4640 }
 0x6f6   : > { %v4568_v21 = vrot.slane %v4496_v32, 1 }
 0x6f7   : > { %v4856_v60 = vmax.f32 %v4824_v46, 0.0 }
 0x6f8   : > { %v4621_v30 = vsel %vm2170_vm4, %v4567_v4, %v4568_v21  ;;  %5527 = vmatmul.msk.bf16.gmra.mxu2 %vm605_vm0, %v10794_v19 }
 0x6f9   : > { %4889 = vst.msk [vmem:[%s9860_s16 + $0x8] sm:$0xff] %vm4887_vm5, %v4856_v60  ;;  %v4757_v1 = vmul.f32 %v9605_v48, %v4621_v30  ;;  %v10911_v60 = vld [vmem:[#allocation13_spill] sm:$0xff] }
 0x6fb   : > { %v4789_v35 = vadd.f32 %v4757_v1, %v9527_v39  ;;  %v4403_v38 = vpop.f32.mrf.mxu2 }
 0x6fc   : > { %v4499_v10 = vadd.f32 %v9830_v42, %v4403_v38  ;;  %v4510_v56 = vpop.f32.mrf.mxu0 }
 0x6fd   : > { %v4825_v54 = vadd.f32 %v9846_v5, %v4789_v35  ;;  %v4649_v13 = vpop.permute.xlu2 %4648 }
 0x6fe   : > { %v4569_v41 = vrot.slane %v4499_v10, 1 }
 0x6ff   : > { %v4857_v24 = vmax.f32 %v4825_v54, 0.0 }
 0x700   : > { %v4620_v34 = vsel %vm2170_vm4, %v4568_v21, %v4569_v41 }
 0x701   : > { %4890 = vst.msk [vmem:[%s9860_s16 + $0x10] sm:$0xff] %vm4887_vm5, %v4857_v24  ;;  %v4758_v19 = vmul.f32 %v4641_v33, %v4620_v34  ;;  %v10912_v33 = vld [vmem:[#allocation21_spill] sm:$0xff] }
 0x703   : > { %v4790_v48 = vadd.f32 %v4758_v19, %v9544_v40  ;;  %v4405_v59 = vpop.f32.mrf.mxu2 }
 0x704   : > { %v4501_v39 = vadd.f32 %v9854_v11, %v4405_v59  ;;  %v4513_v12 = vpop.f32.mrf.mxu0 }
 0x705   : > { %v4826_v42 = vadd.f32 %v9846_v5, %v4790_v48  ;;  %5550 = vmatmul.msk.bf16.gmra.mxu0 %vm605_vm0, %v9660_v9 }
 0x706   : > { %v4570_v50 = vrot.slane %v4501_v39, 1 }
 0x707   : > { %v4858_v52 = vmax.f32 %v4826_v42, 0.0 }
 0x708   : > { %v4619_v4 = vsel %vm2170_vm4, %v4569_v41, %v4570_v50  ;;  %5528 = vmatmul.msk.bf16.gmra.mxu2 %vm605_vm0, %v10798_v63  ;;  %v4116_v63 = vadd.f32 %v9588_v45, %v9519_v37 }
 0x709   : > { %4891 = vst.msk [vmem:[%s9860_s16 + $0x18] sm:$0xff] %vm4887_vm5, %v4858_v52  ;;  %v4759_v40 = vmul.f32 %v9631_v61, %v4619_v4  ;;  %v4661_v52 = vpop.permute.xlu2 %4660 }
 0x70a   : > { %v4309_v30 = vmul.f32 %v10911_v60, %v4116_v63  ;;  %v10918_v60 = vld [vmem:[#allocation30_spill] sm:$0xff] }
 0x70b   : > { %v4791_v11 = vadd.f32 %v4759_v40, %v9565_v23  ;;  %v4408_v49 = vpop.f32.mrf.mxu2 }
 0x70c   : > { %v4504_v15 = vadd.f32 %v4503_v22, %v4408_v49  ;;  %v4515_v9 = vpop.f32.mrf.mxu0  ;;  %v4341_v37 = vadd.f32 %v4309_v30, %v9258_v3  ;;  %v10915_v49 = vld [vmem:[#allocation27_spill] sm:$0xff] }
 0x70d   : > { %v4827_v25 = vadd.f32 %v9846_v5, %v4791_v11  ;;  %v10914_v11 = vld [vmem:[#allocation59_spill] sm:$0xff] }
 0x70e   : > { %v4571_v26 = vrot.slane %v4504_v15, 1  ;;  %v4123_v15 = vadd.f32 %v9647_v18, %v10915_v49  ;;  %v10919_v30 = vld [vmem:[#allocation55_spill] sm:$0xff] }
 0x70f   : > { %v4859_v32 = vmax.f32 %v4827_v25, 0.0  ;;  %v10916_v25 = vld [vmem:[#allocation53_spill] sm:$0xff] }
 0x710   : > { %v4618_v46 = vsel %vm2170_vm4, %v4570_v50, %v4571_v26 }
 0x711   : > { %4892 = vst.msk [vmem:[%s9860_s16 + $0x20] sm:$0xff] %vm4887_vm5, %v4859_v32  ;;  %v4760_v61 = vmul.f32 %v4649_v13, %v4618_v46  ;;  %v10917_v32 = vld [vmem:[#allocation17_spill] sm:$0xff] }
 0x712   : > { %v4312_v46 = vmul.f32 %v10917_v32, %v4123_v15 }
 0x713   : > { %v4792_v23 = vadd.f32 %v4760_v61, %v9580_v62  ;;  %v4410_v21 = vpop.f32.mrf.mxu2  ;;  %v4118_v62 = vadd.f32 %v9607_v31, %v9539_v28 }
 0x714   : > { %v4506_v22 = vadd.f32 %v4505_v14, %v4410_v21  ;;  %v4518_v14 = vpop.f32.mrf.mxu0  ;;  %v4344_v18 = vadd.f32 %v4312_v46, %v10918_v60 }
 0x715   : > { %v4828_v1 = vadd.f32 %v9846_v5, %v4792_v23  ;;  %5551 = vmatmul.msk.bf16.gmra.mxu0 %vm605_vm0, %v9702_v57  ;;  %v4310_v24 = vmul.f32 %v10912_v33, %v4118_v62 }
 0x716   : > { %v4572_v35 = vrot.slane %v4506_v22, 1 }
 0x717   : > { %v4860_v38 = vmax.f32 %v4828_v1, 0.0  ;;  %v10920_v1 = vld [vmem:[#allocation25_spill] sm:$0xff] }
 0x718   : > { %v4617_v10 = vsel %vm2170_vm4, %v4571_v26, %v4572_v35  ;;  %5529 = vmatmul.msk.bf16.gmra.mxu2 %vm605_vm0, %v10807_v6  ;;  %v10913_v6 = vld [vmem:[#allocation11_spill] sm:$0xff] }
 0x719   : > { %4893 = vst.msk [vmem:[%s9860_s16 + $0x28] sm:$0xff] %vm4887_vm5, %v4860_v38  ;;  %v4761_v45 = vmul.f32 %v9635_v29, %v4617_v10  ;;  %v4342_v28 = vadd.f32 %v4310_v24, %v10913_v6  ;;  %v10921_v38 = vld [vmem:[#allocation6_spill] sm:$0xff] }
 0x71a   : > { %v10925_v6 = vld [vmem:[#allocation50_spill] sm:$0xff] }
 0x71b   : > { %v4793_v54 = vadd.f32 %v4761_v45, %v4341_v37  ;;  %v4413_v41 = vpop.f32.mrf.mxu2  ;;  %v10922_v45 = vld [vmem:[#allocation71_spill] sm:$0xff] }
 0x71c   : > { %v4509_v57 = vadd.f32 %v4508_v17, %v4413_v41  ;;  %v4520_v39 = vpop.f32.mrf.mxu0 }
 0x71d   : > { %v4829_v34 = vadd.f32 %v9846_v5, %v4793_v54 }
 0x71e   : > { %v4573_v19 = vrot.slane %v4509_v57, 1 }
 0x71f   : > { %v4861_v48 = vmax.f32 %v4829_v34, 0.0 }
 0x720   : > { %v4616_v3 = vsel %vm2170_vm4, %v4572_v35, %v4573_v19  ;;  %v4126_v35 = vadd.f32 %v10920_v1, %v10919_v30 }
 0x721   : > { %4894 = vst.msk [vmem:[%s9860_s16 + $0x30] sm:$0xff] %vm4887_vm5, %v4861_v48  ;;  %v4762_v31 = vmul.f32 %v9655_v2, %v4616_v3  ;;  %v10924_v48 = vld [vmem:[#allocation58_spill] sm:$0xff] }
 0x722   : > { %v4313_v54 = vmul.f32 %v10922_v45, %v4126_v35  ;;  %v10932_v35 = vld [vmem:[#allocation67_spill] sm:$0xff]  ;;  %v10933_v45 = vld [vmem:[#allocation69_spill] sm:$0xff] }
 0x723   : > { %v4794_v29 = vadd.f32 %v4762_v31, %v4342_v28  ;;  %v4415_v59 = vpop.f32.mrf.mxu2 }
 0x724   : > { %v4511_v17 = vadd.f32 %v4510_v56, %v4415_v59  ;;  %v4523_v61 = vpop.f32.mrf.mxu0  ;;  %v4345_v3 = vadd.f32 %v4313_v54, %v10924_v48 }
 0x725   : > { %v4830_v42 = vadd.f32 %v9846_v5, %v4794_v29 }
 0x726   : > { %v4574_v50 = vrot.slane %v4511_v17, 1 }
 0x727   : > { %v4862_v4 = vmax.f32 %v4830_v42, 0.0  ;;  %v4673_v42 = vpop.permute.xlu2 %4672 }
 0x728   : > { %v4615_v40 = vsel %vm2170_vm4, %v4573_v19, %v4574_v50  ;;  %5530 = vmatmul.msk.bf16.gmra.mxu2 %vm605_vm0, %v10914_v11  ;;  %v10923_v19 = vld [vmem:[#allocation70_spill] sm:$0xff] }
 0x729   : > { %4895 = vst.msk [vmem:[%s9860_s16 + $0x38] sm:$0xff] %vm4887_vm5, %v4862_v4  ;;  %v4763_v2 = vmul.f32 %v4661_v52, %v4615_v40  ;;  %v10926_v4 = vld [vmem:[#allocation33_spill] sm:$0xff] }
 0x72a   : > { %v4131_v40 = vadd.f32 %v9709_v44, %v10926_v4 }
 0x72b   : > { %v4795_v56 = vadd.f32 %v4763_v2, %v10916_v25  ;;  %v4418_v26 = vpop.f32.mrf.mxu2  ;;  %v10927_v25 = vld [vmem:[#allocation7_spill] sm:$0xff] }
 0x72c   : > { %v4514_v13 = vadd.f32 %v4513_v12, %v4418_v26  ;;  %v4525_v24 = vpop.f32.mrf.mxu0 }
 0x72d   : > { %v4831_v63 = vadd.f32 %v9846_v5, %v4795_v56  ;;  %v4315_v56 = vmul.f32 %v10927_v25, %v4131_v40  ;;  %v4141_v25 = vadd.f32 %v9782_v16, %v9763_v51  ;;  %v10941_v16 = vld [vmem:[#allocation43_spill] sm:$0xff] }
 0x72e   : > { %v4575_v23 = vrot.slane %v4514_v13, 1 }
 0x72f   : > { %v4863_v21 = vmax.f32 %v4831_v63, 0.0  ;;  %v10928_v63 = vld [vmem:[#allocation51_spill] sm:$0xff] }
 0x730   : > { %v4614_v22 = vsel %vm2170_vm4, %v4574_v50, %v4575_v23  ;;  %v4347_v44 = vadd.f32 %v4315_v56, %v10928_v63 }
 0x731   : > { %4896 = vst.msk [vmem:[%s9860_s16 + $0x40] sm:$0xff] %vm4887_vm5, %v4863_v21  ;;  %v4764_v12 = vmul.f32 %v10921_v38, %v4614_v22  ;;  %v10930_v21 = vld [vmem:[#allocation4_spill] sm:$0xff] }
 0x733   : > { %v4796_v10 = vadd.f32 %v4764_v12, %v4344_v18  ;;  %v4420_v37 = vpop.f32.mrf.mxu2 }
 0x734   : > { %v4516_v62 = vadd.f32 %v4515_v9, %v4420_v37  ;;  %v4528_v49 = vpop.f32.mrf.mxu0 }
 0x735   : > { %v4832_v41 = vadd.f32 %v9846_v5, %v4796_v10 }
 0x736   : > { %v4576_v57 = vrot.slane %v4516_v62, 1 }
 0x737   : > { %v4864_v33 = vmax.f32 %v4832_v41, 0.0  ;;  %v10934_v41 = vld [vmem:[#allocation52_spill] sm:$0xff] }
 0x738   : > { %v4613_v34 = vsel %vm2170_vm4, %v4575_v23, %v4576_v57  ;;  %5531 = vmatmul.msk.bf16.gmra.mxu2 %vm605_vm0, %v10923_v19  ;;  %v10929_v23 = vld [vmem:[#allocation38_spill] sm:$0xff] }
 0x739   : > { %4897 = vst.msk [vmem:[%s9860_s16 + $0x48] sm:$0xff] %vm4887_vm5, %v4864_v33  ;;  %v4765_v9 = vmul.f32 %v10925_v6, %v4613_v34  ;;  %v4133_v22 = vadd.f32 %v10930_v21, %v10929_v23 }
 0x73b   : > { %v4797_v28 = vadd.f32 %v4765_v9, %v4345_v3  ;;  %v4423_v31 = vpop.f32.mrf.mxu2  ;;  %v4316_v38 = vmul.f32 %v10932_v35, %v4133_v22  ;;  %v4685_v9 = vpop.permute.xlu2 %4684  ;;  %v10940_v22 = vld [vmem:[#allocation42_spill] sm:$0xff] }
 0x73c   : > { %v4519_v29 = vadd.f32 %v4518_v14, %v4423_v31  ;;  %v4530_v30 = vpop.f32.mrf.mxu0  ;;  %v10935_v31 = vld [vmem:[#allocation54_spill] sm:$0xff]  ;;  %v4152_v35 = vpop.f32.mrf.mxu3 }
 0x73d   : > { %v4833_v59 = vadd.f32 %v9846_v5, %v4797_v28  ;;  %v4348_v54 = vadd.f32 %v4316_v38, %v10933_v45  ;;  %v4146_v45 = vadd.f32 %v9825_v0, %v9815_v55  ;;  %v4148_v0 = vadd.f32 %v9849_v7, %v9835_v47 }
 0x73e   : > { %v4577_v17 = vrot.slane %v4519_v29, 1  ;;  %v4138_v29 = vadd.f32 %v9765_v27, %v10935_v31  ;;  %v10943_v31 = vld [vmem:[#allocation48_spill] sm:$0xff] }
 0x73f   : > { %v4865_v50 = vmax.f32 %v4833_v59, 0.0 }
 0x740   : > { %v4612_v52 = vsel %vm2170_vm4, %v4576_v57, %v4577_v17 }
 0x741   : > { %4898 = vst.msk [vmem:[%s9860_s16 + $0x50] sm:$0xff] %vm4887_vm5, %v4865_v50  ;;  %v4766_v11 = vmul.f32 %v4673_v42, %v4612_v52  ;;  %v10936_v50 = vld [vmem:[#allocation23_spill] sm:$0xff] }
 0x742   : > { %v4318_v52 = vmul.f32 %v10936_v50, %v4138_v29  ;;  %v10945_v50 = vld [vmem:[#allocation49_spill] sm:$0xff] }
 0x743   : > { %v4798_v15 = vadd.f32 %v4766_v11, %v9699_v43  ;;  %v4425_v2 = vpop.f32.mrf.mxu2  ;;  %v10931_v43 = vld [vmem:[#allocation74_spill] sm:$0xff] }
 0x744   : > { %v4521_v14 = vadd.f32 %v4520_v39, %v4425_v2  ;;  %v4533_v48 = vpop.f32.mrf.mxu0 }
 0x745   : > { %v4834_v26 = vadd.f32 %v9846_v5, %v4798_v15 }
 0x746   : > { %v4578_v13 = vrot.slane %v4521_v14, 1  ;;  %v10937_v14 = vld [vmem:[#allocation57_spill] sm:$0xff] }
 0x747   : > { %v4866_v32 = vmax.f32 %v4834_v26, 0.0  ;;  %v4350_v27 = vadd.f32 %v4318_v52, %v10937_v14  ;;  %v4322_v52 = vmul.f32 %v10945_v50, %v4148_v0  ;;  %v10946_v14 = vld [vmem:[#allocation35_spill] sm:$0xff] }
 0x748   : > { %v4611_v46 = vsel %vm2170_vm4, %v4577_v17, %v4578_v13 }
 0x749   : > { %4899 = vst.msk [vmem:[%s9860_s16 + $0x58] sm:$0xff] %vm4887_vm5, %v4866_v32  ;;  %v4767_v60 = vmul.f32 %v10931_v43, %v4611_v46  ;;  %v10939_v32 = vld [vmem:[#allocation44_spill] sm:$0xff]  ;;  %v4354_v47 = vadd.f32 %v4322_v52, %v10946_v14 }
 0x74a   : > { %v4319_v46 = vmul.f32 %v10939_v32, %v4141_v25 }
 0x74b   : > { %v4799_v39 = vadd.f32 %v4767_v60, %v4347_v44  ;;  %v4428_v18 = vpop.f32.mrf.mxu2 }
 0x74c   : > { %v4524_v1 = vadd.f32 %v4523_v61, %v4428_v18  ;;  %v4535_v15 = vpop.f32.mrf.mxu0  ;;  %v4351_v43 = vadd.f32 %v4319_v46, %v10940_v22 }
 0x74d   : > { %v4835_v12 = vadd.f32 %v9846_v5, %v4799_v39 }
 0x74e   : > { %v4579_v10 = vrot.slane %v4524_v1, 1 }
 0x74f   : > { %v4867_v37 = vmax.f32 %v4835_v12, 0.0 }
 0x750   : > { %v4610_v62 = vsel %vm2170_vm4, %v4578_v13, %v4579_v10 }
 0x751   : > { %4900 = vst.msk [vmem:[%s9860_s16 + $0x60] sm:$0xff] %vm4887_vm5, %v4867_v37  ;;  %v4768_v57 = vmul.f32 %v10934_v41, %v4610_v62  ;;  %v4697_v37 = vpop.permute.xlu2 %4696 }
 0x753   : > { %v4800_v33 = vadd.f32 %v4768_v57, %v4348_v54  ;;  %v4430_v34 = vpop.f32.mrf.mxu2 }
 0x754   : > { %v4526_v19 = vadd.f32 %v4525_v24, %v4430_v34  ;;  %v4538_v60 = vpop.f32.mrf.mxu0 }
 0x755   : > { %v4836_v61 = vadd.f32 %v9846_v5, %v4800_v33 }
 0x756   : > { %v4580_v3 = vrot.slane %v4526_v19, 1  ;;  %v10942_v19 = vld [vmem:[#allocation36_spill] sm:$0xff] }
 0x757   : > { %v4868_v6 = vmax.f32 %v4836_v61, 0.0  ;;  %v4321_v61 = vmul.f32 %v10942_v19, %v4146_v45 }
 0x758   : > { %v4609_v28 = vsel %vm2170_vm4, %v4579_v10, %v4580_v3  ;;  %v4057_v10 = vpop.f32.mrf.mxu1 }
 0x759   : > { %4901 = vst.msk [vmem:[%s9860_s16 + $0x68] sm:$0xff] %vm4887_vm5, %v4868_v6  ;;  %v4769_v59 = vmul.f32 %v4685_v9, %v4609_v28  ;;  %v4155_v9 = vpop.f32.mrf.mxu3  ;;  %v4353_v55 = vadd.f32 %v4321_v61, %v10943_v31 }
 0x75b   : > { %v4801_v17 = vadd.f32 %v4769_v59, %v9756_v20  ;;  %v4433_v42 = vpop.f32.mrf.mxu2  ;;  %v10938_v20 = vld [vmem:[#allocation10_spill] sm:$0xff] }
 0x75c   : > { %v4529_v24 = vadd.f32 %v4528_v49, %v4433_v42  ;;  %v4540_v33 = vpop.f32.mrf.mxu0 }
 0x75d   : > { %v4837_v4 = vadd.f32 %v9846_v5, %v4801_v17 }
 0x75e   : > { %v4581_v40 = vrot.slane %v4529_v24, 1 }
 0x75f   : > { %v4869_v11 = vmax.f32 %v4837_v4, 0.0 }
 0x760   : > { %v4608_v2 = vsel %vm2170_vm4, %v4580_v3, %v4581_v40  ;;  %v4060_v59 = vpop.f32.mrf.mxu1 }
 0x761   : > { %4902 = vst.msk [vmem:[%s9860_s16 + $0x70] sm:$0xff] %vm4887_vm5, %v4869_v11  ;;  %v4770_v49 = vmul.f32 %v10938_v20, %v4608_v2 }
 0x763   : > { %v4802_v56 = vadd.f32 %v4770_v49, %v4350_v27  ;;  %v4435_v26 = vpop.f32.mrf.mxu2  ;;  %v4157_v27 = vpop.f32.mrf.mxu3 }
 0x764   : > { %v4531_v13 = vadd.f32 %v4530_v30, %v4435_v26 }
 0x765   : > { %v4838_v63 = vadd.f32 %v9846_v5, %v4802_v56 }
 0x766   : > { %v4582_v44 = vrot.slane %v4531_v13, 1 }
 0x767   : > { %v4870_v23 = vmax.f32 %v4838_v63, 0.0  ;;  %v4709_v63 = vpop.permute.xlu2 %4708 }
 0x768   : > { %v4607_v21 = vsel %vm2170_vm4, %v4581_v40, %v4582_v44  ;;  %v4543_v40 = vpop.f32.mrf.mxu0  ;;  %v4062_v49 = vpop.f32.mrf.mxu1 }
 0x769   : > { %4903 = vst.msk [vmem:[%s9860_s16 + $0x78] sm:$0xff] %vm4887_vm5, %v4870_v23  ;;  %v4771_v51 = vmul.f32 %v10941_v16, %v4607_v21  ;;  %v4153_v23 = vadd.f32 %v4152_v35, %v4057_v10  ;;  %v4156_v10 = vadd.f32 %v4155_v9, %v4060_v59  ;;  %v10951_v9 = vld [vmem:[#allocation16_spill] sm:$0xff]  ;;  %v4158_v31 = vadd.f32 %v4157_v27, %v4062_v49 }
 0x76b   : > { %v4803_v39 = vadd.f32 %v4771_v51, %v4351_v43  ;;  %v4438_v18 = vpop.f32.mrf.mxu2  ;;  %v4160_v43 = vpop.f32.mrf.mxu3  ;;  %v10947_v51 = vld [vmem:[#allocation14_spill] sm:$0xff] }
 0x76c   : > { %v4534_v30 = vadd.f32 %v4533_v48, %v4438_v18 }
 0x76d   : > { %v4839_v1 = vadd.f32 %v9846_v5, %v4803_v39 }
 0x76e   : > { %v4583_v38 = vrot.slane %v4534_v30, 1 }
 0x76f   : > { %v4871_v12 = vmax.f32 %v4839_v1, 0.0 }
 0x770   : > { %v4606_v62 = vsel %vm2170_vm4, %v4582_v44, %v4583_v38  ;;  %v4545_v46 = vpop.f32.mrf.mxu0  ;;  %v4065_v18 = vpop.f32.mrf.mxu1 }
 0x771   : > { %4904 = vst.msk [vmem:[%s9860_s16 + $0x80] sm:$0xff] %vm4887_vm5, %v4871_v12  ;;  %v4772_v54 = vmul.f32 %v4697_v37, %v4606_v62  ;;  %v10948_v12 = vld [vmem:[#allocation26_spill] sm:$0xff] }
 0x773   : > { %v4804_v41 = vadd.f32 %v4772_v54, %v9818_v53  ;;  %v4440_v57 = vpop.f32.mrf.mxu2  ;;  %v10944_v53 = vld [vmem:[#allocation47_spill] sm:$0xff]  ;;  %v4162_v19 = vpop.f32.mrf.mxu3 }
 0x774   : > { %v4536_v34 = vadd.f32 %v4535_v15, %v4440_v57  ;;  %v10950_v57 = vld [vmem:[#allocation41_spill] sm:$0xff] }
 0x775   : > { %v4840_v48 = vadd.f32 %v9846_v5, %v4804_v41 }
 0x776   : > { %v4584_v3 = vrot.slane %v4536_v34, 1 }
 0x777   : > { %v4872_v6 = vmax.f32 %v4840_v48, 0.0 }
 0x778   : > { %v4605_v28 = vsel %vm2170_vm4, %v4583_v38, %v4584_v3  ;;  %v4548_v62 = vpop.f32.mrf.mxu0 }
 0x779   : > { %4905 = vst.msk [vmem:[%s9860_s16 + $0x88] sm:$0xff] %vm4887_vm5, %v4872_v6  ;;  %v4773_v29 = vmul.f32 %v10944_v53, %v4605_v28 }
 0x77b   : > { %v4805_v17 = vadd.f32 %v4773_v29, %v4353_v55  ;;  %v4443_v42 = vpop.f32.mrf.mxu2  ;;  %v10952_v55 = vld [vmem:[#allocation9_spill] sm:$0xff] }
 0x77c   : > { %v4539_v24 = vadd.f32 %v4538_v60, %v4443_v42  ;;  %v4324_v60 = vmul.f32 %v10947_v51, %v4153_v23  ;;  %v10953_v42 = vld [vmem:[#allocation5_spill] sm:$0xff]  ;;  %v10956_v23 = vld [vmem:[#allocation60_spill] sm:$0xff] }
 0x77d   : > { %v4841_v4 = vadd.f32 %v9846_v5, %v4805_v17 }
 0x77e   : > { %v4585_v11 = vrot.slane %v4539_v24, 1  ;;  %v4356_v35 = vadd.f32 %v4324_v60, %v10948_v12  ;;  %v4326_v24 = vmul.f32 %v10953_v42, %v4158_v31 }
 0x77f   : > { %v4873_v15 = vmax.f32 %v4841_v4, 0.0 }
 0x780   : > { %v4604_v2 = vsel %vm2170_vm4, %v4584_v3, %v4585_v11  ;;  %v4067_v3 = vpop.f32.mrf.mxu1  ;;  %v4550_v59 = vpop.f32.mrf.mxu0 }
 0x781   : > { %4906 = vst.msk [vmem:[%s9860_s16 + $0x90] sm:$0xff] %vm4887_vm5, %v4873_v15  ;;  %v4774_v7 = vmul.f32 %v9749_v58, %v4604_v2  ;;  %v10954_v2 = vld [vmem:[#allocation28_spill] sm:$0xff] }
 0x782   : > { %v4358_v14 = vadd.f32 %v4326_v24, %v10954_v2 }
 0x783   : > { %v4806_v25 = vadd.f32 %v4774_v7, %v4354_v47  ;;  %v4445_v20 = vpop.f32.mrf.mxu2  ;;  %v4161_v47 = vadd.f32 %v4160_v43, %v4065_v18 }
 0x784   : > { %v4541_v56 = vadd.f32 %v4540_v33, %v4445_v20  ;;  %v4325_v33 = vmul.f32 %v10950_v57, %v4156_v10 }
 0x785   : > { %v4842_v26 = vadd.f32 %v9846_v5, %v4806_v25 }
 0x786   : > { %v4586_v13 = vrot.slane %v4541_v56, 1  ;;  %v4357_v28 = vadd.f32 %v4325_v33, %v10951_v9  ;;  %v10955_v56 = vld [vmem:[#allocation72_spill] sm:$0xff] }
 0x787   : > { %v4874_v32 = vmax.f32 %v4842_v26, 0.0  ;;  %v4327_v26 = vmul.f32 %v10955_v56, %v4161_v47 }
 0x788   : > { %v4603_v44 = vsel %vm2170_vm4, %v4585_v11, %v4586_v13  ;;  %v4721_v11 = vpop.permute.xlu2 %4720  ;;  %v4070_v27 = vpop.f32.mrf.mxu1 }
 0x789   : > { %4907 = vst.msk [vmem:[%s9860_s16 + $0x98] sm:$0xff] %vm4887_vm5, %v4874_v32  ;;  %v4775_v21 = vmul.f32 %v4709_v63, %v4603_v44  ;;  %v4553_v32 = vpop.f32.mrf.mxu0 }
 0x78b   : > { %v4807_v58 = vadd.f32 %v4775_v21, %v9877_v8  ;;  %v4448_v22 = vpop.f32.mrf.mxu2  ;;  %v10949_v8 = vld [vmem:[#allocation3_spill] sm:$0xff]  ;;  %v4359_v21 = vadd.f32 %v4327_v26, %v10956_v23 }
 0x78c   : > { %v4544_v16 = vadd.f32 %v4543_v40, %v4448_v22  ;;  %v4165_v40 = vpop.f32.mrf.mxu3  ;;  %v10957_v22 = vld [vmem:[#allocation15_spill] sm:$0xff] }
 0x78d   : > { %v4843_v39 = vadd.f32 %v9846_v5, %v4807_v58  ;;  %v4163_v58 = vadd.f32 %v4162_v19, %v4067_v3  ;;  %v10967_v23 = vld [vmem:[#allocation39_spill] sm:$0xff] }
 0x78e   : > { %v4587_v30 = vrot.slane %v4544_v16, 1 }
 0x78f   : > { %v4875_v1 = vmax.f32 %v4843_v39, 0.0 }
 0x790   : > { %v4602_v38 = vsel %vm2170_vm4, %v4586_v13, %v4587_v30  ;;  %v4072_v39 = vpop.f32.mrf.mxu1  ;;  %v4733_v31 = vpop.permute.xlu2 %4732 }
 0x791   : > { %4908 = vst.msk [vmem:[%s9860_s16 + $0xa0] sm:$0xff] %vm4887_vm5, %v4875_v1  ;;  %v4776_v37 = vmul.f32 %v10949_v8, %v4602_v38  ;;  %v4555_v10 = vpop.f32.mrf.mxu0 }
 0x793   : > { %v4808_v45 = vadd.f32 %v4776_v37, %v4356_v35  ;;  %v4450_v54 = vpop.f32.mrf.mxu2  ;;  %v10959_v37 = vld [vmem:[#allocation2_spill] sm:$0xff] }
 0x794   : > { %v4546_v41 = vadd.f32 %v4545_v46, %v4450_v54  ;;  %v4167_v16 = vpop.f32.mrf.mxu3  ;;  %v10960_v54 = vld [vmem:[#allocation20_spill] sm:$0xff] }
 0x795   : > { %v4844_v34 = vadd.f32 %v9846_v5, %v4808_v45  ;;  %v4166_v45 = vadd.f32 %v4165_v40, %v4070_v27 }
 0x796   : > { %v4588_v61 = vrot.slane %v4546_v41, 1 }
 0x797   : > { %v4876_v48 = vmax.f32 %v4844_v34, 0.0 }
 0x798   : > { %v4601_v6 = vsel %vm2170_vm4, %v4587_v30, %v4588_v61  ;;  %v10958_v30 = vld [vmem:[#allocation45_spill] sm:$0xff] }
 0x799   : > { %4909 = vst.msk [vmem:[%s9860_s16 + $0xa8] sm:$0xff] %vm4887_vm5, %v4876_v48  ;;  %v4777_v0 = vmul.f32 %v10952_v55, %v4601_v6  ;;  %v4328_v1 = vmul.f32 %v10958_v30, %v4163_v58  ;;  %v4075_v6 = vpop.f32.mrf.mxu1  ;;  %v10970_v30 = vld [vmem:[#allocation73_spill] sm:$0xff] }
 0x79b   : > { %v4809_v53 = vadd.f32 %v4777_v0, %v4357_v28  ;;  %v4453_v29 = vpop.f32.mrf.mxu2  ;;  %v10962_v0 = vld [vmem:[#allocation37_spill] sm:$0xff] }
 0x79c   : > { %v4549_v17 = vadd.f32 %v4548_v62, %v4453_v29  ;;  %v4360_v62 = vadd.f32 %v4328_v1, %v10959_v37  ;;  %v4170_v34 = vpop.f32.mrf.mxu3  ;;  %v4168_v29 = vadd.f32 %v4167_v16, %v4072_v39  ;;  %v4745_v16 = vpop.permute.xlu2 %4744 }
 0x79d   : > { %v4845_v50 = vadd.f32 %v9846_v5, %v4809_v53 }
 0x79e   : > { %v4589_v52 = vrot.slane %v4549_v17, 1  ;;  %v4558_v17 = vpop.f32.mrf.mxu0 }
 0x79f   : > { %v4877_v4 = vmax.f32 %v4845_v50, 0.0 }
 0x7a0   : > { %v4600_v15 = vsel %vm2170_vm4, %v4588_v61, %v4589_v52  ;;  %v10961_v61 = vld [vmem:[#allocation32_spill] sm:$0xff] }
 0x7a1   : > { %4910 = vst.msk [vmem:[%s9860_s16 + $0xb0] sm:$0xff] %vm4887_vm5, %v4877_v4  ;;  %v4778_v7 = vmul.f32 %v4721_v11, %v4600_v15  ;;  %v4329_v48 = vmul.f32 %v10961_v61, %v4166_v45 }
 0x7a3   : > { %v4810_v25 = vadd.f32 %v4778_v7, %v4358_v14  ;;  %v4455_v20 = vpop.f32.mrf.mxu2  ;;  %v4361_v53 = vadd.f32 %v4329_v48, %v10962_v0  ;;  %v4077_v14 = vpop.f32.mrf.mxu1  ;;  %v10964_v7 = vld [vmem:[#allocation62_spill] sm:$0xff] }
 0x7a4   : > { %v4551_v49 = vadd.f32 %v4550_v59, %v4455_v20  ;;  %v4172_v11 = vpop.f32.mrf.mxu3 }
 0x7a5   : > { %v4846_v13 = vadd.f32 %v9846_v5, %v4810_v25  ;;  %v4171_v25 = vadd.f32 %v4170_v34, %v4075_v6  ;;  %v4173_v20 = vadd.f32 %v4172_v11, %v4077_v14 }
 0x7a6   : > { %v4590_v46 = vrot.slane %v4551_v49, 1  ;;  %v10965_v49 = vld [vmem:[#allocation65_spill] sm:$0xff] }
 0x7a7   : > { %v4878_v63 = vmax.f32 %v4846_v13, 0.0 }
 0x7a8   : > { %v4599_v44 = vsel %vm2170_vm4, %v4589_v52, %v4590_v46  ;;  %v10963_v52 = vld [vmem:[#allocation22_spill] sm:$0xff] }
 0x7a9   : > { %4911 = vst.msk [vmem:[%s9860_s16 + $0xb8] sm:$0xff] %vm4887_vm5, %v4878_v63  ;;  %v4779_v43 = vmul.f32 %v10957_v22, %v4599_v44  ;;  %v4330_v4 = vmul.f32 %v10963_v52, %v4168_v29  ;;  %v10966_v63 = vld [vmem:[#allocation63_spill] sm:$0xff] }
 0x7aa   : > { %v4331_v44 = vmul.f32 %v10966_v63, %v4171_v25 }
 0x7ab   : > { %v4811_v51 = vadd.f32 %v4779_v43, %v4359_v21  ;;  %v4458_v60 = vpop.f32.mrf.mxu2  ;;  %v4362_v27 = vadd.f32 %v4330_v4, %v10964_v7  ;;  %v4332_v21 = vmul.f32 %v10967_v23, %v4173_v20 }
 0x7ac   : > { %v4554_v18 = vadd.f32 %v4553_v32, %v4458_v60  ;;  %v4560_v32 = vpop.f32.mrf.mxu0  ;;  %v10968_v60 = vld [vmem:[#allocation8_spill] sm:$0xff]  ;;  %v4363_v1 = vadd.f32 %v4331_v44, %v10970_v30 }
 0x7ad   : > { %v4847_v38 = vadd.f32 %v9846_v5, %v4811_v51  ;;  %v10969_v39 = vrot.slane %v10968_v60, 1 }
 0x7ae   : > { %v4591_v12 = vrot.slane %v4554_v18, 1 }
 0x7af   : > { %v4879_v35 = vmax.f32 %v4847_v38, 0.0  ;;  %v10971_v38 = vld [vmem:[#allocation66_spill] sm:$0xff] }
 0x7b0   : > { %v4598_v8 = vsel %vm2170_vm4, %v4590_v46, %v4591_v12 }
 0x7b1   : > { %4912 = vst.msk [vmem:[%s9860_s16 + $0xc0] sm:$0xff] %vm4887_vm5, %v4879_v35  ;;  %v4780_v41 = vmul.f32 %v10960_v54, %v4598_v8  ;;  %v10972_v35 = vld [vmem:[#allocation12_spill] sm:$0xff] }
 0x7b3   : > { %v4812_v57 = vadd.f32 %v4780_v41, %v4360_v62  ;;  %v4460_v33 = vpop.f32.mrf.mxu2 }
 0x7b4   : > { %v4556_v19 = vadd.f32 %v4555_v10, %v4460_v33 }
 0x7b5   : > { %v4848_v3 = vadd.f32 %v9846_v5, %v4812_v57 }
 0x7b6   : > { %v4592_v9 = vrot.slane %v4556_v19, 1 }
 0x7b7   : > { %v4880_v28 = vmax.f32 %v4848_v3, 0.0 }
 0x7b8   : > { %v4597_v55 = vsel %vm2170_vm4, %v4591_v12, %v4592_v9  ;;  %v4364_v12 = vadd.f32 %v4332_v21, %v10971_v38 }
 0x7b9   : > { %4913 = vst.msk [vmem:[%s9860_s16 + $0xc8] sm:$0xff] %vm4887_vm5, %v4880_v28  ;;  %v4781_v59 = vmul.f32 %v4733_v31, %v4597_v55 }
 0x7bb   : > { %v4813_v42 = vadd.f32 %v4781_v59, %v4361_v53  ;;  %v4463_v24 = vpop.f32.mrf.mxu2 }
 0x7bc   : > { %v4559_v50 = vadd.f32 %v4558_v17, %v4463_v24 }
 0x7bd   : > { %v4849_v40 = vadd.f32 %v9846_v5, %v4813_v42 }
 0x7be   : > { %v4593_v15 = vrot.slane %v4559_v50, 1 }
 0x7bf   : > { %v4881_v2 = vmax.f32 %v4849_v40, 0.0 }
 0x7c0   : > { %v4596_v47 = vsel %vm2170_vm4, %v4592_v9, %v4593_v15 }
 0x7c1   : > { %4914 = vst.msk [vmem:[%s9860_s16 + $0xd0] sm:$0xff] %vm4887_vm5, %v4881_v2  ;;  %v4782_v56 = vmul.f32 %v10965_v49, %v4596_v47 }
 0x7c3   : > { %v4814_v26 = vadd.f32 %v4782_v56, %v4362_v27  ;;  %v4465_v13 = vpop.f32.mrf.mxu2 }
 0x7c4   : > { %v4561_v46 = vadd.f32 %v4560_v32, %v4465_v13 }
 0x7c5   : > { %v4850_v58 = vadd.f32 %v9846_v5, %v4814_v26 }
 0x7c6   : > { %v4594_v22 = vrot.slane %v4561_v46, 1 }
 0x7c7   : > { %v4882_v43 = vmax.f32 %v4850_v58, 0.0 }
 0x7c8   : > { %v4595_v51 = vsel %vm2170_vm4, %v4593_v15, %v4594_v22  ;;  %v4626_v18 = vsel %vm2170_vm4, %v4594_v22, %v10969_v39 }
 0x7c9   : > { %4915 = vst.msk [vmem:[%s9860_s16 + $0xd8] sm:$0xff] %vm4887_vm5, %v4882_v43  ;;  %v4783_v10 = vmul.f32 %v10972_v35, %v4595_v51  ;;  %v4784_v8 = vmul.f32 %v4745_v16, %v4626_v18 }
 0x7cb   : > { %v4815_v37 = vadd.f32 %v4783_v10, %v4363_v1  ;;  %v4816_v62 = vadd.f32 %v4784_v8, %v4364_v12 }
 0x7cd   : > { %v4851_v45 = vadd.f32 %v9846_v5, %v4815_v37  ;;  %v4852_v54 = vadd.f32 %v9846_v5, %v4816_v62 }
 0x7cf   : > { %v4883_v41 = vmax.f32 %v4851_v45, 0.0  ;;  %v4884_v57 = vmax.f32 %v4852_v54, 0.0 }
 0x7d1   : > { %4916 = vst.msk [vmem:[%s9860_s16 + $0xe0] sm:$0xff] %vm4887_vm5, %v4883_v41 }
 0x7d2   : > { %4917 = vst.msk [vmem:[%s9860_s16 + $0xe8] sm:$0xff] %vm4887_vm5, %v4884_v57 }
 0x7d3 PF: > { %s20_s13 = sadd.s32 1, %s5824_s13  }
 0x7d4   : > { %p17_p4 = scmp.ge.s32.totalorder %s20_s13, 4  }
 0x7d6   :  { %19 = sbr.rel (!%p17_p4) target bundleno = 1 (0x1), region = 106 }

</bundles_post_ra>
